<compile_context>
chip_gen: v5e
topology: v5e:2x2
jax: 0.10.0
libtpu: 0.0.40
codegen_flags: <defaults>
</compile_context>

<pallas_src>
import functools

import jax
import jax.numpy as jnp
from jax import lax
from jax.experimental import pallas as pl
from jax.experimental.pallas import tpu as pltpu

EPS = 1e-5


def _write_reflect_pad(pad_ref, img, H, W):
    """Write reflection-pad-1 of `img` (H, W, C) into pad_ref (H+2, W+2, C)."""
    pad_ref[1:H + 1, 1:W + 1, :] = img
    pad_ref[0:1, 1:W + 1, :] = img[1:2]                    # top row    = img row 1
    pad_ref[H + 1:H + 2, 1:W + 1, :] = img[H - 2:H - 1]    # bottom row = img row H-2
    # Columns last: corners fall out correctly because the rows above are final.
    pad_ref[:, 0:1, :] = pad_ref[:, 2:3, :]                # left  col = img col 1
    pad_ref[:, W + 1:W + 2, :] = pad_ref[:, W - 1:W, :]    # right col = img col W-2


def _im2col(pad_ref, col_ref, H, W, C):
    """col[:, t*C:(t+1)*C] = tap (dy, dx) of the padded image, t = 3*dy+dx."""
    for dy in range(3):
        for dx in range(3):
            t = 3 * dy + dx
            tap = pad_ref[dy:dy + H, dx:dx + W, :]          # (H, W, C)
            col_ref[:, t * C:(t + 1) * C] = tap.reshape(H * W, C)


def _conv3x3_instnorm(col_ref, w_ref, hw, relu):
    """3x3 conv as one long-K MXU matmul, then InstanceNorm (+ optional ReLU)."""
    acc = jnp.dot(col_ref[...], w_ref[...],
                  preferred_element_type=jnp.float32)       # (H*W, C) f32
    inv_hw = 1.0 / hw
    mean = jnp.sum(acc, axis=0, keepdims=True) * inv_hw
    ex2 = jnp.sum(acc * acc, axis=0, keepdims=True) * inv_hw
    var = jnp.maximum(ex2 - mean * mean, 0.0)               # biased var, one pass
    y = (acc - mean) * lax.rsqrt(var + EPS)
    if relu:
        y = jnp.maximum(y, 0.0)
    return y


def _resblock_kernel(x_ref, w1_ref, w2_ref, out_ref, pad_ref, col_ref,
                     *, H, W, C):
    """Fused ResBlock for one batch element.

    x_ref  : (1, H, W, C)        input (also the residual)
    w1_ref : (9*C, C)            conv1 weights, rows ordered (dy, dx, cin)
    w2_ref : (9*C, C)            conv2 weights
    out_ref: (1, H, W, C)
    pad_ref: VMEM (H+2, W+2, C)  reflection-padded image (reused by stage 2)
    col_ref: VMEM (H*W, 9*C)     im2col matrix            (reused by stage 2)
    """
    hw = H * W
    x = x_ref[0]                                            # load once; also residual

    # ---- stage 1: refpad -> conv1 -> InstanceNorm -> ReLU -----------------
    _write_reflect_pad(pad_ref, x, H, W)
    _im2col(pad_ref, col_ref, H, W, C)
    y1 = _conv3x3_instnorm(col_ref, w1_ref, hw, relu=True)

    # ---- stage 2: refpad -> conv2 -> InstanceNorm (scratch reused) --------
    _write_reflect_pad(pad_ref, y1.reshape(H, W, C), H, W)
    _im2col(pad_ref, col_ref, H, W, C)
    y2 = _conv3x3_instnorm(col_ref, w2_ref, hw, relu=False)

    # ---- residual add ------------------------------------------------------
    out_ref[0] = (x + y2.reshape(H, W, C)).astype(out_ref.dtype)


def res_block_forward(x_nchw, w1, b1, w2, b2):
    """ResBlock forward.  x_nchw: (N, C, H, W); w*: (C, C, 3, 3); b*: (C,).

    The conv biases are accepted for API parity with the PyTorch module but
    unused: InstanceNorm's mean subtraction cancels a per-channel bias exactly.
    """
    del b1, b2
    N, C, H, W = x_nchw.shape
    Cp = ((C + 127) // 128) * 128                     # lane-dense channel count

    # NCHW -> NHWC; zero-pad channels to Cp (padded channels stay exactly zero
    # through conv / IN / residual and are sliced off at the end).
    x = jnp.transpose(x_nchw, (0, 2, 3, 1)).astype(jnp.float32)
    if Cp != C:
        x = jnp.pad(x, ((0, 0), (0, 0), (0, 0), (0, Cp - C)))

    def prep_weight(w):
        wk = jnp.transpose(w, (2, 3, 1, 0)).astype(jnp.float32)   # (3,3,Cin,Cout)
        if Cp != C:
            wk = jnp.pad(wk, ((0, 0), (0, 0), (0, Cp - C), (0, Cp - C)))
        return wk.reshape(9 * Cp, Cp)                 # rows ordered (dy, dx, cin)

    w1k = prep_weight(w1)
    w2k = prep_weight(w2)

    kernel = functools.partial(_resblock_kernel, H=H, W=W, C=Cp)

    y = pl.pallas_call(
        kernel,
        out_shape=jax.ShapeDtypeStruct((N, H, W, Cp), jnp.float32),
        grid_spec=pltpu.PrefetchScalarGridSpec(
            num_scalar_prefetch=0,
            grid=(N,),
            in_specs=[
                pl.BlockSpec((1, H, W, Cp), lambda n: (n, 0, 0, 0)),
                pl.BlockSpec((9 * Cp, Cp), lambda n: (0, 0)),
                pl.BlockSpec((9 * Cp, Cp), lambda n: (0, 0)),
            ],
            out_specs=pl.BlockSpec((1, H, W, Cp), lambda n: (n, 0, 0, 0)),
            scratch_shapes=[
                pltpu.VMEM((H + 2, W + 2, Cp), jnp.float32),
                pltpu.VMEM((H * W, 9 * Cp), jnp.float32),
            ],
        ),
        compiler_params=pltpu.CompilerParams(
            dimension_semantics=("parallel",),
            vmem_limit_bytes=32 * 1024 * 1024,
        ),
    )(x, w1k, w2k)

    if Cp != C:
        y = y[..., :C]
    return jnp.transpose(y, (0, 3, 1, 2))             # NHWC -> NCHW


def _reference_forward(x, w1, b1, w2, b2):
    """Pure-JAX reference (NCHW); mirrors the PyTorch module exactly,
    including the conv biases (which the kernel provably drops)."""
    def conv(h, w, b):
        hp = jnp.pad(h, ((0, 0), (0, 0), (1, 1), (1, 1)), mode="reflect")
        y = lax.conv_general_dilated(
            hp, w, (1, 1), "VALID",
            dimension_numbers=("NCHW", "OIHW", "NCHW"),
            precision=lax.Precision.HIGHEST,
        )
        return y + b[None, :, None, None]

    def inorm(y):
        m = y.mean(axis=(2, 3), keepdims=True)
        v = ((y - m) ** 2).mean(axis=(2, 3), keepdims=True)
        return (y - m) * lax.rsqrt(v + EPS)

    h = jnp.maximum(inorm(conv(x, w1, b1)), 0.0)
    return x + inorm(conv(h, w2, b2))


if __name__ == "__main__":
    N, C, H, W = 2, 4, 16, 16

    key = jax.random.PRNGKey(0)
    kx, kw1, kb1, kw2, kb2 = jax.random.split(key, 5)

    x = jax.random.normal(kx, (N, C, H, W), dtype=jnp.float32)

    fan_in = C * 3 * 3
    scale = 1.0 / (fan_in ** 0.5)
    w1 = jax.random.normal(kw1, (C, C, 3, 3), dtype=jnp.float32) * scale
    b1 = jax.random.normal(kb1, (C,), dtype=jnp.float32) * scale
    w2 = jax.random.normal(kw2, (C, C, 3, 3), dtype=jnp.float32) * scale
    b2 = jax.random.normal(kb2, (C,), dtype=jnp.float32) * scale

    fwd = jax.jit(res_block_forward)
    out = jax.block_until_ready(fwd(x, w1, b1, w2, b2))

    ref = jax.block_until_ready(_reference_forward(x, w1, b1, w2, b2))
    assert out.shape == (N, C, H, W)
    # Tolerance sized to absorb MXU-vs-XLA matmul precision differences while
    # still catching any structural error (pad / conv / IN / residual), which
    # would produce O(1) discrepancies.
    if not jnp.allclose(out, ref, rtol=2e-2, atol=2e-2):
        raise AssertionError("Pallas ResBlock does not match reference")

    print("KERNEL_OK")
</pallas_src>

<mosaic_0001>
module attributes {stable_mosaic.version = 11 : i64} {
  func.func @_resblock_kernel(%arg0: i32, %arg1: memref<1x16x16x128xf32, #tpu.memory_space<vmem>>, %arg2: memref<1152x128xf32, #tpu.memory_space<vmem>>, %arg3: memref<1152x128xf32, #tpu.memory_space<vmem>>, %arg4: memref<1x16x16x128xf32, #tpu.memory_space<vmem>>, %arg5: memref<18x18x128xf32, #tpu.memory_space<vmem>>, %arg6: memref<256x1152xf32, #tpu.memory_space<vmem>>) attributes {dimension_semantics = [#tpu.dimension_semantics<parallel>], iteration_bounds = array<i64: 2>, scalar_prefetch = 0 : i64, scratch_operands = 2 : i64, tpu.core_type = #tpu.core_type<tc>, window_params = [{transform_indices = @transform_0, window_bounds = array<i64: 1, 16, 16, 128>}, {pipeline_mode = #tpu.pipeline_mode<synchronous>, transform_indices = @transform_1, window_bounds = array<i64: 1152, 128>}, {pipeline_mode = #tpu.pipeline_mode<synchronous>, transform_indices = @transform_2, window_bounds = array<i64: 1152, 128>}, {transform_indices = @transform_3, window_bounds = array<i64: 1, 16, 16, 128>}]} {
    %c0 = arith.constant 0 : index
    %c0_0 = arith.constant 0 : index
    %c0_1 = arith.constant 0 : index
    %c0_2 = arith.constant 0 : index
    %0 = vector.load %arg1[%c0, %c0_0, %c0_1, %c0_2] : memref<1x16x16x128xf32, #tpu.memory_space<vmem>>, vector<1x16x16x128xf32>
    %1 = vector.shape_cast %0 : vector<1x16x16x128xf32> to vector<16x16x128xf32>
    %c1 = arith.constant 1 : index
    %c1_3 = arith.constant 1 : index
    %c0_4 = arith.constant 0 : index
    %2 = vector.load %arg5[%c1, %c1_3, %c0_4] : memref<18x18x128xf32, #tpu.memory_space<vmem>>, vector<16x16x128xf32>
    tpu.vector_store %arg5[%c1, %c1_3, %c0_4], %1 {strides = array<i32>} : memref<18x18x128xf32, #tpu.memory_space<vmem>>, vector<16x16x128xf32>,
    %3 = vector.extract_strided_slice %1 {offsets = [1, 0, 0], sizes = [1, 16, 128], strides = [1, 1, 1]} : vector<16x16x128xf32> to vector<1x16x128xf32>
    %c0_5 = arith.constant 0 : index
    %c1_6 = arith.constant 1 : index
    %c0_7 = arith.constant 0 : index
    %4 = vector.load %arg5[%c0_5, %c1_6, %c0_7] : memref<18x18x128xf32, #tpu.memory_space<vmem>>, vector<1x16x128xf32>
    tpu.vector_store %arg5[%c0_5, %c1_6, %c0_7], %3 {strides = array<i32>} : memref<18x18x128xf32, #tpu.memory_space<vmem>>, vector<1x16x128xf32>,
    %5 = vector.extract_strided_slice %1 {offsets = [14, 0, 0], sizes = [1, 16, 128], strides = [1, 1, 1]} : vector<16x16x128xf32> to vector<1x16x128xf32>
    %c17 = arith.constant 17 : index
    %c1_8 = arith.constant 1 : index
    %c0_9 = arith.constant 0 : index
    %6 = vector.load %arg5[%c17, %c1_8, %c0_9] : memref<18x18x128xf32, #tpu.memory_space<vmem>>, vector<1x16x128xf32>
    tpu.vector_store %arg5[%c17, %c1_8, %c0_9], %5 {strides = array<i32>} : memref<18x18x128xf32, #tpu.memory_space<vmem>>, vector<1x16x128xf32>,
    %c0_10 = arith.constant 0 : index
    %c2 = arith.constant 2 : index
    %c0_11 = arith.constant 0 : index
    %7 = vector.load %arg5[%c0_10, %c2, %c0_11] : memref<18x18x128xf32, #tpu.memory_space<vmem>>, vector<18x1x128xf32>
    %c0_12 = arith.constant 0 : index
    %c0_13 = arith.constant 0 : index
    %c0_14 = arith.constant 0 : index
    %8 = vector.load %arg5[%c0_12, %c0_13, %c0_14] : memref<18x18x128xf32, #tpu.memory_space<vmem>>, vector<18x1x128xf32>
    tpu.vector_store %arg5[%c0_12, %c0_13, %c0_14], %7 {strides = array<i32>} : memref<18x18x128xf32, #tpu.memory_space<vmem>>, vector<18x1x128xf32>,
    %c0_15 = arith.constant 0 : index
    %c15 = arith.constant 15 : index
    %c0_16 = arith.constant 0 : index
    %9 = vector.load %arg5[%c0_15, %c15, %c0_16] : memref<18x18x128xf32, #tpu.memory_space<vmem>>, vector<18x1x128xf32>
    %c0_17 = arith.constant 0 : index
    %c17_18 = arith.constant 17 : index
    %c0_19 = arith.constant 0 : index
    %10 = vector.load %arg5[%c0_17, %c17_18, %c0_19] : memref<18x18x128xf32, #tpu.memory_space<vmem>>, vector<18x1x128xf32>
    tpu.vector_store %arg5[%c0_17, %c17_18, %c0_19], %9 {strides = array<i32>} : memref<18x18x128xf32, #tpu.memory_space<vmem>>, vector<18x1x128xf32>,
    %c0_20 = arith.constant 0 : index
    %c0_21 = arith.constant 0 : index
    %c0_22 = arith.constant 0 : index
    %11 = vector.load %arg5[%c0_20, %c0_21, %c0_22] : memref<18x18x128xf32, #tpu.memory_space<vmem>>, vector<16x16x128xf32>
    %12 = vector.shape_cast %11 : vector<16x16x128xf32> to vector<256x128xf32>
    %c0_23 = arith.constant 0 : index
    %c0_24 = arith.constant 0 : index
    %13 = vector.load %arg6[%c0_23, %c0_24] : memref<256x1152xf32, #tpu.memory_space<vmem>>, vector<256x128xf32>
    tpu.vector_store %arg6[%c0_23, %c0_24], %12 {strides = array<i32>} : memref<256x1152xf32, #tpu.memory_space<vmem>>, vector<256x128xf32>,
    %c0_25 = arith.constant 0 : index
    %c1_26 = arith.constant 1 : index
    %c0_27 = arith.constant 0 : index
    %14 = vector.load %arg5[%c0_25, %c1_26, %c0_27] : memref<18x18x128xf32, #tpu.memory_space<vmem>>, vector<16x16x128xf32>
    %15 = vector.shape_cast %14 : vector<16x16x128xf32> to vector<256x128xf32>
    %c0_28 = arith.constant 0 : index
    %c128 = arith.constant 128 : index
    %16 = vector.load %arg6[%c0_28, %c128] : memref<256x1152xf32, #tpu.memory_space<vmem>>, vector<256x128xf32>
    tpu.vector_store %arg6[%c0_28, %c128], %15 {strides = array<i32>} : memref<256x1152xf32, #tpu.memory_space<vmem>>, vector<256x128xf32>,
    %c0_29 = arith.constant 0 : index
    %c2_30 = arith.constant 2 : index
    %c0_31 = arith.constant 0 : index
    %17 = vector.load %arg5[%c0_29, %c2_30, %c0_31] : memref<18x18x128xf32, #tpu.memory_space<vmem>>, vector<16x16x128xf32>
    %18 = vector.shape_cast %17 : vector<16x16x128xf32> to vector<256x128xf32>
    %c0_32 = arith.constant 0 : index
    %c256 = arith.constant 256 : index
    %19 = vector.load %arg6[%c0_32, %c256] : memref<256x1152xf32, #tpu.memory_space<vmem>>, vector<256x128xf32>
    tpu.vector_store %arg6[%c0_32, %c256], %18 {strides = array<i32>} : memref<256x1152xf32, #tpu.memory_space<vmem>>, vector<256x128xf32>,
    %c1_33 = arith.constant 1 : index
    %c0_34 = arith.constant 0 : index
    %c0_35 = arith.constant 0 : index
    %20 = vector.load %arg5[%c1_33, %c0_34, %c0_35] : memref<18x18x128xf32, #tpu.memory_space<vmem>>, vector<16x16x128xf32>
    %21 = vector.shape_cast %20 : vector<16x16x128xf32> to vector<256x128xf32>
    %c0_36 = arith.constant 0 : index
    %c384 = arith.constant 384 : index
    %22 = vector.load %arg6[%c0_36, %c384] : memref<256x1152xf32, #tpu.memory_space<vmem>>, vector<256x128xf32>
    tpu.vector_store %arg6[%c0_36, %c384], %21 {strides = array<i32>} : memref<256x1152xf32, #tpu.memory_space<vmem>>, vector<256x128xf32>,
    %c1_37 = arith.constant 1 : index
    %c1_38 = arith.constant 1 : index
    %c0_39 = arith.constant 0 : index
    %23 = vector.load %arg5[%c1_37, %c1_38, %c0_39] : memref<18x18x128xf32, #tpu.memory_space<vmem>>, vector<16x16x128xf32>
    %24 = vector.shape_cast %23 : vector<16x16x128xf32> to vector<256x128xf32>
    %c0_40 = arith.constant 0 : index
    %c512 = arith.constant 512 : index
    %25 = vector.load %arg6[%c0_40, %c512] : memref<256x1152xf32, #tpu.memory_space<vmem>>, vector<256x128xf32>
    tpu.vector_store %arg6[%c0_40, %c512], %24 {strides = array<i32>} : memref<256x1152xf32, #tpu.memory_space<vmem>>, vector<256x128xf32>,
    %c1_41 = arith.constant 1 : index
    %c2_42 = arith.constant 2 : index
    %c0_43 = arith.constant 0 : index
    %26 = vector.load %arg5[%c1_41, %c2_42, %c0_43] : memref<18x18x128xf32, #tpu.memory_space<vmem>>, vector<16x16x128xf32>
    %27 = vector.shape_cast %26 : vector<16x16x128xf32> to vector<256x128xf32>
    %c0_44 = arith.constant 0 : index
    %c640 = arith.constant 640 : index
    %28 = vector.load %arg6[%c0_44, %c640] : memref<256x1152xf32, #tpu.memory_space<vmem>>, vector<256x128xf32>
    tpu.vector_store %arg6[%c0_44, %c640], %27 {strides = array<i32>} : memref<256x1152xf32, #tpu.memory_space<vmem>>, vector<256x128xf32>,
    %c2_45 = arith.constant 2 : index
    %c0_46 = arith.constant 0 : index
    %c0_47 = arith.constant 0 : index
    %29 = vector.load %arg5[%c2_45, %c0_46, %c0_47] : memref<18x18x128xf32, #tpu.memory_space<vmem>>, vector<16x16x128xf32>
    %30 = vector.shape_cast %29 : vector<16x16x128xf32> to vector<256x128xf32>
    %c0_48 = arith.constant 0 : index
    %c768 = arith.constant 768 : index
    %31 = vector.load %arg6[%c0_48, %c768] : memref<256x1152xf32, #tpu.memory_space<vmem>>, vector<256x128xf32>
    tpu.vector_store %arg6[%c0_48, %c768], %30 {strides = array<i32>} : memref<256x1152xf32, #tpu.memory_space<vmem>>, vector<256x128xf32>,
    %c2_49 = arith.constant 2 : index
    %c1_50 = arith.constant 1 : index
    %c0_51 = arith.constant 0 : index
    %32 = vector.load %arg5[%c2_49, %c1_50, %c0_51] : memref<18x18x128xf32, #tpu.memory_space<vmem>>, vector<16x16x128xf32>
    %33 = vector.shape_cast %32 : vector<16x16x128xf32> to vector<256x128xf32>
    %c0_52 = arith.constant 0 : index
    %c896 = arith.constant 896 : index
    %34 = vector.load %arg6[%c0_52, %c896] : memref<256x1152xf32, #tpu.memory_space<vmem>>, vector<256x128xf32>
    tpu.vector_store %arg6[%c0_52, %c896], %33 {strides = array<i32>} : memref<256x1152xf32, #tpu.memory_space<vmem>>, vector<256x128xf32>,
    %c2_53 = arith.constant 2 : index
    %c2_54 = arith.constant 2 : index
    %c0_55 = arith.constant 0 : index
    %35 = vector.load %arg5[%c2_53, %c2_54, %c0_55] : memref<18x18x128xf32, #tpu.memory_space<vmem>>, vector<16x16x128xf32>
    %36 = vector.shape_cast %35 : vector<16x16x128xf32> to vector<256x128xf32>
    %c0_56 = arith.constant 0 : index
    %c1024 = arith.constant 1024 : index
    %37 = vector.load %arg6[%c0_56, %c1024] : memref<256x1152xf32, #tpu.memory_space<vmem>>, vector<256x128xf32>
    tpu.vector_store %arg6[%c0_56, %c1024], %36 {strides = array<i32>} : memref<256x1152xf32, #tpu.memory_space<vmem>>, vector<256x128xf32>,
    %c0_57 = arith.constant 0 : index
    %c0_58 = arith.constant 0 : index
    %38 = vector.load %arg6[%c0_57, %c0_58] : memref<256x1152xf32, #tpu.memory_space<vmem>>, vector<256x1152xf32>
    %c0_59 = arith.constant 0 : index
    %c0_60 = arith.constant 0 : index
    %39 = vector.load %arg2[%c0_59, %c0_60] : memref<1152x128xf32, #tpu.memory_space<vmem>>, vector<1152x128xf32>
    %cst = arith.constant dense<0.000000e+00> : vector<256x128xf32>
    %40 = tpu.matmul %38, %39, %cst {dimension_numbers = #tpu.dot_dimension_numbers<[1], [0], [0], [1], [0, 0, 1, 1], [], []>} : vector<256x1152xf32>, vector<1152x128xf32>, vector<256x128xf32> -> vector<256x128xf32>
    %cst_61 = arith.constant dense<0.000000e+00> : vector<128xf32>
    %41 = vector.multi_reduction <add>, %40, %cst_61 [0] : vector<256x128xf32> to vector<128xf32>
    %42 = vector.shape_cast %41 : vector<128xf32> to vector<1x128xf32>
    %cst_62 = arith.constant 3.906250e-03 : f32
    %43 = vector.broadcast %cst_62 : f32 to vector<1x128xf32>
    %44 = arith.mulf %42, %43 : vector<1x128xf32>
    %45 = arith.mulf %40, %40 : vector<256x128xf32>
    %cst_63 = arith.constant dense<0.000000e+00> : vector<128xf32>
    %46 = vector.multi_reduction <add>, %45, %cst_63 [0] : vector<256x128xf32> to vector<128xf32>
    %47 = vector.shape_cast %46 : vector<128xf32> to vector<1x128xf32>
    %cst_64 = arith.constant 3.906250e-03 : f32
    %48 = vector.broadcast %cst_64 : f32 to vector<1x128xf32>
    %49 = arith.mulf %47, %48 : vector<1x128xf32>
    %50 = arith.mulf %44, %44 : vector<1x128xf32>
    %51 = arith.subf %49, %50 : vector<1x128xf32>
    %cst_65 = arith.constant 0.000000e+00 : f32
    %52 = vector.broadcast %cst_65 : f32 to vector<1x128xf32>
    %53 = arith.maximumf %51, %52 : vector<1x128xf32>
    %54 = vector.broadcast %44 : vector<1x128xf32> to vector<256x128xf32>
    %55 = arith.subf %40, %54 : vector<256x128xf32>
    %cst_66 = arith.constant 9.99999974E-6 : f32
    %56 = vector.broadcast %cst_66 : f32 to vector<1x128xf32>
    %57 = arith.addf %53, %56 : vector<1x128xf32>
    %58 = math.rsqrt %57 : vector<1x128xf32>
    %59 = vector.broadcast %58 : vector<1x128xf32> to vector<256x128xf32>
    %60 = arith.mulf %55, %59 : vector<256x128xf32>
    %cst_67 = arith.constant 0.000000e+00 : f32
    %61 = vector.broadcast %cst_67 : f32 to vector<256x128xf32>
    %62 = arith.maximumf %60, %61 : vector<256x128xf32>
    %63 = vector.shape_cast %62 : vector<256x128xf32> to vector<16x16x128xf32>
    %c1_68 = arith.constant 1 : index
    %c1_69 = arith.constant 1 : index
    %c0_70 = arith.constant 0 : index
    %64 = vector.load %arg5[%c1_68, %c1_69, %c0_70] : memref<18x18x128xf32, #tpu.memory_space<vmem>>, vector<16x16x128xf32>
    tpu.vector_store %arg5[%c1_68, %c1_69, %c0_70], %63 {strides = array<i32>} : memref<18x18x128xf32, #tpu.memory_space<vmem>>, vector<16x16x128xf32>,
    %65 = vector.extract_strided_slice %63 {offsets = [1, 0, 0], sizes = [1, 16, 128], strides = [1, 1, 1]} : vector<16x16x128xf32> to vector<1x16x128xf32>
    %c0_71 = arith.constant 0 : index
    %c1_72 = arith.constant 1 : index
    %c0_73 = arith.constant 0 : index
    %66 = vector.load %arg5[%c0_71, %c1_72, %c0_73] : memref<18x18x128xf32, #tpu.memory_space<vmem>>, vector<1x16x128xf32>
    tpu.vector_store %arg5[%c0_71, %c1_72, %c0_73], %65 {strides = array<i32>} : memref<18x18x128xf32, #tpu.memory_space<vmem>>, vector<1x16x128xf32>,
    %67 = vector.extract_strided_slice %63 {offsets = [14, 0, 0], sizes = [1, 16, 128], strides = [1, 1, 1]} : vector<16x16x128xf32> to vector<1x16x128xf32>
    %c17_74 = arith.constant 17 : index
    %c1_75 = arith.constant 1 : index
    %c0_76 = arith.constant 0 : index
    %68 = vector.load %arg5[%c17_74, %c1_75, %c0_76] : memref<18x18x128xf32, #tpu.memory_space<vmem>>, vector<1x16x128xf32>
    tpu.vector_store %arg5[%c17_74, %c1_75, %c0_76], %67 {strides = array<i32>} : memref<18x18x128xf32, #tpu.memory_space<vmem>>, vector<1x16x128xf32>,
    %c0_77 = arith.constant 0 : index
    %c2_78 = arith.constant 2 : index
    %c0_79 = arith.constant 0 : index
    %69 = vector.load %arg5[%c0_77, %c2_78, %c0_79] : memref<18x18x128xf32, #tpu.memory_space<vmem>>, vector<18x1x128xf32>
    %c0_80 = arith.constant 0 : index
    %c0_81 = arith.constant 0 : index
    %c0_82 = arith.constant 0 : index
    %70 = vector.load %arg5[%c0_80, %c0_81, %c0_82] : memref<18x18x128xf32, #tpu.memory_space<vmem>>, vector<18x1x128xf32>
    tpu.vector_store %arg5[%c0_80, %c0_81, %c0_82], %69 {strides = array<i32>} : memref<18x18x128xf32, #tpu.memory_space<vmem>>, vector<18x1x128xf32>,
    %c0_83 = arith.constant 0 : index
    %c15_84 = arith.constant 15 : index
    %c0_85 = arith.constant 0 : index
    %71 = vector.load %arg5[%c0_83, %c15_84, %c0_85] : memref<18x18x128xf32, #tpu.memory_space<vmem>>, vector<18x1x128xf32>
    %c0_86 = arith.constant 0 : index
    %c17_87 = arith.constant 17 : index
    %c0_88 = arith.constant 0 : index
    %72 = vector.load %arg5[%c0_86, %c17_87, %c0_88] : memref<18x18x128xf32, #tpu.memory_space<vmem>>, vector<18x1x128xf32>
    tpu.vector_store %arg5[%c0_86, %c17_87, %c0_88], %71 {strides = array<i32>} : memref<18x18x128xf32, #tpu.memory_space<vmem>>, vector<18x1x128xf32>,
    %c0_89 = arith.constant 0 : index
    %c0_90 = arith.constant 0 : index
    %c0_91 = arith.constant 0 : index
    %73 = vector.load %arg5[%c0_89, %c0_90, %c0_91] : memref<18x18x128xf32, #tpu.memory_space<vmem>>, vector<16x16x128xf32>
    %74 = vector.shape_cast %73 : vector<16x16x128xf32> to vector<256x128xf32>
    %c0_92 = arith.constant 0 : index
    %c0_93 = arith.constant 0 : index
    %75 = vector.load %arg6[%c0_92, %c0_93] : memref<256x1152xf32, #tpu.memory_space<vmem>>, vector<256x128xf32>
    tpu.vector_store %arg6[%c0_92, %c0_93], %74 {strides = array<i32>} : memref<256x1152xf32, #tpu.memory_space<vmem>>, vector<256x128xf32>,
    %c0_94 = arith.constant 0 : index
    %c1_95 = arith.constant 1 : index
    %c0_96 = arith.constant 0 : index
    %76 = vector.load %arg5[%c0_94, %c1_95, %c0_96] : memref<18x18x128xf32, #tpu.memory_space<vmem>>, vector<16x16x128xf32>
    %77 = vector.shape_cast %76 : vector<16x16x128xf32> to vector<256x128xf32>
    %c0_97 = arith.constant 0 : index
    %c128_98 = arith.constant 128 : index
    %78 = vector.load %arg6[%c0_97, %c128_98] : memref<256x1152xf32, #tpu.memory_space<vmem>>, vector<256x128xf32>
    tpu.vector_store %arg6[%c0_97, %c128_98], %77 {strides = array<i32>} : memref<256x1152xf32, #tpu.memory_space<vmem>>, vector<256x128xf32>,
    %c0_99 = arith.constant 0 : index
    %c2_100 = arith.constant 2 : index
    %c0_101 = arith.constant 0 : index
    %79 = vector.load %arg5[%c0_99, %c2_100, %c0_101] : memref<18x18x128xf32, #tpu.memory_space<vmem>>, vector<16x16x128xf32>
    %80 = vector.shape_cast %79 : vector<16x16x128xf32> to vector<256x128xf32>
    %c0_102 = arith.constant 0 : index
    %c256_103 = arith.constant 256 : index
    %81 = vector.load %arg6[%c0_102, %c256_103] : memref<256x1152xf32, #tpu.memory_space<vmem>>, vector<256x128xf32>
    tpu.vector_store %arg6[%c0_102, %c256_103], %80 {strides = array<i32>} : memref<256x1152xf32, #tpu.memory_space<vmem>>, vector<256x128xf32>,
    %c1_104 = arith.constant 1 : index
    %c0_105 = arith.constant 0 : index
    %c0_106 = arith.constant 0 : index
    %82 = vector.load %arg5[%c1_104, %c0_105, %c0_106] : memref<18x18x128xf32, #tpu.memory_space<vmem>>, vector<16x16x128xf32>
    %83 = vector.shape_cast %82 : vector<16x16x128xf32> to vector<256x128xf32>
    %c0_107 = arith.constant 0 : index
    %c384_108 = arith.constant 384 : index
    %84 = vector.load %arg6[%c0_107, %c384_108] : memref<256x1152xf32, #tpu.memory_space<vmem>>, vector<256x128xf32>
    tpu.vector_store %arg6[%c0_107, %c384_108], %83 {strides = array<i32>} : memref<256x1152xf32, #tpu.memory_space<vmem>>, vector<256x128xf32>,
    %c1_109 = arith.constant 1 : index
    %c1_110 = arith.constant 1 : index
    %c0_111 = arith.constant 0 : index
    %85 = vector.load %arg5[%c1_109, %c1_110, %c0_111] : memref<18x18x128xf32, #tpu.memory_space<vmem>>, vector<16x16x128xf32>
    %86 = vector.shape_cast %85 : vector<16x16x128xf32> to vector<256x128xf32>
    %c0_112 = arith.constant 0 : index
    %c512_113 = arith.constant 512 : index
    %87 = vector.load %arg6[%c0_112, %c512_113] : memref<256x1152xf32, #tpu.memory_space<vmem>>, vector<256x128xf32>
    tpu.vector_store %arg6[%c0_112, %c512_113], %86 {strides = array<i32>} : memref<256x1152xf32, #tpu.memory_space<vmem>>, vector<256x128xf32>,
    %c1_114 = arith.constant 1 : index
    %c2_115 = arith.constant 2 : index
    %c0_116 = arith.constant 0 : index
    %88 = vector.load %arg5[%c1_114, %c2_115, %c0_116] : memref<18x18x128xf32, #tpu.memory_space<vmem>>, vector<16x16x128xf32>
    %89 = vector.shape_cast %88 : vector<16x16x128xf32> to vector<256x128xf32>
    %c0_117 = arith.constant 0 : index
    %c640_118 = arith.constant 640 : index
    %90 = vector.load %arg6[%c0_117, %c640_118] : memref<256x1152xf32, #tpu.memory_space<vmem>>, vector<256x128xf32>
    tpu.vector_store %arg6[%c0_117, %c640_118], %89 {strides = array<i32>} : memref<256x1152xf32, #tpu.memory_space<vmem>>, vector<256x128xf32>,
    %c2_119 = arith.constant 2 : index
    %c0_120 = arith.constant 0 : index
    %c0_121 = arith.constant 0 : index
    %91 = vector.load %arg5[%c2_119, %c0_120, %c0_121] : memref<18x18x128xf32, #tpu.memory_space<vmem>>, vector<16x16x128xf32>
    %92 = vector.shape_cast %91 : vector<16x16x128xf32> to vector<256x128xf32>
    %c0_122 = arith.constant 0 : index
    %c768_123 = arith.constant 768 : index
    %93 = vector.load %arg6[%c0_122, %c768_123] : memref<256x1152xf32, #tpu.memory_space<vmem>>, vector<256x128xf32>
    tpu.vector_store %arg6[%c0_122, %c768_123], %92 {strides = array<i32>} : memref<256x1152xf32, #tpu.memory_space<vmem>>, vector<256x128xf32>,
    %c2_124 = arith.constant 2 : index
    %c1_125 = arith.constant 1 : index
    %c0_126 = arith.constant 0 : index
    %94 = vector.load %arg5[%c2_124, %c1_125, %c0_126] : memref<18x18x128xf32, #tpu.memory_space<vmem>>, vector<16x16x128xf32>
    %95 = vector.shape_cast %94 : vector<16x16x128xf32> to vector<256x128xf32>
    %c0_127 = arith.constant 0 : index
    %c896_128 = arith.constant 896 : index
    %96 = vector.load %arg6[%c0_127, %c896_128] : memref<256x1152xf32, #tpu.memory_space<vmem>>, vector<256x128xf32>
    tpu.vector_store %arg6[%c0_127, %c896_128], %95 {strides = array<i32>} : memref<256x1152xf32, #tpu.memory_space<vmem>>, vector<256x128xf32>,
    %c2_129 = arith.constant 2 : index
    %c2_130 = arith.constant 2 : index
    %c0_131 = arith.constant 0 : index
    %97 = vector.load %arg5[%c2_129, %c2_130, %c0_131] : memref<18x18x128xf32, #tpu.memory_space<vmem>>, vector<16x16x128xf32>
    %98 = vector.shape_cast %97 : vector<16x16x128xf32> to vector<256x128xf32>
    %c0_132 = arith.constant 0 : index
    %c1024_133 = arith.constant 1024 : index
    %99 = vector.load %arg6[%c0_132, %c1024_133] : memref<256x1152xf32, #tpu.memory_space<vmem>>, vector<256x128xf32>
    tpu.vector_store %arg6[%c0_132, %c1024_133], %98 {strides = array<i32>} : memref<256x1152xf32, #tpu.memory_space<vmem>>, vector<256x128xf32>,
    %c0_134 = arith.constant 0 : index
    %c0_135 = arith.constant 0 : index
    %100 = vector.load %arg6[%c0_134, %c0_135] : memref<256x1152xf32, #tpu.memory_space<vmem>>, vector<256x1152xf32>
    %c0_136 = arith.constant 0 : index
    %c0_137 = arith.constant 0 : index
    %101 = vector.load %arg3[%c0_136, %c0_137] : memref<1152x128xf32, #tpu.memory_space<vmem>>, vector<1152x128xf32>
    %cst_138 = arith.constant dense<0.000000e+00> : vector<256x128xf32>
    %102 = tpu.matmul %100, %101, %cst_138 {dimension_numbers = #tpu.dot_dimension_numbers<[1], [0], [0], [1], [0, 0, 1, 1], [], []>} : vector<256x1152xf32>, vector<1152x128xf32>, vector<256x128xf32> -> vector<256x128xf32>
    %cst_139 = arith.constant dense<0.000000e+00> : vector<128xf32>
    %103 = vector.multi_reduction <add>, %102, %cst_139 [0] : vector<256x128xf32> to vector<128xf32>
    %104 = vector.shape_cast %103 : vector<128xf32> to vector<1x128xf32>
    %cst_140 = arith.constant 3.906250e-03 : f32
    %105 = vector.broadcast %cst_140 : f32 to vector<1x128xf32>
    %106 = arith.mulf %104, %105 : vector<1x128xf32>
    %107 = arith.mulf %102, %102 : vector<256x128xf32>
    %cst_141 = arith.constant dense<0.000000e+00> : vector<128xf32>
    %108 = vector.multi_reduction <add>, %107, %cst_141 [0] : vector<256x128xf32> to vector<128xf32>
    %109 = vector.shape_cast %108 : vector<128xf32> to vector<1x128xf32>
    %cst_142 = arith.constant 3.906250e-03 : f32
    %110 = vector.broadcast %cst_142 : f32 to vector<1x128xf32>
    %111 = arith.mulf %109, %110 : vector<1x128xf32>
    %112 = arith.mulf %106, %106 : vector<1x128xf32>
    %113 = arith.subf %111, %112 : vector<1x128xf32>
    %cst_143 = arith.constant 0.000000e+00 : f32
    %114 = vector.broadcast %cst_143 : f32 to vector<1x128xf32>
    %115 = arith.maximumf %113, %114 : vector<1x128xf32>
    %116 = vector.broadcast %106 : vector<1x128xf32> to vector<256x128xf32>
    %117 = arith.subf %102, %116 : vector<256x128xf32>
    %cst_144 = arith.constant 9.99999974E-6 : f32
    %118 = vector.broadcast %cst_144 : f32 to vector<1x128xf32>
    %119 = arith.addf %115, %118 : vector<1x128xf32>
    %120 = math.rsqrt %119 : vector<1x128xf32>
    %121 = vector.broadcast %120 : vector<1x128xf32> to vector<256x128xf32>
    %122 = arith.mulf %117, %121 : vector<256x128xf32>
    %123 = vector.shape_cast %122 : vector<256x128xf32> to vector<16x16x128xf32>
    %124 = arith.addf %1, %123 : vector<16x16x128xf32>
    %c0_145 = arith.constant 0 : index
    %c0_146 = arith.constant 0 : index
    %c0_147 = arith.constant 0 : index
    %c0_148 = arith.constant 0 : index
    %125 = vector.load %arg4[%c0_145, %c0_146, %c0_147, %c0_148] : memref<1x16x16x128xf32, #tpu.memory_space<vmem>>, vector<1x16x16x128xf32>
    %126 = vector.shape_cast %125 : vector<1x16x16x128xf32> to vector<16x16x128xf32>
    %127 = vector.shape_cast %124 : vector<16x16x128xf32> to vector<1x16x16x128xf32>
    tpu.vector_store %arg4[%c0_145, %c0_146, %c0_147, %c0_148], %127 {strides = array<i32>} : memref<1x16x16x128xf32, #tpu.memory_space<vmem>>, vector<1x16x16x128xf32>,
    return
  }
  func.func @transform_0(%arg0: i32) -> (i32, i32, i32, i32) {
    %c0_i32 = arith.constant 0 : i32
    %c0_i32_0 = arith.constant 0 : i32
    %c0_i32_1 = arith.constant 0 : i32
    %c0_i32_2 = arith.constant 0 : i32
    return %arg0, %c0_i32, %c0_i32_0, %c0_i32_1 : i32, i32, i32, i32
  }
  func.func @transform_1(%arg0: i32) -> (i32, i32) {
    %c0_i32 = arith.constant 0 : i32
    %c0_i32_0 = arith.constant 0 : i32
    %c0_i32_1 = arith.constant 0 : i32
    return %c0_i32, %c0_i32_0 : i32, i32
  }
  func.func @transform_2(%arg0: i32) -> (i32, i32) {
    %c0_i32 = arith.constant 0 : i32
    %c0_i32_0 = arith.constant 0 : i32
    %c0_i32_1 = arith.constant 0 : i32
    return %c0_i32, %c0_i32_0 : i32, i32
  }
  func.func @transform_3(%arg0: i32) -> (i32, i32, i32, i32) {
    %c0_i32 = arith.constant 0 : i32
    %c0_i32_0 = arith.constant 0 : i32
    %c0_i32_1 = arith.constant 0 : i32
    %c0_i32_2 = arith.constant 0 : i32
    return %arg0, %c0_i32, %c0_i32_0, %c0_i32_1 : i32, i32, i32, i32
  }
}

</mosaic_0001>

<bundles_post_ra>
// kernel: res_block_forward.1
= control target key start
LH: loop header
LB: loop body
LE: loop exit
PB: predicated region body
PF: predicated region fallthrough
CT: control target
= control target key end

     0   :  { %s5080_s12 = smov 0   ;;  %s8023_s0 = inlined_call_operand.vmem [shape: f32[2,16,16,128], index: 0, kind: input, shape index: {}]   ;;  %s8024_s1 = inlined_call_operand.vmem [shape: f32[1152,128], index: 1, kind: input, shape index: {}]   ;;  %s8025_s2 = inlined_call_operand.vmem [shape: f32[1152,128], index: 2, kind: input, shape index: {}]   ;;  %s8026_s3 = inlined_call_operand.vmem [shape: f32[2,16,16,128], index: 3, kind: output, shape index: {}]  }
   0x1 LB: > { %s4995_s13 = sadd.s32 4294967295, %s5058_s12   ;;  %p4999_p0 = scmp.ge.s32.totalorder %s5058_s12, 1  ;;  %s5058_s12 = sphi %s5080_s12, %s13_s12  }
   0x2   : > { %p137_p1 = scmp.lt.s32.totalorder %s5058_s12, 3 }
   0x4   : > { %p138_p2 = pnand %p4999_p0, %p137_p1 }
   0x6   : > { %141 = sbr.rel (%p138_p2) target bundleno = 1880 (0x758), region = 32 }
   0xb   : > { %v1193_v0 = vld [vmem:[%s8024_s1 + $0x78] sm:$0xff]  ;;  %v1192_v2 = vld [vmem:[%s8024_s1 + $0x70] sm:$0xff]  ;;  %p161_p3 = scmp.lt.s32.totalorder %s4995_s13, 1  ;;  %v1191_v4 = vld [vmem:[%s8024_s1 + $0x68] sm:$0xff] }
   0xc   : > { %v1209_v1 = vld [vmem:[%s8024_s1 + $0xf8] sm:$0xff]  ;;  %5008 = vmatpush.msra.mxu2 %v1193_v0  ;;  %v1208_v3 = vld [vmem:[%s8024_s1 + $0xf0] sm:$0xff]  ;;  %v1207_v5 = vld [vmem:[%s8024_s1 + $0xe8] sm:$0xff]  ;;  %1322 = vmatpush.msra.mxu0 %v1193_v0 }
   0xd   : > { %5024 = vmatpush.msra.mxu3 %v1209_v1  ;;  %1435 = vmatpush.msra.mxu1 %v1209_v1  ;;  %s8318_s13 = smov (!%p161_p3, %s4995_s13), 1  ;;  %v1190_v6 = vld [vmem:[%s8024_s1 + $0x60] sm:$0xff]  ;;  %v1189_v8 = vld [vmem:[%s8024_s1 + $0x58] sm:$0xff]  ;;  %v1188_v10 = vld [vmem:[%s8024_s1 + $0x50] sm:$0xff] }
   0xe   : > { %5009 = vmatpush.msra.mxu2 %v1192_v2  ;;  %v1206_v7 = vld [vmem:[%s8024_s1 + $0xe0] sm:$0xff]  ;;  %1323 = vmatpush.msra.mxu0 %v1192_v2  ;;  %s5006_s30 = sshll.u32 %s8318_s13, 8  ;;  %v1205_v9 = vld [vmem:[%s8024_s1 + $0xd8] sm:$0xff]  ;;  %v1204_v11 = vld [vmem:[%s8024_s1 + $0xd0] sm:$0xff] }
   0xf   : > { %5025 = vmatpush.msra.mxu3 %v1208_v3  ;;  %1436 = vmatpush.msra.mxu1 %v1208_v3  ;;  %s5126_s10 = scalar_lea.vmem %s8023_s0, %s5006_s30  ;;  %v1187_v12 = vld [vmem:[%s8024_s1 + $0x48] sm:$0xff]  ;;  %v1186_v16 = vld [vmem:[%s8024_s1 + $0x40] sm:$0xff]  ;;  %v1185_v21 = vld [vmem:[%s8024_s1 + $0x38] sm:$0xff]  ;;  %s7942_s29 = scalar_lea.vmem %s8026_s3, %s5006_s30 }
  0x10   : > { %5010 = vmatpush.msra.mxu2 %v1191_v4  ;;  %1324 = vmatpush.msra.mxu0 %v1191_v4  ;;  %v1203_v13 = vld [vmem:[%s8024_s1 + $0xc8] sm:$0xff]  ;;  %v5141_v14 = vld [vmem:[%s5126_s10 + $0x70] sm:$0xff]  ;;  %v5145_v15 = vld [vmem:[%s5126_s10 + $0x78] sm:$0xff] }
  0x11   : > { %5026 = vmatpush.msra.mxu3 %v1207_v5  ;;  %1437 = vmatpush.msra.mxu1 %v1207_v5  ;;  %8079 = vst [vmem:[#allocation4_spill] sm:$0xff] %v5141_v14  ;;  %v1202_v17 = vld [vmem:[%s8024_s1 + $0xc0] sm:$0xff]  ;;  %v5155_v18 = vld [vmem:[%s5126_s10 + $0x10] sm:$0xff]  ;;  %v5162_v20 = vld [vmem:[%s5126_s10 + $0x18] sm:$0xff] }
  0x12   : > { %5011 = vmatpush.msra.mxu2 %v1190_v6  ;;  %1325 = vmatpush.msra.mxu0 %v1190_v6  ;;  %218 = vst [vmem:[#allocation2 + $0xc1] sm:$0xff] %v5141_v14  ;;  %v5159_v19 = vld [vmem:[%s5126_s10 + $0x80] sm:$0xff]  ;;  %v1201_v22 = vld [vmem:[%s8024_s1 + $0xb8] sm:$0xff]  ;;  %v5173_v23 = vld [vmem:[%s5126_s10 + $0x88] sm:$0xff] }
  0x13   : > { %5027 = vmatpush.msra.mxu3 %v1206_v7  ;;  %1438 = vmatpush.msra.mxu1 %v1206_v7  ;;  %8080 = vst [vmem:[#allocation5_spill] sm:$0xff] %v5145_v15  ;;  %v1184_v24 = vld [vmem:[%s8024_s1 + $0x30] sm:$0xff]  ;;  %v5184_v26 = vld [vmem:[%s5126_s10] sm:$0xff]  ;;  %v1183_v27 = vld [vmem:[%s8024_s1 + $0x28] sm:$0xff] }
  0x14   : > { %5012 = vmatpush.msra.mxu2 %v1189_v8  ;;  %1326 = vmatpush.msra.mxu0 %v1189_v8  ;;  %219 = vst [vmem:[#allocation2 + $0xc9] sm:$0xff] %v5145_v15  ;;  %v1200_v25 = vld [vmem:[%s8024_s1 + $0xb0] sm:$0xff]  ;;  %v1199_v28 = vld [vmem:[%s8024_s1 + $0xa8] sm:$0xff]  ;;  %v1182_v31 = vld [vmem:[%s8024_s1 + $0x20] sm:$0xff] }
  0x15   : > { %5028 = vmatpush.msra.mxu3 %v1205_v9  ;;  %1439 = vmatpush.msra.mxu1 %v1205_v9  ;;  %8081 = vst [vmem:[#allocation6_spill] sm:$0xff] %v5155_v18  ;;  %v5194_v30 = vld [vmem:[%s5126_s10 + $0x90] sm:$0xff]  ;;  %v1198_v32 = vld [vmem:[%s8024_s1 + $0xa0] sm:$0xff]  ;;  %v1181_v34 = vld [vmem:[%s8024_s1 + $0x18] sm:$0xff] }
  0x16   : > { %5013 = vmatpush.msra.mxu2 %v1188_v10  ;;  %1327 = vmatpush.msra.mxu0 %v1188_v10  ;;  %236 = vst [vmem:[#allocation2 + $0x1] sm:$0xff] %v5155_v18  ;;  %v1197_v35 = vld [vmem:[%s8024_s1 + $0x98] sm:$0xff]  ;;  %v1180_v37 = vld [vmem:[%s8024_s1 + $0x10] sm:$0xff]  ;;  %v5217_v39 = vld [vmem:[%s5126_s10 + $0x8] sm:$0xff] }
  0x17   : > { %5029 = vmatpush.msra.mxu3 %v1204_v11  ;;  %1440 = vmatpush.msra.mxu1 %v1204_v11  ;;  %8082 = vst [vmem:[#allocation7_spill] sm:$0xff] %v5159_v19  ;;  %v1196_v38 = vld [vmem:[%s8024_s1 + $0x90] sm:$0xff]  ;;  %v1179_v40 = vld [vmem:[%s8024_s1 + $0x8] sm:$0xff]  ;;  %v1178_v43 = vld [vmem:[%s8024_s1] sm:$0xff] }
  0x18   : > { %5014 = vmatpush.msra.mxu2 %v1187_v12  ;;  %8083 = vst [vmem:[#allocation8_spill] sm:$0xff] %v5162_v20  ;;  %1328 = vmatpush.msra.mxu0 %v1187_v12  ;;  %v1195_v41 = vld [vmem:[%s8024_s1 + $0x88] sm:$0xff]  ;;  %v1194_v44 = vld [vmem:[%s8024_s1 + $0x80] sm:$0xff]  ;;  %v1225_v47 = vld [vmem:[%s8024_s1 + $0x178] sm:$0xff] }
  0x19   : > { %5030 = vmatpush.msra.mxu3 %v1203_v13  ;;  %1441 = vmatpush.msra.mxu1 %v1203_v13  ;;  %206 = vst [vmem:[#allocation2 + $0x31] sm:$0xff] %v5155_v18  ;;  %v249_v29 = vld [vmem:[#allocation2 + $0xc2] sm:$0x1]  ;;  %v1241_v48 = vld [vmem:[%s8024_s1 + $0x1f8] sm:$0xff]  ;;  %v1224_v51 = vld [vmem:[%s8024_s1 + $0x170] sm:$0xff] }
  0x1a   : > { %5015 = vmatpush.msra.mxu2 %v1186_v16  ;;  %220 = vst [vmem:[#allocation2 + $0xd9] sm:$0xff] %v5159_v19  ;;  %1329 = vmatpush.msra.mxu0 %v1186_v16  ;;  %v5239_v49 = vld [vmem:[%s5126_s10 + $0x98] sm:$0xff]  ;;  %v5242_v50 = vld [vmem:[%s5126_s10 + $0xa0] sm:$0xff]  ;;  %v1240_v53 = vld [vmem:[%s8024_s1 + $0x1f0] sm:$0xff] }
  0x1b   : > { %5031 = vmatpush.msra.mxu3 %v1202_v17  ;;  %8084 = vst [vmem:[#allocation9_spill] sm:$0xff] %v5173_v23  ;;  %1442 = vmatpush.msra.mxu1 %v1202_v17  ;;  %v1257_v55 = vld [vmem:[%s8024_s1 + $0x278] sm:$0xff]  ;;  %v1223_v56 = vld [vmem:[%s8024_s1 + $0x168] sm:$0xff]  ;;  %v1256_v58 = vld [vmem:[%s8024_s1 + $0x270] sm:$0xff] }
  0x1c   : > { %237 = vst [vmem:[#allocation2 + $0x9] sm:$0xff] %v5162_v20  ;;  %5016 = vmatpush.msra.mxu2 %v1185_v21  ;;  %1330 = vmatpush.msra.mxu0 %v1185_v21  ;;  %v1239_v57 = vld [vmem:[%s8024_s1 + $0x1e8] sm:$0xff]  ;;  %v1222_v59 = vld [vmem:[%s8024_s1 + $0x160] sm:$0xff]  ;;  %v1221_v63 = vld [vmem:[%s8024_s1 + $0x158] sm:$0xff] }
  0x1d   : > { %5032 = vmatpush.msra.mxu3 %v1201_v22  ;;  %207 = vst [vmem:[#allocation2 + $0x39] sm:$0xff] %v5162_v20  ;;  %1443 = vmatpush.msra.mxu1 %v1201_v22  ;;  %v241_v33 = vld [vmem:[#allocation2 + $0x2] sm:$0x1]  ;;  %v330_v60 = vld [vmem:[#allocation2 + $0xc8] sm:$0xff]  ;;  %v1237_v1 = vld [vmem:[%s8024_s1 + $0x1d8] sm:$0xff] }
  0x1e   : > { %8085 = vst [vmem:[#allocation10_spill] sm:$0xff] %v5184_v26  ;;  %5017 = vmatpush.msra.mxu2 %v1184_v24  ;;  %1331 = vmatpush.msra.mxu0 %v1184_v24  ;;  %v1238_v61 = vld [vmem:[%s8024_s1 + $0x1e0] sm:$0xff]  ;;  %v1255_v62 = vld [vmem:[%s8024_s1 + $0x268] sm:$0xff]  ;;  %v1220_v5 = vld [vmem:[%s8024_s1 + $0x150] sm:$0xff] }
  0x1f   : > { %221 = vst [vmem:[#allocation2 + $0xe1] sm:$0xff] %v5173_v23  ;;  %5033 = vmatpush.msra.mxu3 %v1200_v25  ;;  %1444 = vmatpush.msra.mxu1 %v1200_v25  ;;  %v1254_v2 = vld [vmem:[%s8024_s1 + $0x260] sm:$0xff]  ;;  %v1236_v6 = vld [vmem:[%s8024_s1 + $0x1d0] sm:$0xff]  ;;  %v1253_v7 = vld [vmem:[%s8024_s1 + $0x258] sm:$0xff] }
  0x20   : > { %267 = vst [vmem:[#allocation2 + $0xc0] sm:$0x1] %v249_v29  ;;  %5018 = vmatpush.msra.mxu2 %v1183_v27  ;;  %1332 = vmatpush.msra.mxu0 %v1183_v27  ;;  %v243_v54 = vld [vmem:[#allocation2 + $0x32] sm:$0x1]  ;;  %v5286_v4 = vld [vmem:[%s5126_s10 + $0x20] sm:$0xff]  ;;  %v5300_v9 = vld [vmem:[%s5126_s10 + $0xa8] sm:$0xff] }
  0x21   : > { %8086 = vst [vmem:[#allocation11_spill] sm:$0xff] %v5194_v30  ;;  %5034 = vmatpush.msra.mxu3 %v1199_v28  ;;  %1445 = vmatpush.msra.mxu1 %v1199_v28  ;;  %v250_v36 = vld [vmem:[#allocation2 + $0xda] sm:$0x1]  ;;  %v5303_v10 = vld [vmem:[%s5126_s10 + $0xb0] sm:$0xff]  ;;  %v1219_v12 = vld [vmem:[%s8024_s1 + $0x148] sm:$0xff] }
  0x22   : > { %204 = vst [vmem:[#allocation2 + $0x19] sm:$0xff] %v5184_v26  ;;  %5019 = vmatpush.msra.mxu2 %v1182_v31  ;;  %1333 = vmatpush.msra.mxu0 %v1182_v31  ;;  %v1235_v13 = vld [vmem:[%s8024_s1 + $0x1c8] sm:$0xff]  ;;  %v1252_v16 = vld [vmem:[%s8024_s1 + $0x250] sm:$0xff]  ;;  %v1218_v24 = vld [vmem:[%s8024_s1 + $0x140] sm:$0xff] }
  0x23   : > { %259 = vst [vmem:[#allocation2] sm:$0x1] %v241_v33  ;;  %5035 = vmatpush.msra.mxu3 %v1198_v32  ;;  %1446 = vmatpush.msra.mxu1 %v1198_v32  ;;  %v314_v0 = vld [vmem:[#allocation2 + $0x8] sm:$0xff]  ;;  %v1234_v25 = vld [vmem:[%s8024_s1 + $0x1c0] sm:$0xff]  ;;  %v5337_v31 = vld [vmem:[%s5126_s10 + $0x30] sm:$0xff] }
  0x24   : > { %222 = vst [vmem:[#allocation2 + $0xf1] sm:$0xff] %v5194_v30  ;;  %5020 = vmatpush.msra.mxu2 %v1181_v34  ;;  %1334 = vmatpush.msra.mxu0 %v1181_v34  ;;  %v1251_v27 = vld [vmem:[%s8024_s1 + $0x248] sm:$0xff]  ;;  %v5346_v34 = vld [vmem:[%s5126_s10 + $0xb8] sm:$0xff] }
  0x25   : > { %268 = vst [vmem:[#allocation2 + $0xd8] sm:$0x1] %v250_v36  ;;  %5036 = vmatpush.msra.mxu3 %v1197_v35  ;;  %1447 = vmatpush.msra.mxu1 %v1197_v35  ;;  %v5334_v29 = vld [vmem:[%s5126_s10 + $0x28] sm:$0xff]  ;;  %v5349_v35 = vld [vmem:[%s5126_s10 + $0xc0] sm:$0xff]  ;;  %v1217_v36 = vld [vmem:[%s8024_s1 + $0x138] sm:$0xff] }
  0x26   : > { %8087 = vst [vmem:[#allocation12_spill] sm:$0xff] %v5217_v39  ;;  %5021 = vmatpush.msra.mxu2 %v1180_v37  ;;  %1335 = vmatpush.msra.mxu0 %v1180_v37  ;;  %v332_v21 = vld [vmem:[#allocation2 + $0xe0] sm:$0xff]  ;;  %v1233_v37 = vld [vmem:[%s8024_s1 + $0x1b8] sm:$0xff] }
  0x27   : > { %205 = vst [vmem:[#allocation2 + $0x21] sm:$0xff] %v5217_v39  ;;  %5037 = vmatpush.msra.mxu3 %v1196_v38  ;;  %1448 = vmatpush.msra.mxu1 %v1196_v38  ;;  %v329_v45 = vld [vmem:[#allocation2 + $0xc0] sm:$0xff] }
  0x28   : > { %5022 = vmatpush.msra.mxu2 %v1179_v40  ;;  %1336 = vmatpush.msra.mxu0 %v1179_v40  ;;  %8088 = vst [vmem:[#allocation13_spill] sm:$0xff] %v5239_v49  ;;  %v1250_v38 = vld [vmem:[%s8024_s1 + $0x240] sm:$0xff] }
  0x29   : > { %v242_v42 = vld [vmem:[#allocation2 + $0x1a] sm:$0x1]  ;;  %5038 = vmatpush.msra.mxu3 %v1195_v41  ;;  %1449 = vmatpush.msra.mxu1 %v1195_v41  ;;  %8089 = vst [vmem:[#allocation14_spill] sm:$0xff] %v5242_v50 }
  0x2a   : > { %260 = vst [vmem:[#allocation2 + $0x18] sm:$0x1] %v242_v42  ;;  %5023 = vmatpush.msra.mxu2 %v1178_v43  ;;  %v313_v52 = vld [vmem:[#allocation2] sm:$0xff]  ;;  %1337 = vmatpush.msra.mxu0 %v1178_v43  ;;  %v5365_v42 = vld [vmem:[#allocation2 + $0x38] sm:$0xff]  ;;  %v1216_v43 = vld [vmem:[%s8024_s1 + $0x130] sm:$0xff] }
  0x2b   : > { %v251_v46 = vld [vmem:[#allocation2 + $0xf2] sm:$0x1]  ;;  %5039 = vmatpush.msra.mxu3 %v1194_v44  ;;  %1386 = vmatmul.f32.vlgmr.msra.gmra.mxu2 %v329_v45  ;;  %223 = vst [vmem:[#allocation2 + $0xf9] sm:$0xff] %v5239_v49  ;;  %v1249_v45 = vld [vmem:[%s8024_s1 + $0x238] sm:$0xff] }
  0x2c   : > { %269 = vst [vmem:[#allocation2 + $0xf0] sm:$0x1] %v251_v46  ;;  %1499 = vmatmul.f32.vlgmr.msra.gmra.mxu3 %v5141_v14  ;;  %1548 = vmatpush.msrb.mxu2 %v1225_v47  ;;  %v331_v8 = vld [vmem:[#allocation2 + $0xd8] sm:$0xff] }
  0x2d   : > { %1661 = vmatpush.msrb.mxu3 %v1241_v48  ;;  %224 = vst [vmem:[#allocation2 + $0x109] sm:$0xff] %v5242_v50  ;;  %1450 = vmatpush.msra.mxu1 %v1194_v44  ;;  %v1232_v44 = vld [vmem:[%s8024_s1 + $0x1b0] sm:$0xff]  ;;  %v5378_v47 = vld [vmem:[%s5126_s10 + $0x38] sm:$0xff]  ;;  %v5381_v48 = vld [vmem:[%s5126_s10 + $0x40] sm:$0xff] }
  0x2e   : > { %261 = vst [vmem:[#allocation2 + $0x30] sm:$0x1] %v243_v54  ;;  %1549 = vmatpush.msrb.mxu2 %v1224_v51  ;;  %1338 = vmatmul.f32.vlgmr.msra.gmra.mxu0 %v313_v52  ;;  %v5321_v22 = vld [vmem:[#allocation2 + $0x20] sm:$0xff]  ;;  %v5393_v54 = vld [vmem:[%s5126_s10 + $0xd0] sm:$0xff] }
  0x2f   : > { %1451 = vmatmul.f32.vlgmr.msra.gmra.mxu1 %v5155_v18  ;;  %1662 = vmatpush.msrb.mxu3 %v1240_v53  ;;  %8090 = vst [vmem:[#allocation15_spill] sm:$0xff] %v5286_v4  ;;  %v5390_v53 = vld [vmem:[%s5126_s10 + $0xc8] sm:$0xff] }
  0x30   : > { %1774 = vmatpush.msrb.mxu0 %v1257_v55  ;;  %1550 = vmatpush.msrb.mxu2 %v1223_v56  ;;  %208 = vst [vmem:[#allocation2 + $0x49] sm:$0xff] %v5286_v4  ;;  %v1215_v55 = vld [vmem:[%s8024_s1 + $0x128] sm:$0xff] }
  0x31   : > { %1663 = vmatpush.msrb.mxu3 %v1239_v57  ;;  %8091 = vst [vmem:[#allocation16_spill] sm:$0xff] %v5300_v9  ;;  %v5306_v11 = vld [vmem:[#allocation2 + $0x18] sm:$0xff]  ;;  %v1231_v56 = vld [vmem:[%s8024_s1 + $0x1a8] sm:$0xff]  ;;  %v1248_v57 = vld [vmem:[%s8024_s1 + $0x230] sm:$0xff] }
  0x32   : > { %1775 = vmatpush.msrb.mxu0 %v1256_v58  ;;  %1551 = vmatpush.msrb.mxu2 %v1222_v59  ;;  %8092 = vst [vmem:[#allocation17_spill] sm:$0xff] %v5303_v10  ;;  %v334_v41 = vld [vmem:[#allocation2 + $0xf8] sm:$0xff] }
  0x33   : > { %1389 = vmatmul.f32.gmra.mxu2 %v330_v60  ;;  %1664 = vmatpush.msrb.mxu3 %v1238_v61  ;;  %225 = vst [vmem:[#allocation2 + $0x111] sm:$0xff] %v5300_v9  ;;  %v333_v32 = vld [vmem:[#allocation2 + $0xf0] sm:$0xff]  ;;  %v1214_v61 = vld [vmem:[%s8024_s1 + $0x120] sm:$0xff] }
  0x34   : > { %1502 = vmatmul.f32.gmra.mxu3 %v5145_v15  ;;  %1776 = vmatpush.msrb.mxu0 %v1255_v62  ;;  %v252_v3 = vld [vmem:[#allocation2 + $0x10a] sm:$0x1]  ;;  %226 = vst [vmem:[#allocation2 + $0x121] sm:$0xff] %v5303_v10  ;;  %v1230_v62 = vld [vmem:[%s8024_s1 + $0x1a0] sm:$0xff]  ;;  %v1313_v15 = vld [vmem:[%s8024_s1 + $0x438] sm:$0xff] }
  0x35   : > { %1552 = vmatpush.msrb.mxu2 %v1221_v63  ;;  %270 = vst [vmem:[#allocation2 + $0x108] sm:$0x1] %v252_v3  ;;  %1665 = vmatpush.msrb.mxu3 %v1237_v1  ;;  %v5343_v33 = vld [vmem:[#allocation2 + $0x30] sm:$0xff]  ;;  %v1247_v63 = vld [vmem:[%s8024_s1 + $0x228] sm:$0xff] }
  0x36   : > { %1341 = vmatmul.f32.gmra.mxu0 %v314_v0  ;;  %8093 = vst [vmem:[#allocation18_spill] sm:$0xff] %v5334_v29  ;;  %v5422_v1 = vld [vmem:[%s5126_s10 + $0x48] sm:$0xff] }
  0x37   : > { %1454 = vmatmul.f32.gmra.mxu1 %v5162_v20  ;;  %1777 = vmatpush.msrb.mxu0 %v1254_v2  ;;  %v244_v17 = vld [vmem:[#allocation2 + $0x4a] sm:$0x1]  ;;  %8094 = vst [vmem:[#allocation19_spill] sm:$0xff] %v5337_v31  ;;  %v5425_v2 = vld [vmem:[%s5126_s10 + $0x50] sm:$0xff] }
  0x38   : > { %1553 = vmatpush.msrb.mxu2 %v1220_v5  ;;  %1666 = vmatpush.msrb.mxu3 %v1236_v6  ;;  %262 = vst [vmem:[#allocation2 + $0x48] sm:$0x1] %v244_v17  ;;  %v5434_v6 = vld [vmem:[%s5126_s10 + $0xd8] sm:$0xff] }
  0x39   : > { %1778 = vmatpush.msrb.mxu0 %v1253_v7  ;;  %209 = vst [vmem:[#allocation2 + $0x51] sm:$0xff] %v5334_v29  ;;  %v5437_v7 = vld [vmem:[%s5126_s10 + $0xe0] sm:$0xff] }
  0x3a   : > { %1554 = vmatpush.msrb.mxu2 %v1219_v12  ;;  %1667 = vmatpush.msrb.mxu3 %v1235_v13  ;;  %210 = vst [vmem:[#allocation2 + $0x61] sm:$0xff] %v5337_v31  ;;  %v336_v59 = vld [vmem:[#allocation2 + $0x110] sm:$0xff]  ;;  %v1229_v12 = vld [vmem:[%s8024_s1 + $0x198] sm:$0xff]  ;;  %v1246_v13 = vld [vmem:[%s8024_s1 + $0x220] sm:$0xff] }
  0x3b   : > { %1392 = vmatmul.f32.gmra.mxu2 %v331_v8  ;;  %1779 = vmatpush.msrb.mxu0 %v1252_v16  ;;  %v253_v28 = vld [vmem:[#allocation2 + $0x122] sm:$0x1]  ;;  %8095 = vst [vmem:[#allocation20_spill] sm:$0xff] %v5346_v34  ;;  %v1213_v8 = vld [vmem:[%s8024_s1 + $0x118] sm:$0xff] }
  0x3c   : > { %1505 = vmatmul.f32.gmra.mxu3 %v5159_v19  ;;  %1555 = vmatpush.msrb.mxu2 %v1218_v24  ;;  %271 = vst [vmem:[#allocation2 + $0x120] sm:$0x1] %v253_v28  ;;  %v335_v51 = vld [vmem:[#allocation2 + $0x108] sm:$0xff]  ;;  %v1212_v24 = vld [vmem:[%s8024_s1 + $0x110] sm:$0xff]  ;;  %v1273_v28 = vld [vmem:[%s8024_s1 + $0x2f8] sm:$0xff] }
  0x3d   : > { %1668 = vmatpush.msrb.mxu3 %v1234_v25  ;;  %1780 = vmatpush.msrb.mxu0 %v1251_v27  ;;  %8096 = vst [vmem:[#allocation21_spill] sm:$0xff] %v5349_v35  ;;  %v1228_v25 = vld [vmem:[%s8024_s1 + $0x190] sm:$0xff]  ;;  %v1245_v27 = vld [vmem:[%s8024_s1 + $0x218] sm:$0xff] }
  0x3e   : > { %1344 = vmatmul.f32.gmra.mxu0 %v5306_v11  ;;  %227 = vst [vmem:[#allocation2 + $0x129] sm:$0xff] %v5346_v34  ;;  %1556 = vmatpush.msrb.mxu2 %v1217_v36  ;;  %v1272_v36 = vld [vmem:[%s8024_s1 + $0x2f0] sm:$0xff] }
  0x3f   : > { %1457 = vmatmul.f32.gmra.mxu1 %v5184_v26  ;;  %1669 = vmatpush.msrb.mxu3 %v1233_v37  ;;  %228 = vst [vmem:[#allocation2 + $0x139] sm:$0xff] %v5349_v35  ;;  %v5387_v52 = vld [vmem:[#allocation2 + $0x48] sm:$0xff]  ;;  %v5473_v37 = vld [vmem:[%s5126_s10 + $0x58] sm:$0xff] }
  0x40   : > { %1781 = vmatpush.msrb.mxu0 %v1250_v38  ;;  %1557 = vmatpush.msrb.mxu2 %v1216_v43  ;;  %8097 = vst [vmem:[#allocation22_spill] sm:$0xff] %v5378_v47  ;;  %v5409_v60 = vld [vmem:[#allocation2 + $0x50] sm:$0xff]  ;;  %v5476_v38 = vld [vmem:[%s5126_s10 + $0x60] sm:$0xff]  ;;  %v5485_v43 = vld [vmem:[%s5126_s10 + $0xe8] sm:$0xff] }
  0x41   : > { %v245_v40 = vld [vmem:[#allocation2 + $0x62] sm:$0x1]  ;;  %1670 = vmatpush.msrb.mxu3 %v1232_v44  ;;  %8098 = vst [vmem:[#allocation23_spill] sm:$0xff] %v5381_v48  ;;  %1887 = vmatpush.msrb.mxu1 %v1273_v28  ;;  %v1211_v44 = vld [vmem:[%s8024_s1 + $0x108] sm:$0xff] }
  0x42   : > { %263 = vst [vmem:[#allocation2 + $0x60] sm:$0x1] %v245_v40  ;;  %1782 = vmatpush.msrb.mxu0 %v1249_v45  ;;  %1558 = vmatpush.msrb.mxu2 %v1215_v55  ;;  %v1271_v45 = vld [vmem:[%s8024_s1 + $0x2e8] sm:$0xff]  ;;  %v1270_v55 = vld [vmem:[%s8024_s1 + $0x2e0] sm:$0xff] }
  0x43   : > { %1395 = vmatmul.f32.gmra.mxu2 %v332_v21  ;;  %211 = vst [vmem:[#allocation2 + $0x69] sm:$0xff] %v5378_v47  ;;  %1671 = vmatpush.msrb.mxu3 %v1231_v56  ;;  %v337_v3 = vld [vmem:[#allocation2 + $0x120] sm:$0xff]  ;;  %v1269_v56 = vld [vmem:[%s8024_s1 + $0x2d8] sm:$0xff]  ;;  %v1263_v28 = vld [vmem:[%s8024_s1 + $0x2a8] sm:$0xff] }
  0x44   : > { %1508 = vmatmul.f32.gmra.mxu3 %v5173_v23  ;;  %212 = vst [vmem:[#allocation2 + $0x79] sm:$0xff] %v5381_v48  ;;  %1783 = vmatpush.msrb.mxu0 %v1248_v57 }
  0x45   : > { %8099 = vst [vmem:[#allocation24_spill] sm:$0xff] %v5390_v53  ;;  %1559 = vmatpush.msrb.mxu2 %v1214_v61  ;;  %1672 = vmatpush.msrb.mxu3 %v1230_v62  ;;  %v338_v17 = vld [vmem:[#allocation2 + $0x128] sm:$0xff]  ;;  %v1210_v62 = vld [vmem:[%s8024_s1 + $0x100] sm:$0xff] }
  0x46   : > { %1347 = vmatmul.f32.gmra.mxu0 %v5321_v22  ;;  %v254_v46 = vld [vmem:[#allocation2 + $0x13a] sm:$0x1]  ;;  %8100 = vst [vmem:[#allocation25_spill] sm:$0xff] %v5393_v54  ;;  %1888 = vmatpush.msrb.mxu1 %v1272_v36 }
  0x47   : > { %1460 = vmatmul.f32.gmra.mxu1 %v5217_v39  ;;  %272 = vst [vmem:[#allocation2 + $0x138] sm:$0x1] %v254_v46  ;;  %1784 = vmatpush.msrb.mxu0 %v1247_v63  ;;  %v1227_v46 = vld [vmem:[%s8024_s1 + $0x188] sm:$0xff]  ;;  %v1305_v36 = vld [vmem:[%s8024_s1 + $0x3f8] sm:$0xff] }
  0x48   : > { %229 = vst [vmem:[#allocation2 + $0x141] sm:$0xff] %v5390_v53  ;;  %1560 = vmatpush.msrb.mxu2 %v1213_v8  ;;  %1673 = vmatpush.msrb.mxu3 %v1229_v12  ;;  %v1267_v63 = vld [vmem:[%s8024_s1 + $0x2c8] sm:$0xff]  ;;  %v1266_v8 = vld [vmem:[%s8024_s1 + $0x2c0] sm:$0xff]  ;;  %v1265_v12 = vld [vmem:[%s8024_s1 + $0x2b8] sm:$0xff] }
  0x49   : > { %230 = vst [vmem:[#allocation2 + $0x151] sm:$0xff] %v5393_v54  ;;  %v5431_v5 = vld [vmem:[#allocation2 + $0x60] sm:$0xff]  ;;  %1785 = vmatpush.msrb.mxu0 %v1246_v13  ;;  %1889 = vmatpush.msrb.mxu1 %v1271_v45  ;;  %v5535_v13 = vld [vmem:[%s5126_s10 + $0x68] sm:$0xff]  ;;  %v1260_v45 = vld [vmem:[%s8024_s1 + $0x290] sm:$0xff] }
  0x4a   : > { %8101 = vst [vmem:[#allocation26_spill] sm:$0xff] %v5422_v1  ;;  %v5454_v21 = vld [vmem:[#allocation2 + $0x68] sm:$0xff]  ;;  %1561 = vmatpush.msrb.mxu2 %v1212_v24  ;;  %1674 = vmatpush.msrb.mxu3 %v1228_v25 }
  0x4b   : > { %1398 = vmatmul.f32.gmra.mxu2 %v333_v32  ;;  %v246_v58 = vld [vmem:[#allocation2 + $0x7a] sm:$0x1]  ;;  %8102 = vst [vmem:[#allocation27_spill] sm:$0xff] %v5425_v2  ;;  %1786 = vmatpush.msrb.mxu0 %v1245_v27  ;;  %v277_v25 = vld [vmem:[#allocation2 + $0xf] sm:$0x1] }
  0x4c   : > { %1511 = vmatmul.f32.gmra.mxu3 %v5194_v30  ;;  %264 = vst [vmem:[#allocation2 + $0x78] sm:$0x1] %v246_v58  ;;  %1562 = vmatpush.msrb.mxu2 %v1211_v44  ;;  %v1268_v58 = vld [vmem:[%s8024_s1 + $0x2d0] sm:$0xff]  ;;  %v1289_v27 = vld [vmem:[%s8024_s1 + $0x378] sm:$0xff] }
  0x4d   : > { %213 = vst [vmem:[#allocation2 + $0x81] sm:$0xff] %v5422_v1  ;;  %1675 = vmatpush.msrb.mxu3 %v1227_v46  ;;  %1890 = vmatpush.msrb.mxu1 %v1270_v55  ;;  %v1261_v44 = vld [vmem:[%s8024_s1 + $0x298] sm:$0xff]  ;;  %v1259_v55 = vld [vmem:[%s8024_s1 + $0x288] sm:$0xff] }
  0x4e   : > { %1350 = vmatmul.f32.gmra.mxu0 %v5343_v33  ;;  %214 = vst [vmem:[#allocation2 + $0x91] sm:$0xff] %v5425_v2  ;;  %v339_v40 = vld [vmem:[#allocation2 + $0x138] sm:$0xff]  ;;  %1563 = vmatpush.msrb.mxu2 %v1210_v62 }
  0x4f   : > { %1463 = vmatmul.f32.gmra.mxu1 %v5155_v18  ;;  %8103 = vst [vmem:[#allocation28_spill] sm:$0xff] %v5434_v6 }
  0x50   : > { %v255_v0 = vld [vmem:[#allocation2 + $0x152] sm:$0x1]  ;;  %8104 = vst [vmem:[#allocation29_spill] sm:$0xff] %v5437_v7  ;;  %1891 = vmatpush.msrb.mxu1 %v1269_v56  ;;  %2000 = vmatpush.msra.mxu2 %v1289_v27  ;;  %v1321_v56 = vld [vmem:[%s8024_s1 + $0x478] sm:$0xff]  ;;  %v1287_v27 = vld [vmem:[%s8024_s1 + $0x368] sm:$0xff] }
  0x51   : > { %273 = vst [vmem:[#allocation2 + $0x150] sm:$0x1] %v255_v0  ;;  %v1226_v0 = vld [vmem:[%s8024_s1 + $0x180] sm:$0xff] }
  0x52   : > { %231 = vst [vmem:[#allocation2 + $0x159] sm:$0xff] %v5434_v6  ;;  %1892 = vmatpush.msrb.mxu1 %v1268_v58  ;;  %1676 = vmatpush.msrb.mxu3 %v1226_v0  ;;  %v278_v58 = vld [vmem:[#allocation2 + $0x27] sm:$0x1]  ;;  %v1304_v0 = vld [vmem:[%s8024_s1 + $0x3f0] sm:$0xff] }
  0x53   : > { %1401 = vmatmul.f32.gmra.mxu2 %v334_v41  ;;  %232 = vst [vmem:[#allocation2 + $0x169] sm:$0xff] %v5437_v7  ;;  %v5482_v41 = vld [vmem:[#allocation2 + $0x78] sm:$0xff] }
  0x54   : > { %1514 = vmatmul.f32.gmra.mxu3 %v5239_v49  ;;  %239 = vst [vmem:[#allocation2 + $0x199] sm:$0xff] %v5437_v7  ;;  %v5513_v61 = vld [vmem:[#allocation2 + $0x80] sm:$0xff]  ;;  %1893 = vmatpush.msrb.mxu1 %v1267_v63  ;;  %v1288_v63 = vld [vmem:[%s8024_s1 + $0x370] sm:$0xff] }
  0x55   : > { %v247_v16 = vld [vmem:[#allocation2 + $0x92] sm:$0x1]  ;;  %8105 = vst [vmem:[#allocation30_spill] sm:$0xff] %v5473_v37  ;;  %2113 = vmatpush.msra.mxu3 %v1305_v36  ;;  %2001 = vmatpush.msra.mxu2 %v1288_v63  ;;  %v633_v36 = vld [vmem:[#allocation2 + $0x1a] sm:$0xff]  ;;  %v280_v63 = vld [vmem:[#allocation2 + $0x57] sm:$0x1] }
  0x56   : > { %1353 = vmatmul.f32.gmra.mxu0 %v5365_v42  ;;  %265 = vst [vmem:[#allocation2 + $0x90] sm:$0x1] %v247_v16  ;;  %1894 = vmatpush.msrb.mxu1 %v1266_v8  ;;  %v1264_v16 = vld [vmem:[%s8024_s1 + $0x2b0] sm:$0xff] }
  0x57   : > { %1466 = vmatmul.f32.gmra.mxu1 %v5162_v20  ;;  %8106 = vst [vmem:[#allocation31_spill] sm:$0xff] %v5476_v38  ;;  %2114 = vmatpush.msra.mxu3 %v1304_v0 }
  0x58   : > { %215 = vst [vmem:[#allocation2 + $0x99] sm:$0xff] %v5473_v37  ;;  %1895 = vmatpush.msrb.mxu1 %v1265_v12  ;;  %v1320_v12 = vld [vmem:[%s8024_s1 + $0x470] sm:$0xff]  ;;  %2002 = vmatpush.msra.mxu2 %v1287_v27 }
  0x59   : > { %216 = vst [vmem:[#allocation2 + $0xa9] sm:$0xff] %v5476_v38  ;;  %v342_v46 = vld [vmem:[#allocation2 + $0x158] sm:$0xff] }
  0x5a   : > { %v256_v32 = vld [vmem:[#allocation2 + $0x16a] sm:$0x1]  ;;  %8107 = vst [vmem:[#allocation32_spill] sm:$0xff] %v5485_v43  ;;  %1896 = vmatpush.msrb.mxu1 %v1264_v16  ;;  %v279_v16 = vld [vmem:[#allocation2 + $0x3f] sm:$0x1] }
  0x5b   : > { %1404 = vmatmul.f32.gmra.mxu2 %v335_v51  ;;  %274 = vst [vmem:[#allocation2 + $0x168] sm:$0x1] %v256_v32  ;;  %v1244_v51 = vld [vmem:[%s8024_s1 + $0x210] sm:$0xff]  ;;  %v1242_v32 = vld [vmem:[%s8024_s1 + $0x200] sm:$0xff] }
  0x5c   : > { %1517 = vmatmul.f32.gmra.mxu3 %v5242_v50  ;;  %233 = vst [vmem:[#allocation2 + $0x171] sm:$0xff] %v5485_v43  ;;  %1787 = vmatpush.msrb.mxu0 %v1244_v51 }
  0x5d   : > { %240 = vst [vmem:[#allocation2 + $0x1a1] sm:$0xff] %v5485_v43  ;;  %v5543_v24 = vld [vmem:[#allocation2 + $0x90] sm:$0xff]  ;;  %1897 = vmatpush.msrb.mxu1 %v1263_v28  ;;  %v1303_v28 = vld [vmem:[%s8024_s1 + $0x3e8] sm:$0xff] }
  0x5e   : > { %1356 = vmatmul.f32.gmra.mxu0 %v5387_v52  ;;  %8108 = vst [vmem:[#allocation33_spill] sm:$0xff] %v5535_v13  ;;  %2115 = vmatpush.msra.mxu3 %v1303_v28 }
  0x5f   : > { %1469 = vmatmul.f32.gmra.mxu1 %v5286_v4  ;;  %217 = vst [vmem:[#allocation2 + $0xb1] sm:$0xff] %v5535_v13  ;;  %v5570_v51 = vld [vmem:[#allocation2 + $0x98] sm:$0xff] }
  0x60   : > { %v248_v57 = vld [vmem:[#allocation2 + $0xaa] sm:$0x1]  ;;  %295 = vst [vmem:[#allocation2 + $0x11] sm:$0x1] %v277_v25  ;;  %v643_v50 = vld [vmem:[#allocation2 + $0x92] sm:$0xff] }
  0x61   : > { %266 = vst [vmem:[#allocation2 + $0xa8] sm:$0x1] %v248_v57  ;;  %v1258_v57 = vld [vmem:[%s8024_s1 + $0x280] sm:$0xff] }
  0x62   : > { %296 = vst [vmem:[#allocation2 + $0x29] sm:$0x1] %v278_v58 }
  0x63   : > { %1407 = vmatmul.f32.gmra.mxu2 %v336_v59  ;;  %v340_v59 = vld [vmem:[#allocation2 + $0x140] sm:$0xff]  ;;  %297 = vst [vmem:[#allocation2 + $0x41] sm:$0x1] %v279_v16 }
  0x64   : > { %1520 = vmatmul.f32.gmra.mxu3 %v5300_v9  ;;  %298 = vst [vmem:[#allocation2 + $0x59] sm:$0x1] %v280_v63 }
  0x66   : > { %1359 = vmatmul.f32.gmra.mxu0 %v5409_v60  ;;  %v5595_v8 = vld [vmem:[#allocation2 + $0xb0] sm:$0xff] }
  0x67   : > { %1472 = vmatmul.f32.gmra.mxu1 %v5334_v29 }
  0x68   : > { %v5584_v62 = vld [vmem:[#allocation2 + $0xa8] sm:$0xff] }
  0x6b   : > { %1410 = vmatmul.f32.gmra.mxu2 %v337_v3  ;;  %v1243_v3 = vld [vmem:[%s8024_s1 + $0x208] sm:$0xff] }
  0x6c   : > { %1523 = vmatmul.f32.gmra.mxu3 %v5303_v10  ;;  %1788 = vmatpush.msrb.mxu0 %v1243_v3  ;;  %v344_v3 = vld [vmem:[#allocation2 + $0x170] sm:$0xff] }
  0x6e   : > { %1362 = vmatmul.f32.gmra.mxu0 %v5431_v5 }
  0x6f   : > { %1475 = vmatmul.f32.gmra.mxu1 %v5337_v31  ;;  %1789 = vmatpush.msrb.mxu0 %v1242_v32 }
  0x71   : > { %2226 = vmatpush.msra.mxu0 %v1321_v56 }
  0x73   : > { %1413 = vmatmul.f32.gmra.mxu2 %v338_v17  ;;  %v341_v17 = vld [vmem:[#allocation2 + $0x150] sm:$0xff]  ;;  %2227 = vmatpush.msra.mxu0 %v1320_v12  ;;  %v1302_v12 = vld [vmem:[%s8024_s1 + $0x3e0] sm:$0xff] }
  0x74   : > { %1526 = vmatmul.f32.gmra.mxu3 %v5346_v34 }
  0x75   : > { %2116 = vmatpush.msra.mxu3 %v1302_v12 }
  0x76   : > { %1365 = vmatmul.f32.gmra.mxu0 %v5454_v21 }
  0x77   : > { %1478 = vmatmul.f32.gmra.mxu1 %v5378_v47 }
  0x7b   : > { %1416 = vmatmul.f32.gmra.mxu2 %v339_v40  ;;  %v1262_v40 = vld [vmem:[%s8024_s1 + $0x2a0] sm:$0xff] }
  0x7c   : > { %1529 = vmatmul.f32.gmra.mxu3 %v5349_v35  ;;  %1898 = vmatpush.msrb.mxu1 %v1262_v40  ;;  %v641_v35 = vld [vmem:[#allocation2 + $0x7a] sm:$0xff] }
  0x7e   : > { %1368 = vmatmul.f32.gmra.mxu0 %v5482_v41  ;;  %1899 = vmatpush.msrb.mxu1 %v1261_v44 }
  0x7f   : > { %1481 = vmatmul.f32.gmra.mxu1 %v5381_v48 }
  0x80   : > { %1900 = vmatpush.msrb.mxu1 %v1260_v45  ;;  %v442_v45 = vld [vmem:[#allocation2 + $0xa] sm:$0xff] }
  0x82   : > { %1901 = vmatpush.msrb.mxu1 %v1259_v55  ;;  %v1319_v55 = vld [vmem:[%s8024_s1 + $0x468] sm:$0xff] }
  0x83   : > { %1419 = vmatmul.f32.gmra.mxu2 %v340_v59  ;;  %v343_v59 = vld [vmem:[#allocation2 + $0x168] sm:$0xff]  ;;  %2228 = vmatpush.msra.mxu0 %v1319_v55 }
  0x84   : > { %1532 = vmatmul.f32.gmra.mxu3 %v5390_v53  ;;  %1902 = vmatpush.msrb.mxu1 %v1258_v57  ;;  %v634_v57 = vld [vmem:[#allocation2 + $0x22] sm:$0xff] }
  0x86   : > { %1371 = vmatmul.f32.gmra.mxu0 %v5513_v61 }
  0x87   : > { %1484 = vmatmul.f32.gmra.mxu1 %v5422_v1 }
  0x8b   : > { %1422 = vmatmul.f32.gmra.mxu2 %v341_v17  ;;  %v441_v17 = vld [vmem:[#allocation2 + $0x2] sm:$0xff] }
  0x8c   : > { %1535 = vmatmul.f32.gmra.mxu3 %v5393_v54 }
  0x8e   : > { %1374 = vmatmul.f32.gmra.mxu0 %v5543_v24 }
  0x8f   : > { %1487 = vmatmul.f32.gmra.mxu1 %v5425_v2 }
  0x93   : > { %1425 = vmatmul.f32.gmra.mxu2 %v342_v46 }
  0x94   : > { %1538 = vmatmul.f32.gmra.mxu3 %v5434_v6 }
  0x96   : > { %1377 = vmatmul.f32.gmra.mxu0 %v5570_v51 }
  0x97   : > { %1490 = vmatmul.f32.gmra.mxu1 %v5473_v37 }
  0x9b   : > { %1428 = vmatmul.f32.gmra.mxu2 %v343_v59 }
  0x9c   : > { %1541 = vmatmul.f32.gmra.mxu3 %v5437_v7  ;;  %v639_v7 = vld [vmem:[#allocation2 + $0x62] sm:$0xff] }
  0x9e   : > { %1380 = vmatmul.f32.gmra.mxu0 %v5584_v62 }
  0x9f   : > { %1493 = vmatmul.f32.gmra.mxu1 %v5476_v38 }
  0xa3   : > { %1431 = vmatmul.f32.gmra.mxu2 %v344_v3  ;;  %v1286_v3 = vld [vmem:[%s8024_s1 + $0x360] sm:$0xff] }
  0xa4   : > { %1544 = vmatmul.f32.gmra.mxu3 %v5485_v43  ;;  %2003 = vmatpush.msra.mxu2 %v1286_v3  ;;  %v1301_v3 = vld [vmem:[%s8024_s1 + $0x3d8] sm:$0xff] }
  0xa5   : > { %2117 = vmatpush.msra.mxu3 %v1301_v3 }
  0xa6   : > { %1383 = vmatmul.f32.gmra.mxu0 %v5595_v8 }
  0xa7   : > { %1496 = vmatmul.f32.gmra.mxu1 %v5535_v13 }
  0xab   : > { %1564 = vmatmul.f32.vlgmr.msrb.gmra.mxu2 %v441_v17  ;;  %v5603_v25 = vpop.f32.mrf.mxu0  ;;  %v635_v17 = vld [vmem:[#allocation2 + $0x32] sm:$0xff] }
  0xac   : > { %1677 = vmatmul.f32.vlgmr.msrb.gmra.mxu3 %v5306_v11  ;;  %v5611_v32 = vpop.f32.mrf.mxu1 }
  0xae   : > { %v1387_v40 = vpop.f32.mrf.mxu2  ;;  %1790 = vmatmul.f32.vlgmr.msrb.gmra.mxu0 %v5184_v26 }
  0xaf   : > { %v1500_v44 = vpop.f32.mrf.mxu3  ;;  %1903 = vmatmul.f32.vlgmr.msrb.gmra.mxu1 %v633_v36 }
  0xb0   : > { %v5614_v11 = vadd.f32 %v1500_v44, %v1387_v40  ;;  %v1318_v40 = vld [vmem:[%s8024_s1 + $0x460] sm:$0xff] }
  0xb1   : > { %2229 = vmatpush.msra.mxu0 %v1318_v40 }
  0xb3   : > { %1567 = vmatmul.f32.gmra.mxu2 %v442_v45  ;;  %v5617_v46 = vpop.f32.mrf.mxu0  ;;  %v636_v45 = vld [vmem:[#allocation2 + $0x3a] sm:$0xff] }
  0xb4   : > { %1680 = vmatmul.f32.gmra.mxu3 %v5321_v22  ;;  %v5622_v56 = vpop.f32.mrf.mxu1 }
  0xb6   : > { %v1390_v58 = vpop.f32.mrf.mxu2  ;;  %1793 = vmatmul.f32.gmra.mxu0 %v5217_v39 }
  0xb7   : > { %v1503_v59 = vpop.f32.mrf.mxu3  ;;  %1906 = vmatmul.f32.gmra.mxu1 %v634_v57 }
  0xb8   : > { %v5625_v0 = vadd.f32 %v1503_v59, %v1390_v58  ;;  %v281_v59 = vld [vmem:[#allocation2 + $0x6f] sm:$0x1] }
  0xb9   : > { %299 = vst [vmem:[#allocation2 + $0x71] sm:$0x1] %v281_v59  ;;  %v638_v59 = vld [vmem:[#allocation2 + $0x52] sm:$0xff] }
  0xbb   : > { %1570 = vmatmul.f32.gmra.mxu2 %v633_v36  ;;  %v5628_v22 = vpop.f32.mrf.mxu0 }
  0xbc   : > { %1683 = vmatmul.f32.gmra.mxu3 %v5343_v33  ;;  %v5636_v16 = vpop.f32.mrf.mxu1 }
  0xbe   : > { %v1393_v27 = vpop.f32.mrf.mxu2  ;;  %1796 = vmatmul.f32.gmra.mxu0 %v5155_v18  ;;  %v5809_v18 = vld [vmem:[#allocation2 + $0xda] sm:$0xff] }
  0xbf   : > { %v1506_v28 = vpop.f32.mrf.mxu3  ;;  %1909 = vmatmul.f32.gmra.mxu1 %v635_v17 }
  0xc0   : > { %v5639_v33 = vadd.f32 %v1506_v28, %v1393_v27  ;;  %v637_v27 = vld [vmem:[#allocation2 + $0x4a] sm:$0xff] }
  0xc3   : > { %1573 = vmatmul.f32.gmra.mxu2 %v634_v57  ;;  %v5642_v36 = vpop.f32.mrf.mxu0  ;;  %v1285_v57 = vld [vmem:[%s8024_s1 + $0x358] sm:$0xff] }
  0xc4   : > { %1686 = vmatmul.f32.gmra.mxu3 %v5365_v42  ;;  %v5647_v44 = vpop.f32.mrf.mxu1  ;;  %2004 = vmatpush.msra.mxu2 %v1285_v57 }
  0xc6   : > { %v1396_v55 = vpop.f32.mrf.mxu2  ;;  %1799 = vmatmul.f32.gmra.mxu0 %v5162_v20 }
  0xc7   : > { %v1509_v58 = vpop.f32.mrf.mxu3  ;;  %1912 = vmatmul.f32.gmra.mxu1 %v636_v45 }
  0xc8   : > { %v5650_v63 = vadd.f32 %v1509_v58, %v1396_v55  ;;  %v1317_v55 = vld [vmem:[%s8024_s1 + $0x458] sm:$0xff] }
  0xc9   : > { %2230 = vmatpush.msra.mxu0 %v1317_v55  ;;  %v1300_v55 = vld [vmem:[%s8024_s1 + $0x3d0] sm:$0xff] }
  0xca   : > { %2118 = vmatpush.msra.mxu3 %v1300_v55 }
  0xcb   : > { %1576 = vmatmul.f32.gmra.mxu2 %v635_v17  ;;  %v5653_v42 = vpop.f32.mrf.mxu0 }
  0xcc   : > { %1689 = vmatmul.f32.gmra.mxu3 %v5387_v52  ;;  %v5661_v12 = vpop.f32.mrf.mxu1 }
  0xce   : > { %v1399_v28 = vpop.f32.mrf.mxu2  ;;  %1802 = vmatmul.f32.gmra.mxu0 %v5286_v4  ;;  %v1279_v4 = vld [vmem:[%s8024_s1 + $0x328] sm:$0xff] }
  0xcf   : > { %v1512_v40 = vpop.f32.mrf.mxu3  ;;  %1915 = vmatmul.f32.gmra.mxu1 %v637_v27 }
  0xd0   : > { %v5664_v52 = vadd.f32 %v1512_v40, %v1399_v28  ;;  %v282_v28 = vld [vmem:[#allocation2 + $0x87] sm:$0x1] }
  0xd1   : > { %300 = vst [vmem:[#allocation2 + $0x89] sm:$0x1] %v282_v28  ;;  %v1316_v28 = vld [vmem:[%s8024_s1 + $0x450] sm:$0xff] }
  0xd2   : > { %2231 = vmatpush.msra.mxu0 %v1316_v28  ;;  %v1299_v28 = vld [vmem:[%s8024_s1 + $0x3c8] sm:$0xff] }
  0xd3   : > { %1579 = vmatmul.f32.gmra.mxu2 %v636_v45  ;;  %v5667_v17 = vpop.f32.mrf.mxu0  ;;  %v1284_v45 = vld [vmem:[%s8024_s1 + $0x350] sm:$0xff]  ;;  %2119 = vmatpush.msra.mxu3 %v1299_v28 }
  0xd4   : > { %1692 = vmatmul.f32.gmra.mxu3 %v5409_v60  ;;  %v5672_v58 = vpop.f32.mrf.mxu1  ;;  %2005 = vmatpush.msra.mxu2 %v1284_v45  ;;  %v640_v45 = vld [vmem:[#allocation2 + $0x6a] sm:$0xff] }
  0xd6   : > { %v1402_v57 = vpop.f32.mrf.mxu2  ;;  %1805 = vmatmul.f32.gmra.mxu0 %v5334_v29 }
  0xd7   : > { %v1515_v3 = vpop.f32.mrf.mxu3  ;;  %1918 = vmatmul.f32.gmra.mxu1 %v638_v59 }
  0xd8   : > { %v5675_v40 = vadd.f32 %v1515_v3, %v1402_v57 }
  0xdb   : > { %1582 = vmatmul.f32.gmra.mxu2 %v637_v27  ;;  %v5678_v60 = vpop.f32.mrf.mxu0 }
  0xdc   : > { %1695 = vmatmul.f32.gmra.mxu3 %v5431_v5  ;;  %v5686_v43 = vpop.f32.mrf.mxu1 }
  0xde   : > { %v1405_v57 = vpop.f32.mrf.mxu2  ;;  %1808 = vmatmul.f32.gmra.mxu0 %v5337_v31 }
  0xdf   : > { %v1518_v3 = vpop.f32.mrf.mxu3  ;;  %1921 = vmatmul.f32.gmra.mxu1 %v639_v7 }
  0xe0   : > { %v5689_v5 = vadd.f32 %v1518_v3, %v1405_v57  ;;  %v283_v57 = vld [vmem:[#allocation2 + $0x9f] sm:$0x1] }
  0xe1   : > { %301 = vst [vmem:[#allocation2 + $0xa1] sm:$0x1] %v283_v57  ;;  %v1315_v57 = vld [vmem:[%s8024_s1 + $0x448] sm:$0xff] }
  0xe2   : > { %2232 = vmatpush.msra.mxu0 %v1315_v57  ;;  %v1298_v57 = vld [vmem:[%s8024_s1 + $0x3c0] sm:$0xff] }
  0xe3   : > { %1585 = vmatmul.f32.gmra.mxu2 %v638_v59  ;;  %v5692_v27 = vpop.f32.mrf.mxu0  ;;  %v1283_v59 = vld [vmem:[%s8024_s1 + $0x348] sm:$0xff]  ;;  %2120 = vmatpush.msra.mxu3 %v1298_v57 }
  0xe4   : > { %1698 = vmatmul.f32.gmra.mxu3 %v5454_v21  ;;  %v5697_v6 = vpop.f32.mrf.mxu1  ;;  %2006 = vmatpush.msra.mxu2 %v1283_v59  ;;  %v642_v59 = vld [vmem:[#allocation2 + $0x82] sm:$0xff] }
  0xe6   : > { %v1408_v55 = vpop.f32.mrf.mxu2  ;;  %1811 = vmatmul.f32.gmra.mxu0 %v5378_v47  ;;  %v1312_v47 = vld [vmem:[%s8024_s1 + $0x430] sm:$0xff] }
  0xe7   : > { %v1521_v54 = vpop.f32.mrf.mxu3  ;;  %1924 = vmatmul.f32.gmra.mxu1 %v640_v45 }
  0xe8   : > { %v5700_v3 = vadd.f32 %v1521_v54, %v1408_v55 }
  0xeb   : > { %1588 = vmatmul.f32.gmra.mxu2 %v639_v7  ;;  %v5703_v21 = vpop.f32.mrf.mxu0 }
  0xec   : > { %1701 = vmatmul.f32.gmra.mxu3 %v5482_v41  ;;  %v5711_v53 = vpop.f32.mrf.mxu1 }
  0xee   : > { %v1411_v54 = vpop.f32.mrf.mxu2  ;;  %1814 = vmatmul.f32.gmra.mxu0 %v5381_v48 }
  0xef   : > { %v1524_v55 = vpop.f32.mrf.mxu3  ;;  %1927 = vmatmul.f32.gmra.mxu1 %v641_v35 }
  0xf0   : > { %v5714_v7 = vadd.f32 %v1524_v55, %v1411_v54  ;;  %v284_v54 = vld [vmem:[#allocation2 + $0xb7] sm:$0x1] }
  0xf1   : > { %302 = vst [vmem:[#allocation2 + $0xb9] sm:$0x1] %v284_v54  ;;  %v1314_v54 = vld [vmem:[%s8024_s1 + $0x440] sm:$0xff] }
  0xf2   : > { %2233 = vmatpush.msra.mxu0 %v1314_v54  ;;  %v645_v54 = vld [vmem:[#allocation2 + $0xaa] sm:$0xff] }
  0xf3   : > { %1591 = vmatmul.f32.gmra.mxu2 %v640_v45  ;;  %v5717_v41 = vpop.f32.mrf.mxu0  ;;  %v1282_v45 = vld [vmem:[%s8024_s1 + $0x340] sm:$0xff] }
  0xf4   : > { %1704 = vmatmul.f32.gmra.mxu3 %v5513_v61  ;;  %v5722_v34 = vpop.f32.mrf.mxu1  ;;  %2007 = vmatpush.msra.mxu2 %v1282_v45  ;;  %v644_v45 = vld [vmem:[#allocation2 + $0x9a] sm:$0xff] }
  0xf5   : > { %2234 = vmatpush.msra.mxu0 %v1313_v15 }
  0xf6   : > { %v1414_v28 = vpop.f32.mrf.mxu2  ;;  %1817 = vmatmul.f32.gmra.mxu0 %v5422_v1  ;;  %v5794_v1 = vld [vmem:[#allocation2 + $0xc9] sm:$0xff] }
  0xf7   : > { %v1527_v10 = vpop.f32.mrf.mxu3  ;;  %1930 = vmatmul.f32.gmra.mxu1 %v642_v59  ;;  %2235 = vmatpush.msra.mxu0 %v1312_v47 }
  0xf8   : > { %v5725_v55 = vadd.f32 %v1527_v10, %v1414_v28 }
  0xfb   : > { %1594 = vmatmul.f32.gmra.mxu2 %v641_v35  ;;  %v5728_v61 = vpop.f32.mrf.mxu0 }
  0xfc   : > { %1707 = vmatmul.f32.gmra.mxu3 %v5543_v24  ;;  %v5736_v9 = vpop.f32.mrf.mxu1 }
  0xfe   : > { %v1417_v10 = vpop.f32.mrf.mxu2  ;;  %1820 = vmatmul.f32.gmra.mxu0 %v5425_v2 }
  0xff   : > { %v1530_v28 = vpop.f32.mrf.mxu3  ;;  %1933 = vmatmul.f32.gmra.mxu1 %v643_v50 }
 0x100   : > { %v5739_v35 = vadd.f32 %v1530_v28, %v1417_v10  ;;  %v285_v10 = vld [vmem:[#allocation2 + $0xcf] sm:$0x1] }
 0x101   : > { %303 = vst [vmem:[#allocation2 + $0xd1] sm:$0x1] %v285_v10 }
 0x103   : > { %1597 = vmatmul.f32.gmra.mxu2 %v642_v59  ;;  %v5742_v24 = vpop.f32.mrf.mxu0  ;;  %v1281_v59 = vld [vmem:[%s8024_s1 + $0x338] sm:$0xff] }
 0x104   : > { %1710 = vmatmul.f32.gmra.mxu3 %v5570_v51  ;;  %v5747_v49 = vpop.f32.mrf.mxu1  ;;  %2008 = vmatpush.msra.mxu2 %v1281_v59  ;;  %v646_v59 = vld [vmem:[#allocation2 + $0xb2] sm:$0xff] }
 0x106   : > { %v1420_v57 = vpop.f32.mrf.mxu2  ;;  %1823 = vmatmul.f32.gmra.mxu0 %v5473_v37  ;;  %v1280_v37 = vld [vmem:[%s8024_s1 + $0x330] sm:$0xff] }
 0x107   : > { %v1533_v30 = vpop.f32.mrf.mxu3  ;;  %1936 = vmatmul.f32.gmra.mxu1 %v644_v45  ;;  %2009 = vmatpush.msra.mxu2 %v1280_v37 }
 0x108   : > { %v5750_v28 = vadd.f32 %v1533_v30, %v1420_v57  ;;  %v1297_v30 = vld [vmem:[%s8024_s1 + $0x3b8] sm:$0xff]  ;;  %v648_v48 = vld [vmem:[#allocation2 + $0xca] sm:$0xff] }
 0x109   : > { %2121 = vmatpush.msra.mxu3 %v1297_v30  ;;  %2010 = vmatpush.msra.mxu2 %v1279_v4 }
 0x10b   : > { %1600 = vmatmul.f32.gmra.mxu2 %v643_v50  ;;  %v5753_v51 = vpop.f32.mrf.mxu0 }
 0x10c   : > { %1713 = vmatmul.f32.gmra.mxu3 %v5584_v62  ;;  %v5758_v23 = vpop.f32.mrf.mxu1 }
 0x10e   : > { %v1423_v57 = vpop.f32.mrf.mxu2  ;;  %1826 = vmatmul.f32.gmra.mxu0 %v5476_v38  ;;  %v286_v38 = vld [vmem:[#allocation2 + $0xe7] sm:$0x1] }
 0x10f   : > { %v1536_v10 = vpop.f32.mrf.mxu3  ;;  %1939 = vmatmul.f32.gmra.mxu1 %v645_v54  ;;  %304 = vst [vmem:[#allocation2 + $0xe9] sm:$0x1] %v286_v38 }
 0x110   : > { %v5764_v50 = vadd.f32 %v1536_v10, %v1423_v57  ;;  %v5779_v10 = vld [vmem:[#allocation2 + $0xc1] sm:$0xff] }
 0x113   : > { %1603 = vmatmul.f32.gmra.mxu2 %v644_v45  ;;  %v5767_v62 = vpop.f32.mrf.mxu0 }
 0x114   : > { %1716 = vmatmul.f32.gmra.mxu3 %v5595_v8  ;;  %v5769_v19 = vpop.f32.mrf.mxu1  ;;  %v519_v8 = vld [vmem:[#allocation2 + $0xc0] sm:$0xff] }
 0x116   : > { %v1426_v30 = vpop.f32.mrf.mxu2  ;;  %1829 = vmatmul.f32.gmra.mxu0 %v5535_v13  ;;  %v647_v13 = vld [vmem:[#allocation2 + $0xc2] sm:$0xff] }
 0x117   : > { %v1539_v14 = vpop.f32.mrf.mxu3  ;;  %1942 = vmatmul.f32.gmra.mxu1 %v646_v59 }
 0x118   : > { %v5775_v57 = vadd.f32 %v1539_v14, %v1426_v30  ;;  %v1296_v14 = vld [vmem:[%s8024_s1 + $0x3b0] sm:$0xff]  ;;  %v520_v30 = vld [vmem:[#allocation2 + $0xc8] sm:$0xff] }
 0x119   : > { %2122 = vmatpush.msra.mxu3 %v1296_v14  ;;  %v287_v14 = vld [vmem:[#allocation2 + $0xff] sm:$0x1] }
 0x11a   : > { %8109 = vst [vmem:[#allocation34_spill] sm:$0xff] %v5775_v57 }
 0x11b   : > { %1606 = vmatmul.f32.gmra.mxu2 %v645_v54  ;;  %v5777_v45 = vpop.f32.mrf.mxu0  ;;  %305 = vst [vmem:[#allocation2 + $0x101] sm:$0x1] %v287_v14 }
 0x11c   : > { %1719 = vmatmul.f32.gmra.mxu3 %v519_v8  ;;  %v5784_v2 = vpop.f32.mrf.mxu1 }
 0x11e   : > { %v1429_v15 = vpop.f32.mrf.mxu2  ;;  %1832 = vmatmul.f32.gmra.mxu0 %v5779_v10 }
 0x11f   : > { %v1542_v38 = vpop.f32.mrf.mxu3  ;;  %1945 = vmatmul.f32.gmra.mxu1 %v647_v13 }
 0x120   : > { %v5790_v54 = vadd.f32 %v1542_v38, %v1429_v15 }
 0x122   : > { %8110 = vst [vmem:[#allocation35_spill] sm:$0xff] %v5790_v54  ;;  %v1456_v54 = vadd.f32 %v5622_v56, %v5617_v46  ;;  %v1278_v56 = vld [vmem:[%s8024_s1 + $0x320] sm:$0xff] }
 0x123   : > { %1609 = vmatmul.f32.gmra.mxu2 %v646_v59  ;;  %v5792_v8 = vpop.f32.mrf.mxu0  ;;  %v521_v59 = vld [vmem:[#allocation2 + $0xd8] sm:$0xff] }
 0x124   : > { %1722 = vmatmul.f32.gmra.mxu3 %v520_v30  ;;  %v5796_v37 = vpop.f32.mrf.mxu1  ;;  %v5804_v30 = vld [vmem:[#allocation2 + $0xd9] sm:$0xff]  ;;  %2011 = vmatpush.msra.mxu2 %v1278_v56 }
 0x126   : > { %v1432_v31 = vpop.f32.mrf.mxu2  ;;  %1835 = vmatmul.f32.gmra.mxu0 %v5794_v1 }
 0x127   : > { %v1545_v29 = vpop.f32.mrf.mxu3  ;;  %1948 = vmatmul.f32.gmra.mxu1 %v648_v48 }
 0x128   : > { %v5802_v15 = vadd.f32 %v1545_v29, %v1432_v31  ;;  %v1453_v29 = vadd.f32 %v5611_v32, %v5603_v25  ;;  %v1295_v31 = vld [vmem:[%s8024_s1 + $0x3a8] sm:$0xff] }
 0x129   : > { %2123 = vmatpush.msra.mxu3 %v1295_v31  ;;  %v5820_v32 = vld [vmem:[#allocation2 + $0xe2] sm:$0xff] }
 0x12a   : > { %8111 = vst [vmem:[#allocation36_spill] sm:$0xff] %v5802_v15  ;;  %v5818_v15 = vld [vmem:[#allocation2 + $0xe1] sm:$0xff] }
 0x12b   : > { %1612 = vmatmul.f32.gmra.mxu2 %v647_v13  ;;  %v1791_v38 = vpop.f32.mrf.mxu0 }
 0x12c   : > { %1725 = vmatmul.f32.gmra.mxu3 %v521_v59  ;;  %v1904_v20 = vpop.f32.mrf.mxu1  ;;  %v522_v59 = vld [vmem:[#allocation2 + $0xe0] sm:$0xff] }
 0x12e   : > { %v1565_v47 = vpop.f32.mrf.mxu2  ;;  %1838 = vmatmul.f32.gmra.mxu0 %v5804_v30 }
 0x12f   : > { %v1678_v13 = vpop.f32.mrf.mxu3  ;;  %v1566_v14 = vadd.f32 %v1565_v47, %v1453_v29  ;;  %1951 = vmatmul.f32.gmra.mxu1 %v5809_v18  ;;  %v1311_v29 = vld [vmem:[%s8024_s1 + $0x428] sm:$0xff] }
 0x130   : > { %2236 = vmatpush.msra.mxu0 %v1311_v29 }
 0x131   : > { %v1679_v39 = vadd.f32 %v1678_v13, %v1566_v14  ;;  %v5840_v14 = vld [vmem:[#allocation2 + $0xf2] sm:$0xff] }
 0x133   : > { %v1792_v26 = vadd.f32 %v1791_v38, %v1679_v39  ;;  %1615 = vmatmul.f32.gmra.mxu2 %v648_v48  ;;  %v1794_v4 = vpop.f32.mrf.mxu0  ;;  %v288_v39 = vld [vmem:[#allocation2 + $0x117] sm:$0x1] }
 0x134   : > { %1728 = vmatmul.f32.gmra.mxu3 %v522_v59  ;;  %v1907_v25 = vpop.f32.mrf.mxu1  ;;  %306 = vst [vmem:[#allocation2 + $0x119] sm:$0x1] %v288_v39  ;;  %v5831_v38 = vld [vmem:[#allocation2 + $0xf0] sm:$0xff]  ;;  %v1459_v59 = vadd.f32 %v5636_v16, %v5628_v22  ;;  %v5855_v16 = vld [vmem:[#allocation2 + $0xf9] sm:$0xff] }
 0x135   : > { %v5824_v57 = vadd.f32 %v1904_v20, %v1792_v26  ;;  %v5835_v26 = vld [vmem:[#allocation2 + $0xf1] sm:$0xff] }
 0x136   : > { %v1568_v31 = vpop.f32.mrf.mxu2  ;;  %1841 = vmatmul.f32.gmra.mxu0 %v5818_v15 }
 0x137   : > { %v1681_v47 = vpop.f32.mrf.mxu3  ;;  %v1569_v48 = vadd.f32 %v1568_v31, %v1456_v54  ;;  %1954 = vmatmul.f32.gmra.mxu1 %v5820_v32 }
 0x139   : > { %v1682_v13 = vadd.f32 %v1681_v47, %v1569_v48  ;;  %v5851_v48 = vld [vmem:[#allocation2 + $0xf8] sm:$0xff] }
 0x13a   : > { %8113 = vst [vmem:[#allocation38_spill] sm:$0xff] %v5851_v48 }
 0x13b   : > { %v1795_v46 = vadd.f32 %v1794_v4, %v1682_v13  ;;  %1618 = vmatmul.f32.gmra.mxu2 %v5809_v18  ;;  %v1797_v20 = vpop.f32.mrf.mxu0  ;;  %v1294_v4 = vld [vmem:[%s8024_s1 + $0x3a0] sm:$0xff] }
 0x13c   : > { %1731 = vmatmul.f32.gmra.mxu3 %v5831_v38  ;;  %v1910_v54 = vpop.f32.mrf.mxu1 }
 0x13d   : > { %v5844_v29 = vadd.f32 %v1907_v25, %v1795_v46  ;;  %2124 = vmatpush.msra.mxu3 %v1294_v4  ;;  %v5857_v46 = vld [vmem:[#allocation2 + $0xfa] sm:$0xff]  ;;  %v1462_v4 = vadd.f32 %v5647_v44, %v5642_v36 }
 0x13e   : > { %v1571_v31 = vpop.f32.mrf.mxu2  ;;  %1844 = vmatmul.f32.gmra.mxu0 %v5835_v26 }
 0x13f   : > { %8112 = vst [vmem:[#allocation37_spill] sm:$0xff] %v5844_v29  ;;  %v1684_v47 = vpop.f32.mrf.mxu3  ;;  %v1572_v39 = vadd.f32 %v1571_v31, %v1459_v59  ;;  %1957 = vmatmul.f32.gmra.mxu1 %v5840_v14  ;;  %v1310_v31 = vld [vmem:[%s8024_s1 + $0x420] sm:$0xff]  ;;  %v5868_v29 = vld [vmem:[#allocation2 + $0x108] sm:$0xff] }
 0x140   : > { %2237 = vmatpush.msra.mxu0 %v1310_v31  ;;  %8115 = vst [vmem:[#allocation40_spill] sm:$0xff] %v5868_v29  ;;  %v1465_v31 = vadd.f32 %v5661_v12, %v5653_v42  ;;  %v5892_v12 = vld [vmem:[#allocation2 + $0x111] sm:$0xff] }
 0x141   : > { %v1685_v13 = vadd.f32 %v1684_v47, %v1572_v39  ;;  %v289_v39 = vld [vmem:[#allocation2 + $0x12f] sm:$0x1]  ;;  %8117 = vst [vmem:[#allocation42_spill] sm:$0xff] %v5892_v12 }
 0x142   : > { %307 = vst [vmem:[#allocation2 + $0x131] sm:$0x1] %v289_v39 }
 0x143   : > { %v1798_v56 = vadd.f32 %v1797_v20, %v1685_v13  ;;  %1621 = vmatmul.f32.gmra.mxu2 %v5820_v32  ;;  %v1800_v22 = vpop.f32.mrf.mxu0 }
 0x144   : > { %1734 = vmatmul.f32.gmra.mxu3 %v5851_v48  ;;  %v1913_v25 = vpop.f32.mrf.mxu1 }
 0x145   : > { %v5861_v59 = vadd.f32 %v1910_v54, %v1798_v56  ;;  %v5872_v54 = vld [vmem:[#allocation2 + $0x109] sm:$0xff]  ;;  %v1277_v56 = vld [vmem:[%s8024_s1 + $0x318] sm:$0xff] }
 0x146   : > { %v1574_v20 = vpop.f32.mrf.mxu2  ;;  %1847 = vmatmul.f32.gmra.mxu0 %v5855_v16  ;;  %2012 = vmatpush.msra.mxu2 %v1277_v56 }
 0x147   : > { %8114 = vst [vmem:[#allocation39_spill] sm:$0xff] %v5861_v59  ;;  %v1687_v47 = vpop.f32.mrf.mxu3  ;;  %v1575_v13 = vadd.f32 %v1574_v20, %v1462_v4  ;;  %1960 = vmatmul.f32.gmra.mxu1 %v5857_v46  ;;  %v5877_v20 = vld [vmem:[#allocation2 + $0x10a] sm:$0xff] }
 0x148   : > { %v5888_v59 = vld [vmem:[#allocation2 + $0x110] sm:$0xff] }
 0x149   : > { %v1688_v48 = vadd.f32 %v1687_v47, %v1575_v13 }
 0x14b   : > { %v1801_v36 = vadd.f32 %v1800_v22, %v1688_v48  ;;  %1624 = vmatmul.f32.gmra.mxu2 %v5840_v14  ;;  %v1803_v44 = vpop.f32.mrf.mxu0  ;;  %v1293_v48 = vld [vmem:[%s8024_s1 + $0x398] sm:$0xff] }
 0x14c   : > { %1737 = vmatmul.f32.gmra.mxu3 %v5868_v29  ;;  %v1916_v4 = vpop.f32.mrf.mxu1 }
 0x14d   : > { %v5881_v47 = vadd.f32 %v1913_v25, %v1801_v36  ;;  %2125 = vmatpush.msra.mxu3 %v1293_v48  ;;  %v5894_v25 = vld [vmem:[#allocation2 + $0x112] sm:$0xff]  ;;  %v1468_v36 = vadd.f32 %v5672_v58, %v5667_v17 }
 0x14e   : > { %v1577_v22 = vpop.f32.mrf.mxu2  ;;  %1850 = vmatmul.f32.gmra.mxu0 %v5872_v54 }
 0x14f   : > { %8116 = vst [vmem:[#allocation41_spill] sm:$0xff] %v5881_v47  ;;  %v1690_v39 = vpop.f32.mrf.mxu3  ;;  %v1578_v13 = vadd.f32 %v1577_v22, %v1465_v31  ;;  %1963 = vmatmul.f32.gmra.mxu1 %v5877_v20  ;;  %v1309_v22 = vld [vmem:[%s8024_s1 + $0x418] sm:$0xff]  ;;  %v5905_v47 = vld [vmem:[#allocation2 + $0x120] sm:$0xff] }
 0x150   : > { %2238 = vmatpush.msra.mxu0 %v1309_v22  ;;  %8119 = vst [vmem:[#allocation44_spill] sm:$0xff] %v5905_v47  ;;  %v1471_v22 = vadd.f32 %v5686_v43, %v5678_v60  ;;  %v5929_v60 = vld [vmem:[#allocation2 + $0x129] sm:$0xff] }
 0x151   : > { %v1691_v56 = vadd.f32 %v1690_v39, %v1578_v13  ;;  %v290_v13 = vld [vmem:[#allocation2 + $0x147] sm:$0x1] }
 0x152   : > { %308 = vst [vmem:[#allocation2 + $0x149] sm:$0x1] %v290_v13 }
 0x153   : > { %v1804_v29 = vadd.f32 %v1803_v44, %v1691_v56  ;;  %1627 = vmatmul.f32.gmra.mxu2 %v5857_v46  ;;  %v1806_v42 = vpop.f32.mrf.mxu0 }
 0x154   : > { %1740 = vmatmul.f32.gmra.mxu3 %v5888_v59  ;;  %v1919_v31 = vpop.f32.mrf.mxu1 }
 0x155   : > { %v5898_v48 = vadd.f32 %v1916_v4, %v1804_v29  ;;  %v5909_v4 = vld [vmem:[#allocation2 + $0x121] sm:$0xff] }
 0x156   : > { %v1580_v44 = vpop.f32.mrf.mxu2  ;;  %1853 = vmatmul.f32.gmra.mxu0 %v5892_v12 }
 0x157   : > { %8118 = vst [vmem:[#allocation43_spill] sm:$0xff] %v5898_v48  ;;  %v1693_v39 = vpop.f32.mrf.mxu3  ;;  %v1581_v56 = vadd.f32 %v1580_v44, %v1468_v36  ;;  %1966 = vmatmul.f32.gmra.mxu1 %v5894_v25  ;;  %v1276_v48 = vld [vmem:[%s8024_s1 + $0x310] sm:$0xff]  ;;  %v5914_v36 = vld [vmem:[#allocation2 + $0x122] sm:$0xff] }
 0x158   : > { %2013 = vmatpush.msra.mxu2 %v1276_v48 }
 0x159   : > { %v1694_v17 = vadd.f32 %v1693_v39, %v1581_v56 }
 0x15b   : > { %v1807_v58 = vadd.f32 %v1806_v42, %v1694_v17  ;;  %1630 = vmatmul.f32.gmra.mxu2 %v5877_v20  ;;  %v1809_v29 = vpop.f32.mrf.mxu0  ;;  %v1292_v42 = vld [vmem:[%s8024_s1 + $0x390] sm:$0xff] }
 0x15c   : > { %1743 = vmatmul.f32.gmra.mxu3 %v5905_v47  ;;  %v1922_v17 = vpop.f32.mrf.mxu1  ;;  %v5925_v47 = vld [vmem:[#allocation2 + $0x128] sm:$0xff] }
 0x15d   : > { %v5918_v44 = vadd.f32 %v1919_v31, %v1807_v58  ;;  %2126 = vmatpush.msra.mxu3 %v1292_v42  ;;  %v5931_v31 = vld [vmem:[#allocation2 + $0x12a] sm:$0xff]  ;;  %v1474_v58 = vadd.f32 %v5697_v6, %v5692_v27 }
 0x15e   : > { %v1583_v39 = vpop.f32.mrf.mxu2  ;;  %1856 = vmatmul.f32.gmra.mxu0 %v5909_v4  ;;  %v1308_v42 = vld [vmem:[%s8024_s1 + $0x410] sm:$0xff] }
 0x15f   : > { %8120 = vst [vmem:[#allocation45_spill] sm:$0xff] %v5918_v44  ;;  %v1696_v13 = vpop.f32.mrf.mxu3  ;;  %v1584_v56 = vadd.f32 %v1583_v39, %v1471_v22  ;;  %1969 = vmatmul.f32.gmra.mxu1 %v5914_v36  ;;  %2239 = vmatpush.msra.mxu0 %v1308_v42  ;;  %v5954_v42 = vld [vmem:[%s5126_s10 + $0xf0] sm:$0xff] }
 0x160   : > { %8123 = vst [vmem:[#allocation48_spill] sm:$0xff] %v5954_v42 }
 0x161   : > { %v1697_v48 = vadd.f32 %v1696_v13, %v1584_v56  ;;  %v291_v13 = vld [vmem:[#allocation2 + $0x15f] sm:$0x1]  ;;  %234 = vst [vmem:[#allocation2 + $0x181] sm:$0xff] %v5954_v42 }
 0x162   : > { %309 = vst [vmem:[#allocation2 + $0x161] sm:$0x1] %v291_v13  ;;  %v1291_v13 = vld [vmem:[%s8024_s1 + $0x388] sm:$0xff] }
 0x163   : > { %v1810_v12 = vadd.f32 %v1809_v29, %v1697_v48  ;;  %1633 = vmatmul.f32.gmra.mxu2 %v5894_v25  ;;  %v1812_v43 = vpop.f32.mrf.mxu0  ;;  %v5942_v48 = vld [vmem:[#allocation2 + $0x138] sm:$0xff]  ;;  %2127 = vmatpush.msra.mxu3 %v1291_v13  ;;  %v1307_v13 = vld [vmem:[%s8024_s1 + $0x408] sm:$0xff] }
 0x164   : > { %1746 = vmatmul.f32.gmra.mxu3 %v5925_v47  ;;  %8122 = vst [vmem:[#allocation47_spill] sm:$0xff] %v5942_v48  ;;  %v1925_v27 = vpop.f32.mrf.mxu1  ;;  %2240 = vmatpush.msra.mxu0 %v1307_v13  ;;  %v5997_v13 = vld [vmem:[%s5126_s10 + $0xf8] sm:$0xff] }
 0x165   : > { %v5935_v22 = vadd.f32 %v1922_v17, %v1810_v12  ;;  %8130 = vst [vmem:[#allocation55_spill] sm:$0xff] %v5997_v13 }
 0x166   : > { %v1586_v39 = vpop.f32.mrf.mxu2  ;;  %1859 = vmatmul.f32.gmra.mxu0 %v5929_v60  ;;  %235 = vst [vmem:[#allocation2 + $0x189] sm:$0xff] %v5997_v13 }
 0x167   : > { %8121 = vst [vmem:[#allocation46_spill] sm:$0xff] %v5935_v22  ;;  %v1699_v29 = vpop.f32.mrf.mxu3  ;;  %v1587_v56 = vadd.f32 %v1586_v39, %v1474_v58  ;;  %1972 = vmatmul.f32.gmra.mxu1 %v5931_v31  ;;  %v5946_v22 = vld [vmem:[#allocation2 + $0x139] sm:$0xff]  ;;  %v1275_v58 = vld [vmem:[%s8024_s1 + $0x308] sm:$0xff] }
 0x168   : > { %v5951_v39 = vld [vmem:[#allocation2 + $0x13a] sm:$0xff]  ;;  %2014 = vmatpush.msra.mxu2 %v1275_v58 }
 0x169   : > { %v1700_v6 = vadd.f32 %v1699_v29, %v1587_v56  ;;  %v1477_v29 = vadd.f32 %v5711_v53, %v5703_v21  ;;  %v5966_v58 = vld [vmem:[#allocation2 + $0x140] sm:$0xff] }
 0x16b   : > { %v1813_v12 = vadd.f32 %v1812_v43, %v1700_v6  ;;  %1636 = vmatmul.f32.gmra.mxu2 %v5914_v36  ;;  %v1815_v17 = vpop.f32.mrf.mxu0 }
 0x16c   : > { %1749 = vmatmul.f32.gmra.mxu3 %v5942_v48 }
 0x16d   : > { %v5958_v43 = vadd.f32 %v1925_v27, %v1813_v12  ;;  %v5972_v27 = vld [vmem:[#allocation2 + $0x141] sm:$0xff] }
 0x16e   : > { %v1589_v56 = vpop.f32.mrf.mxu2  ;;  %1862 = vmatmul.f32.gmra.mxu0 %v5946_v22  ;;  %8126 = vst [vmem:[#allocation51_spill] sm:$0xff] %v5972_v27  ;;  %v5974_v12 = vld [vmem:[#allocation2 + $0x142] sm:$0xff] }
 0x16f   : > { %8124 = vst [vmem:[#allocation49_spill] sm:$0xff] %v5958_v43  ;;  %v1702_v6 = vpop.f32.mrf.mxu3  ;;  %v1590_v48 = vadd.f32 %v1589_v56, %v1477_v29  ;;  %1975 = vmatmul.f32.gmra.mxu1 %v5951_v39  ;;  %v257_v43 = vld [vmem:[#allocation2 + $0x182] sm:$0x1]  ;;  %v1480_v29 = vadd.f32 %v5722_v34, %v5717_v41 }
 0x170   : > { %275 = vst [vmem:[#allocation2 + $0x180] sm:$0x1] %v257_v43  ;;  %v5989_v43 = vld [vmem:[#allocation2 + $0x151] sm:$0xff] }
 0x171   : > { %v1703_v44 = vadd.f32 %v1702_v6, %v1590_v48  ;;  %v5983_v6 = vld [vmem:[#allocation2 + $0x150] sm:$0xff]  ;;  %8129 = vst [vmem:[#allocation54_spill] sm:$0xff] %v5989_v43 }
 0x172   : > { %8127 = vst [vmem:[#allocation52_spill] sm:$0xff] %v5983_v6 }
 0x173   : > { %v5968_v53 = vadd.f32 %v1815_v17, %v1703_v44  ;;  %1639 = vmatmul.f32.gmra.mxu2 %v5931_v31  ;;  %v1818_v21 = vpop.f32.mrf.mxu0  ;;  %v292_v17 = vld [vmem:[#allocation2 + $0x177] sm:$0x1] }
 0x174   : > { %1752 = vmatmul.f32.gmra.mxu3 %v5966_v58  ;;  %310 = vst [vmem:[#allocation2 + $0x179] sm:$0x1] %v292_v17 }
 0x175   : > { %8125 = vst [vmem:[#allocation50_spill] sm:$0xff] %v5968_v53 }
 0x176   : > { %v1592_v44 = vpop.f32.mrf.mxu2  ;;  %1865 = vmatmul.f32.gmra.mxu0 %v5972_v27  ;;  %v6015_v27 = vld [vmem:[#allocation2 + $0x15a] sm:$0xff] }
 0x177   : > { %v1705_v48 = vpop.f32.mrf.mxu3  ;;  %v1593_v56 = vadd.f32 %v1592_v44, %v1480_v29  ;;  %1978 = vmatmul.f32.gmra.mxu1 %v5974_v12  ;;  %v1274_v29 = vld [vmem:[%s8024_s1 + $0x300] sm:$0xff]  ;;  %v5994_v44 = vld [vmem:[#allocation2 + $0x152] sm:$0xff] }
 0x178   : > { %2015 = vmatpush.msra.mxu2 %v1274_v29  ;;  %v6007_v29 = vld [vmem:[#allocation2 + $0x158] sm:$0xff] }
 0x179   : > { %v1706_v53 = vadd.f32 %v1705_v48, %v1593_v56  ;;  %8131 = vst [vmem:[#allocation56_spill] sm:$0xff] %v6007_v29 }
 0x17b   : > { %v5985_v34 = vadd.f32 %v1818_v21, %v1706_v53  ;;  %1642 = vmatmul.f32.gmra.mxu2 %v5951_v39  ;;  %v1821_v41 = vpop.f32.mrf.mxu0  ;;  %v1483_v53 = vadd.f32 %v5736_v9, %v5728_v61  ;;  %v1290_v21 = vld [vmem:[%s8024_s1 + $0x380] sm:$0xff] }
 0x17c   : > { %1755 = vmatmul.f32.gmra.mxu3 %v5983_v6  ;;  %v6013_v61 = vld [vmem:[#allocation2 + $0x159] sm:$0xff] }
 0x17d   : > { %8128 = vst [vmem:[#allocation53_spill] sm:$0xff] %v5985_v34  ;;  %2128 = vmatpush.msra.mxu3 %v1290_v21  ;;  %v1486_v21 = vadd.f32 %v5747_v49, %v5742_v24  ;;  %v6030_v24 = vld [vmem:[#allocation2 + $0x169] sm:$0xff] }
 0x17e   : > { %v1595_v48 = vpop.f32.mrf.mxu2  ;;  %1868 = vmatmul.f32.gmra.mxu0 %v5989_v43  ;;  %8134 = vst [vmem:[#allocation59_spill] sm:$0xff] %v6030_v24  ;;  %v6032_v43 = vld [vmem:[#allocation2 + $0x16a] sm:$0xff] }
 0x17f   : > { %v1708_v17 = vpop.f32.mrf.mxu3  ;;  %v1596_v56 = vadd.f32 %v1595_v48, %v1483_v53  ;;  %1981 = vmatmul.f32.gmra.mxu1 %v5994_v44  ;;  %v1306_v53 = vld [vmem:[%s8024_s1 + $0x400] sm:$0xff] }
 0x180   : > { %2241 = vmatpush.msra.mxu0 %v1306_v53 }
 0x181   : > { %v1709_v34 = vadd.f32 %v1708_v17, %v1596_v56  ;;  %v6024_v56 = vld [vmem:[#allocation2 + $0x168] sm:$0xff] }
 0x183   : > { %v6009_v6 = vadd.f32 %v1821_v41, %v1709_v34  ;;  %1645 = vmatmul.f32.gmra.mxu2 %v5974_v12  ;;  %v1824_v9 = vpop.f32.mrf.mxu0  ;;  %v293_v34 = vld [vmem:[#allocation2 + $0x18f] sm:$0x1] }
 0x184   : > { %1758 = vmatmul.f32.gmra.mxu3 %v6007_v29  ;;  %311 = vst [vmem:[#allocation2 + $0x191] sm:$0x1] %v293_v34 }
 0x185   : > { %8132 = vst [vmem:[#allocation57_spill] sm:$0xff] %v6009_v6 }
 0x186   : > { %v1598_v48 = vpop.f32.mrf.mxu2  ;;  %1871 = vmatmul.f32.gmra.mxu0 %v6013_v61 }
 0x187   : > { %v1711_v17 = vpop.f32.mrf.mxu3  ;;  %v1599_v41 = vadd.f32 %v1598_v48, %v1486_v21  ;;  %1984 = vmatmul.f32.gmra.mxu1 %v6015_v27  ;;  %v1489_v21 = vadd.f32 %v5758_v23, %v5753_v51  ;;  %v6046_v23 = vld [vmem:[#allocation2 + $0x172] sm:$0xff]  ;;  %v1492_v51 = vadd.f32 %v5769_v19, %v5767_v62  ;;  %v1495_v19 = vadd.f32 %v5784_v2, %v5777_v45 }
 0x188   : > { %v1498_v2 = vadd.f32 %v5796_v37, %v5792_v8  ;;  %v699_v37 = vld [vmem:[#allocation2 + $0x38] sm:$0xff] }
 0x189   : > { %v1712_v6 = vadd.f32 %v1711_v17, %v1599_v41 }
 0x18b   : > { %v6026_v29 = vadd.f32 %v1824_v9, %v1712_v6  ;;  %1648 = vmatmul.f32.gmra.mxu2 %v5994_v44  ;;  %v1827_v49 = vpop.f32.mrf.mxu0  ;;  %v6038_v6 = vld [vmem:[#allocation2 + $0x170] sm:$0xff] }
 0x18c   : > { %1761 = vmatmul.f32.gmra.mxu3 %v6024_v56 }
 0x18d   : > { %8133 = vst [vmem:[#allocation58_spill] sm:$0xff] %v6026_v29  ;;  %v6044_v29 = vld [vmem:[#allocation2 + $0x171] sm:$0xff] }
 0x18e   : > { %v1601_v48 = vpop.f32.mrf.mxu2  ;;  %1874 = vmatmul.f32.gmra.mxu0 %v6030_v24  ;;  %8136 = vst [vmem:[#allocation61_spill] sm:$0xff] %v6044_v29 }
 0x18f   : > { %v1714_v53 = vpop.f32.mrf.mxu3  ;;  %v1602_v34 = vadd.f32 %v1601_v48, %v1489_v21  ;;  %1987 = vmatmul.f32.gmra.mxu1 %v6032_v43 }
 0x191   : > { %v1715_v9 = vadd.f32 %v1714_v53, %v1602_v34 }
 0x193   : > { %v6040_v17 = vadd.f32 %v1827_v49, %v1715_v9  ;;  %1651 = vmatmul.f32.gmra.mxu2 %v6015_v27  ;;  %v1830_v41 = vpop.f32.mrf.mxu0  ;;  %v6052_v49 = vld [vmem:[#allocation2 + $0x180] sm:$0xff] }
 0x194   : > { %1764 = vmatmul.f32.gmra.mxu3 %v6038_v6 }
 0x195   : > { %8135 = vst [vmem:[#allocation60_spill] sm:$0xff] %v6040_v17  ;;  %v6058_v17 = vld [vmem:[#allocation2 + $0x182] sm:$0xff] }
 0x196   : > { %v1604_v21 = vpop.f32.mrf.mxu2  ;;  %1877 = vmatmul.f32.gmra.mxu0 %v6044_v29  ;;  %8138 = vst [vmem:[#allocation63_spill] sm:$0xff] %v6058_v17 }
 0x197   : > { %v1717_v48 = vpop.f32.mrf.mxu3  ;;  %v1605_v24 = vadd.f32 %v1604_v21, %v1492_v51  ;;  %1990 = vmatmul.f32.gmra.mxu1 %v6046_v23 }
 0x199   : > { %v1718_v53 = vadd.f32 %v1717_v48, %v1605_v24  ;;  %v6064_v24 = vld [vmem:[#allocation2 + $0x188] sm:$0xff] }
 0x19a   : > { %8139 = vst [vmem:[#allocation64_spill] sm:$0xff] %v6064_v24 }
 0x19b   : > { %v6054_v34 = vadd.f32 %v1830_v41, %v1718_v53  ;;  %1654 = vmatmul.f32.gmra.mxu2 %v6032_v43  ;;  %v1833_v9 = vpop.f32.mrf.mxu0  ;;  %v6070_v53 = vld [vmem:[#allocation2 + $0x18a] sm:$0xff] }
 0x19c   : > { %1767 = vmatmul.f32.gmra.mxu3 %v6052_v49 }
 0x19d   : > { %8137 = vst [vmem:[#allocation62_spill] sm:$0xff] %v6054_v34 }
 0x19e   : > { %v1607_v62 = vpop.f32.mrf.mxu2  ;;  %1880 = vmatmul.f32.gmra.mxu0 %v5954_v42  ;;  %v763_v42 = vld [vmem:[#allocation2 + $0x39] sm:$0xff] }
 0x19f   : > { %v1720_v29 = vpop.f32.mrf.mxu3  ;;  %v1608_v51 = vadd.f32 %v1607_v62, %v1495_v19  ;;  %1993 = vmatmul.f32.gmra.mxu1 %v6058_v17 }
 0x1a1   : > { %v1721_v41 = vadd.f32 %v1720_v29, %v1608_v51  ;;  %v698_v29 = vld [vmem:[#allocation2 + $0x30] sm:$0xff] }
 0x1a3   : > { %v6066_v21 = vadd.f32 %v1833_v9, %v1721_v41  ;;  %1657 = vmatmul.f32.gmra.mxu2 %v6046_v23  ;;  %v1836_v48 = vpop.f32.mrf.mxu0  ;;  %v762_v9 = vld [vmem:[#allocation2 + $0x31] sm:$0xff] }
 0x1a4   : > { %1770 = vmatmul.f32.gmra.mxu3 %v6064_v24 }
 0x1a5   : > { %8140 = vst [vmem:[#allocation65_spill] sm:$0xff] %v6066_v21  ;;  %v826_v21 = vld [vmem:[#allocation2 + $0x32] sm:$0xff] }
 0x1a6   : > { %v1610_v45 = vpop.f32.mrf.mxu2  ;;  %1883 = vmatmul.f32.gmra.mxu0 %v5997_v13 }
 0x1a7   : > { %v1723_v34 = vpop.f32.mrf.mxu3  ;;  %v1611_v19 = vadd.f32 %v1610_v45, %v1498_v2  ;;  %1996 = vmatmul.f32.gmra.mxu1 %v6070_v53 }
 0x1a9   : > { %v1724_v62 = vadd.f32 %v1723_v34, %v1611_v19  ;;  %v827_v34 = vld [vmem:[#allocation2 + $0x3a] sm:$0xff] }
 0x1ab   : > { %v6076_v51 = vadd.f32 %v1836_v48, %v1724_v62  ;;  %2016 = vmatmul.f32.vlgmr.msra.gmra.mxu2 %v698_v29  ;;  %v1839_v41 = vpop.f32.mrf.mxu0  ;;  %v764_v62 = vld [vmem:[#allocation2 + $0x49] sm:$0xff] }
 0x1ac   : > { %2129 = vmatmul.f32.vlgmr.msra.gmra.mxu3 %v762_v9  ;;  %v700_v9 = vld [vmem:[#allocation2 + $0x48] sm:$0xff] }
 0x1ad   : > { %8141 = vst [vmem:[#allocation66_spill] sm:$0xff] %v6076_v51 }
 0x1ae   : > { %v1613_v24 = vpop.f32.mrf.mxu2  ;;  %2242 = vmatmul.f32.vlgmr.msra.gmra.mxu0 %v826_v21 }
 0x1af   : > { %v1726_v17 = vpop.f32.mrf.mxu3  ;;  %v1614_v8 = vadd.f32 %v1613_v24, %v5614_v11 }
 0x1b1   : > { %v1727_v13 = vadd.f32 %v1726_v17, %v1614_v8  ;;  %v828_v17 = vld [vmem:[#allocation2 + $0x4a] sm:$0xff] }
 0x1b2   : > { %v765_v8 = vld [vmem:[#allocation2 + $0x51] sm:$0xff] }
 0x1b3   : > { %v6079_v2 = vadd.f32 %v1839_v41, %v1727_v13  ;;  %2019 = vmatmul.f32.gmra.mxu2 %v699_v37  ;;  %v1842_v45 = vpop.f32.mrf.mxu0  ;;  %v701_v41 = vld [vmem:[#allocation2 + $0x50] sm:$0xff] }
 0x1b4   : > { %2132 = vmatmul.f32.gmra.mxu3 %v763_v42 }
 0x1b6   : > { %v1616_v48 = vpop.f32.mrf.mxu2  ;;  %2245 = vmatmul.f32.gmra.mxu0 %v827_v34 }
 0x1b7   : > { %v1729_v19 = vpop.f32.mrf.mxu3  ;;  %v1617_v29 = vadd.f32 %v1616_v48, %v5625_v0  ;;  %v829_v48 = vld [vmem:[#allocation2 + $0x52] sm:$0xff] }
 0x1b9   : > { %v1730_v51 = vadd.f32 %v1729_v19, %v1617_v29  ;;  %v702_v29 = vld [vmem:[#allocation2 + $0x60] sm:$0xff] }
 0x1bb   : > { %v6082_v21 = vadd.f32 %v1842_v45, %v1730_v51  ;;  %2022 = vmatmul.f32.gmra.mxu2 %v700_v9  ;;  %v1845_v11 = vpop.f32.mrf.mxu0  ;;  %v766_v9 = vld [vmem:[#allocation2 + $0x61] sm:$0xff] }
 0x1bc   : > { %2135 = vmatmul.f32.gmra.mxu3 %v764_v62 }
 0x1be   : > { %v1619_v13 = vpop.f32.mrf.mxu2  ;;  %2248 = vmatmul.f32.gmra.mxu0 %v828_v17 }
 0x1bf   : > { %v1732_v24 = vpop.f32.mrf.mxu3  ;;  %v1620_v42 = vadd.f32 %v1619_v13, %v5639_v33  ;;  %v830_v13 = vld [vmem:[#allocation2 + $0x62] sm:$0xff] }
 0x1c1   : > { %v1733_v37 = vadd.f32 %v1732_v24, %v1620_v42 }
 0x1c3   : > { %v6085_v34 = vadd.f32 %v1845_v11, %v1733_v37  ;;  %2025 = vmatmul.f32.gmra.mxu2 %v701_v41  ;;  %v1848_v0 = vpop.f32.mrf.mxu0  ;;  %v703_v41 = vld [vmem:[#allocation2 + $0x68] sm:$0xff] }
 0x1c4   : > { %2138 = vmatmul.f32.gmra.mxu3 %v765_v8  ;;  %v767_v8 = vld [vmem:[#allocation2 + $0x69] sm:$0xff] }
 0x1c6   : > { %v1622_v51 = vpop.f32.mrf.mxu2  ;;  %2251 = vmatmul.f32.gmra.mxu0 %v829_v48 }
 0x1c7   : > { %v1735_v45 = vpop.f32.mrf.mxu3  ;;  %v1623_v19 = vadd.f32 %v1622_v51, %v5650_v63  ;;  %v831_v51 = vld [vmem:[#allocation2 + $0x6a] sm:$0xff] }
 0x1c9   : > { %v1736_v62 = vadd.f32 %v1735_v45, %v1623_v19 }
 0x1cb   : > { %v6088_v17 = vadd.f32 %v1848_v0, %v1736_v62  ;;  %2028 = vmatmul.f32.gmra.mxu2 %v702_v29  ;;  %v1851_v33 = vpop.f32.mrf.mxu0  ;;  %v704_v29 = vld [vmem:[#allocation2 + $0x78] sm:$0xff] }
 0x1cc   : > { %2141 = vmatmul.f32.gmra.mxu3 %v766_v9  ;;  %v768_v9 = vld [vmem:[#allocation2 + $0x79] sm:$0xff] }
 0x1ce   : > { %v1625_v11 = vpop.f32.mrf.mxu2  ;;  %2254 = vmatmul.f32.gmra.mxu0 %v830_v13 }
 0x1cf   : > { %v1738_v24 = vpop.f32.mrf.mxu3  ;;  %v1626_v42 = vadd.f32 %v1625_v11, %v5664_v52  ;;  %v832_v11 = vld [vmem:[#allocation2 + $0x7a] sm:$0xff] }
 0x1d1   : > { %v1739_v37 = vadd.f32 %v1738_v24, %v1626_v42 }
 0x1d3   : > { %v6091_v48 = vadd.f32 %v1851_v33, %v1739_v37  ;;  %2031 = vmatmul.f32.gmra.mxu2 %v703_v41  ;;  %v1854_v63 = vpop.f32.mrf.mxu0  ;;  %v705_v41 = vld [vmem:[#allocation2 + $0x80] sm:$0xff] }
 0x1d4   : > { %2144 = vmatmul.f32.gmra.mxu3 %v767_v8  ;;  %v769_v8 = vld [vmem:[#allocation2 + $0x81] sm:$0xff] }
 0x1d5   : > { %8142 = vst [vmem:[#allocation67_spill] sm:$0xff] %v6091_v48 }
 0x1d6   : > { %v1628_v0 = vpop.f32.mrf.mxu2  ;;  %2257 = vmatmul.f32.gmra.mxu0 %v831_v51 }
 0x1d7   : > { %v1741_v45 = vpop.f32.mrf.mxu3  ;;  %v1629_v19 = vadd.f32 %v1628_v0, %v5675_v40  ;;  %v833_v0 = vld [vmem:[#allocation2 + $0x82] sm:$0xff] }
 0x1d9   : > { %v1742_v62 = vadd.f32 %v1741_v45, %v1629_v19 }
 0x1db   : > { %v6094_v13 = vadd.f32 %v1854_v63, %v1742_v62  ;;  %2034 = vmatmul.f32.gmra.mxu2 %v704_v29  ;;  %v1857_v52 = vpop.f32.mrf.mxu0  ;;  %v706_v29 = vld [vmem:[#allocation2 + $0x90] sm:$0xff] }
 0x1dc   : > { %2147 = vmatmul.f32.gmra.mxu3 %v768_v9  ;;  %v770_v9 = vld [vmem:[#allocation2 + $0x91] sm:$0xff] }
 0x1dd   : > { %8143 = vst [vmem:[#allocation68_spill] sm:$0xff] %v6094_v13 }
 0x1de   : > { %v1631_v33 = vpop.f32.mrf.mxu2  ;;  %2260 = vmatmul.f32.gmra.mxu0 %v832_v11 }
 0x1df   : > { %v1744_v24 = vpop.f32.mrf.mxu3  ;;  %v1632_v42 = vadd.f32 %v1631_v33, %v5689_v5  ;;  %v834_v33 = vld [vmem:[#allocation2 + $0x92] sm:$0xff] }
 0x1e1   : > { %v1745_v37 = vadd.f32 %v1744_v24, %v1632_v42 }
 0x1e3   : > { %v6097_v51 = vadd.f32 %v1857_v52, %v1745_v37  ;;  %2037 = vmatmul.f32.gmra.mxu2 %v705_v41  ;;  %v1860_v40 = vpop.f32.mrf.mxu0  ;;  %v707_v41 = vld [vmem:[#allocation2 + $0x98] sm:$0xff] }
 0x1e4   : > { %2150 = vmatmul.f32.gmra.mxu3 %v769_v8  ;;  %v771_v8 = vld [vmem:[#allocation2 + $0x99] sm:$0xff] }
 0x1e5   : > { %8144 = vst [vmem:[#allocation69_spill] sm:$0xff] %v6097_v51 }
 0x1e6   : > { %v1634_v63 = vpop.f32.mrf.mxu2  ;;  %2263 = vmatmul.f32.gmra.mxu0 %v833_v0 }
 0x1e7   : > { %v1747_v45 = vpop.f32.mrf.mxu3  ;;  %v1635_v19 = vadd.f32 %v1634_v63, %v5700_v3  ;;  %v835_v63 = vld [vmem:[#allocation2 + $0x9a] sm:$0xff] }
 0x1e9   : > { %v1748_v62 = vadd.f32 %v1747_v45, %v1635_v19 }
 0x1eb   : > { %v6100_v11 = vadd.f32 %v1860_v40, %v1748_v62  ;;  %2040 = vmatmul.f32.gmra.mxu2 %v706_v29  ;;  %v1863_v5 = vpop.f32.mrf.mxu0  ;;  %v708_v29 = vld [vmem:[#allocation2 + $0xa8] sm:$0xff] }
 0x1ec   : > { %2153 = vmatmul.f32.gmra.mxu3 %v770_v9  ;;  %v772_v9 = vld [vmem:[#allocation2 + $0xa9] sm:$0xff] }
 0x1ed   : > { %8145 = vst [vmem:[#allocation70_spill] sm:$0xff] %v6100_v11 }
 0x1ee   : > { %v1637_v52 = vpop.f32.mrf.mxu2  ;;  %2266 = vmatmul.f32.gmra.mxu0 %v834_v33 }
 0x1ef   : > { %v1750_v24 = vpop.f32.mrf.mxu3  ;;  %v1638_v42 = vadd.f32 %v1637_v52, %v5714_v7  ;;  %v836_v52 = vld [vmem:[#allocation2 + $0xaa] sm:$0xff] }
 0x1f1   : > { %v1751_v37 = vadd.f32 %v1750_v24, %v1638_v42 }
 0x1f3   : > { %v6103_v0 = vadd.f32 %v1863_v5, %v1751_v37  ;;  %2043 = vmatmul.f32.gmra.mxu2 %v707_v41  ;;  %v1866_v3 = vpop.f32.mrf.mxu0  ;;  %v709_v41 = vld [vmem:[#allocation2 + $0xb0] sm:$0xff] }
 0x1f4   : > { %2156 = vmatmul.f32.gmra.mxu3 %v771_v8  ;;  %v773_v8 = vld [vmem:[#allocation2 + $0xb1] sm:$0xff] }
 0x1f5   : > { %8146 = vst [vmem:[#allocation71_spill] sm:$0xff] %v6103_v0 }
 0x1f6   : > { %v1640_v40 = vpop.f32.mrf.mxu2  ;;  %2269 = vmatmul.f32.gmra.mxu0 %v835_v63 }
 0x1f7   : > { %v1753_v45 = vpop.f32.mrf.mxu3  ;;  %v1641_v19 = vadd.f32 %v1640_v40, %v5725_v55  ;;  %v837_v40 = vld [vmem:[#allocation2 + $0xb2] sm:$0xff] }
 0x1f9   : > { %v1754_v62 = vadd.f32 %v1753_v45, %v1641_v19 }
 0x1fb   : > { %v6106_v33 = vadd.f32 %v1866_v3, %v1754_v62  ;;  %2046 = vmatmul.f32.gmra.mxu2 %v708_v29  ;;  %v1869_v7 = vpop.f32.mrf.mxu0  ;;  %v710_v29 = vld [vmem:[#allocation2 + $0xc0] sm:$0xff] }
 0x1fc   : > { %2159 = vmatmul.f32.gmra.mxu3 %v772_v9 }
 0x1fd   : > { %8147 = vst [vmem:[#allocation72_spill] sm:$0xff] %v6106_v33 }
 0x1fe   : > { %v1643_v5 = vpop.f32.mrf.mxu2  ;;  %2272 = vmatmul.f32.gmra.mxu0 %v836_v52  ;;  %v838_v52 = vld [vmem:[#allocation2 + $0xc2] sm:$0xff] }
 0x1ff   : > { %v1756_v24 = vpop.f32.mrf.mxu3  ;;  %v1644_v42 = vadd.f32 %v1643_v5, %v5739_v35 }
 0x201   : > { %v1757_v37 = vadd.f32 %v1756_v24, %v1644_v42  ;;  %v711_v42 = vld [vmem:[#allocation2 + $0xc8] sm:$0xff] }
 0x203   : > { %v6109_v63 = vadd.f32 %v1869_v7, %v1757_v37  ;;  %2049 = vmatmul.f32.gmra.mxu2 %v709_v41  ;;  %v1872_v55 = vpop.f32.mrf.mxu0  ;;  %v839_v37 = vld [vmem:[#allocation2 + $0xca] sm:$0xff] }
 0x204   : > { %2162 = vmatmul.f32.gmra.mxu3 %v773_v8 }
 0x205   : > { %8148 = vst [vmem:[#allocation73_spill] sm:$0xff] %v6109_v63 }
 0x206   : > { %v1646_v3 = vpop.f32.mrf.mxu2  ;;  %2275 = vmatmul.f32.gmra.mxu0 %v837_v40 }
 0x207   : > { %v1759_v45 = vpop.f32.mrf.mxu3  ;;  %v1647_v19 = vadd.f32 %v1646_v3, %v5750_v28 }
 0x209   : > { %v1760_v9 = vadd.f32 %v1759_v45, %v1647_v19  ;;  %v712_v45 = vld [vmem:[#allocation2 + $0xd8] sm:$0xff] }
 0x20b   : > { %v6112_v62 = vadd.f32 %v1872_v55, %v1760_v9  ;;  %2052 = vmatmul.f32.gmra.mxu2 %v710_v29  ;;  %v1875_v35 = vpop.f32.mrf.mxu0 }
 0x20c   : > { %2165 = vmatmul.f32.gmra.mxu3 %v5779_v10  ;;  %v8151_v10 = vld [vmem:[#allocation34_spill] sm:$0xff] }
 0x20d   : > { %8149 = vst [vmem:[#allocation74_spill] sm:$0xff] %v6112_v62 }
 0x20e   : > { %v1649_v7 = vpop.f32.mrf.mxu2  ;;  %2278 = vmatmul.f32.gmra.mxu0 %v838_v52 }
 0x20f   : > { %v1762_v5 = vpop.f32.mrf.mxu3  ;;  %v1650_v24 = vadd.f32 %v1649_v7, %v5764_v50  ;;  %v713_v7 = vld [vmem:[#allocation2 + $0xe0] sm:$0xff] }
 0x211   : > { %v1763_v41 = vadd.f32 %v1762_v5, %v1650_v24 }
 0x213   : > { %v6116_v8 = vadd.f32 %v1875_v35, %v1763_v41  ;;  %2055 = vmatmul.f32.gmra.mxu2 %v711_v42  ;;  %v1878_v28 = vpop.f32.mrf.mxu0 }
 0x214   : > { %2168 = vmatmul.f32.gmra.mxu3 %v5794_v1  ;;  %v8153_v1 = vld [vmem:[#allocation35_spill] sm:$0xff] }
 0x215   : > { %8150 = vst [vmem:[#allocation75_spill] sm:$0xff] %v6116_v8 }
 0x216   : > { %v1652_v55 = vpop.f32.mrf.mxu2  ;;  %2281 = vmatmul.f32.gmra.mxu0 %v839_v37 }
 0x217   : > { %v1765_v40 = vpop.f32.mrf.mxu3  ;;  %v1653_v3 = vadd.f32 %v1652_v55, %v8151_v10 }
 0x219   : > { %v1766_v19 = vadd.f32 %v1765_v40, %v1653_v3 }
 0x21b   : > { %v6120_v29 = vadd.f32 %v1878_v28, %v1766_v19  ;;  %2058 = vmatmul.f32.gmra.mxu2 %v712_v45  ;;  %v1881_v50 = vpop.f32.mrf.mxu0 }
 0x21c   : > { %2171 = vmatmul.f32.gmra.mxu3 %v5804_v30  ;;  %v8155_v30 = vld [vmem:[#allocation36_spill] sm:$0xff] }
 0x21d   : > { %8152 = vst [vmem:[#allocation34_spill] sm:$0xff] %v6120_v29 }
 0x21e   : > { %v1655_v9 = vpop.f32.mrf.mxu2  ;;  %2284 = vmatmul.f32.gmra.mxu0 %v5809_v18 }
 0x21f   : > { %v1768_v35 = vpop.f32.mrf.mxu3  ;;  %v1656_v52 = vadd.f32 %v1655_v9, %v8153_v1 }
 0x221   : > { %v1769_v5 = vadd.f32 %v1768_v35, %v1656_v52  ;;  %v6142_v52 = vpop.f32.mrf.mxu1 }
 0x223   : > { %v6125_v24 = vadd.f32 %v1881_v50, %v1769_v5  ;;  %2061 = vmatmul.f32.gmra.mxu2 %v713_v7  ;;  %v1884_v42 = vpop.f32.mrf.mxu0 }
 0x224   : > { %2174 = vmatmul.f32.gmra.mxu3 %v5818_v15 }
 0x225   : > { %8154 = vst [vmem:[#allocation35_spill] sm:$0xff] %v6125_v24 }
 0x226   : > { %v1658_v41 = vpop.f32.mrf.mxu2  ;;  %2287 = vmatmul.f32.gmra.mxu0 %v5820_v32  ;;  %v8157_v32 = vld [vmem:[#allocation38_spill] sm:$0xff] }
 0x227   : > { %v1771_v28 = vpop.f32.mrf.mxu3  ;;  %v1659_v37 = vadd.f32 %v1658_v41, %v8155_v30  ;;  %v8162_v30 = vld [vmem:[#allocation42_spill] sm:$0xff] }
 0x229   : > { %v1772_v55 = vadd.f32 %v1771_v28, %v1659_v37 }
 0x22b   : > { %v6130_v40 = vadd.f32 %v1884_v42, %v1772_v55  ;;  %2064 = vmatmul.f32.gmra.mxu2 %v5831_v38  ;;  %v2243_v18 = vpop.f32.mrf.mxu0  ;;  %v8158_v38 = vld [vmem:[#allocation37_spill] sm:$0xff]  ;;  %v6154_v55 = vpop.f32.mrf.mxu1 }
 0x22c   : > { %2177 = vmatmul.f32.gmra.mxu3 %v5835_v26 }
 0x22d   : > { %8156 = vst [vmem:[#allocation36_spill] sm:$0xff] %v6130_v40 }
 0x22e   : > { %v2017_v10 = vpop.f32.mrf.mxu2  ;;  %2290 = vmatmul.f32.gmra.mxu0 %v5840_v14 }
 0x22f   : > { %v2130_v3 = vpop.f32.mrf.mxu3  ;;  %v2018_v15 = vadd.f32 %v2017_v10, %v5824_v57  ;;  %v8160_v57 = vld [vmem:[#allocation40_spill] sm:$0xff] }
 0x231   : > { %v2131_v45 = vadd.f32 %v2130_v3, %v2018_v15 }
 0x233   : > { %v6136_v19 = vadd.f32 %v2243_v18, %v2131_v45  ;;  %2067 = vmatmul.f32.gmra.mxu2 %v8157_v32  ;;  %v2246_v50 = vpop.f32.mrf.mxu0  ;;  %v8164_v45 = vld [vmem:[#allocation44_spill] sm:$0xff] }
 0x234   : > { %2180 = vmatmul.f32.gmra.mxu3 %v5855_v16  ;;  %v8161_v16 = vld [vmem:[#allocation39_spill] sm:$0xff] }
 0x236   : > { %v2020_v9 = vpop.f32.mrf.mxu2  ;;  %2293 = vmatmul.f32.gmra.mxu0 %v5857_v46 }
 0x237   : > { %v2133_v35 = vpop.f32.mrf.mxu3  ;;  %v2021_v26 = vadd.f32 %v2020_v9, %v8158_v38  ;;  %v6163_v9 = vpop.f32.mrf.mxu1 }
 0x239   : > { %v2134_v1 = vadd.f32 %v2133_v35, %v2021_v26  ;;  %v8165_v35 = vld [vmem:[#allocation43_spill] sm:$0xff] }
 0x23b   : > { %v6144_v14 = vadd.f32 %v2246_v50, %v2134_v1  ;;  %2070 = vmatmul.f32.gmra.mxu2 %v8160_v57  ;;  %v2249_v7 = vpop.f32.mrf.mxu0 }
 0x23c   : > { %2183 = vmatmul.f32.gmra.mxu3 %v5872_v54  ;;  %v8163_v54 = vld [vmem:[#allocation41_spill] sm:$0xff] }
 0x23d   : > { %8159 = vst [vmem:[#allocation38_spill] sm:$0xff] %v6144_v14 }
 0x23e   : > { %v2023_v5 = vpop.f32.mrf.mxu2  ;;  %2296 = vmatmul.f32.gmra.mxu0 %v5877_v20 }
 0x23f   : > { %v2136_v42 = vpop.f32.mrf.mxu3  ;;  %v2024_v41 = vadd.f32 %v2023_v5, %v8161_v16 }
 0x241   : > { %v2137_v28 = vadd.f32 %v2136_v42, %v2024_v41  ;;  %v6175_v42 = vpop.f32.mrf.mxu1 }
 0x243   : > { %v6150_v46 = vadd.f32 %v2249_v7, %v2137_v28  ;;  %2073 = vmatmul.f32.gmra.mxu2 %v5888_v59  ;;  %v2252_v37 = vpop.f32.mrf.mxu0  ;;  %v8167_v28 = vld [vmem:[#allocation47_spill] sm:$0xff] }
 0x244   : > { %2186 = vmatmul.f32.gmra.mxu3 %v8162_v30 }
 0x246   : > { %v2026_v18 = vpop.f32.mrf.mxu2  ;;  %2299 = vmatmul.f32.gmra.mxu0 %v5894_v25  ;;  %v3544_v25 = vld [vmem:[%s8025_s2 + $0x78] sm:$0xff] }
 0x247   : > { %v2139_v10 = vpop.f32.mrf.mxu3  ;;  %v2027_v3 = vadd.f32 %v2026_v18, %v8163_v54  ;;  %3673 = vmatpush.msra.mxu1 %v3544_v25  ;;  %v8172_v25 = vld [vmem:[#allocation54_spill] sm:$0xff] }
 0x249   : > { %v2140_v15 = vadd.f32 %v2139_v10, %v2027_v3  ;;  %v6186_v54 = vpop.f32.mrf.mxu1 }
 0x24b   : > { %v6158_v20 = vadd.f32 %v2252_v37, %v2140_v15  ;;  %2076 = vmatmul.f32.gmra.mxu2 %v8164_v45  ;;  %v2255_v32 = vpop.f32.mrf.mxu0 }
 0x24c   : > { %2189 = vmatmul.f32.gmra.mxu3 %v5909_v4 }
 0x24e   : > { %v2029_v59 = vpop.f32.mrf.mxu2  ;;  %2302 = vmatmul.f32.gmra.mxu0 %v5914_v36  ;;  %v8166_v36 = vld [vmem:[#allocation45_spill] sm:$0xff] }
 0x24f   : > { %v2142_v50 = vpop.f32.mrf.mxu3  ;;  %v2030_v38 = vadd.f32 %v2029_v59, %v8165_v35 }
 0x251   : > { %v2143_v26 = vadd.f32 %v2142_v50, %v2030_v38  ;;  %v8171_v38 = vld [vmem:[#allocation52_spill] sm:$0xff] }
 0x253   : > { %v6169_v1 = vadd.f32 %v2255_v32, %v2143_v26  ;;  %2079 = vmatmul.f32.gmra.mxu2 %v5925_v47  ;;  %v2258_v4 = vpop.f32.mrf.mxu0 }
 0x254   : > { %2192 = vmatmul.f32.gmra.mxu3 %v5929_v60  ;;  %v8168_v60 = vld [vmem:[#allocation46_spill] sm:$0xff] }
 0x256   : > { %v2032_v57 = vpop.f32.mrf.mxu2  ;;  %2305 = vmatmul.f32.gmra.mxu0 %v5931_v31  ;;  %v3543_v31 = vld [vmem:[%s8025_s2 + $0x70] sm:$0xff] }
 0x257   : > { %v2145_v7 = vpop.f32.mrf.mxu3  ;;  %v2033_v5 = vadd.f32 %v2032_v57, %v8166_v36  ;;  %3674 = vmatpush.msra.mxu1 %v3543_v31  ;;  %v8173_v36 = vld [vmem:[#allocation56_spill] sm:$0xff]  ;;  %v294_v31 = vld [vmem:[#allocation2 + $0x1a7] sm:$0x1] }
 0x258   : > { %312 = vst [vmem:[#allocation2 + $0x1a9] sm:$0x1] %v294_v31 }
 0x259   : > { %v2146_v16 = vadd.f32 %v2145_v7, %v2033_v5  ;;  %v258_v7 = vld [vmem:[#allocation2 + $0x19a] sm:$0x1] }
 0x25a   : > { %276 = vst [vmem:[#allocation2 + $0x198] sm:$0x1] %v258_v7 }
 0x25b   : > { %v6177_v41 = vadd.f32 %v2258_v4, %v2146_v16  ;;  %2082 = vmatmul.f32.gmra.mxu2 %v8167_v28  ;;  %v2261_v30 = vpop.f32.mrf.mxu0  ;;  %v6200_v4 = vpop.f32.mrf.mxu1 }
 0x25c   : > { %2195 = vmatmul.f32.gmra.mxu3 %v5946_v22  ;;  %v8169_v22 = vld [vmem:[#allocation51_spill] sm:$0xff] }
 0x25e   : > { %v2035_v47 = vpop.f32.mrf.mxu2  ;;  %2308 = vmatmul.f32.gmra.mxu0 %v5951_v39  ;;  %v8170_v39 = vld [vmem:[#allocation49_spill] sm:$0xff] }
 0x25f   : > { %v2148_v37 = vpop.f32.mrf.mxu3  ;;  %v2036_v18 = vadd.f32 %v2035_v47, %v8168_v60  ;;  %v3541_v60 = vld [vmem:[%s8025_s2 + $0x60] sm:$0xff] }
 0x261   : > { %v2149_v10 = vadd.f32 %v2148_v37, %v2036_v18  ;;  %v728_v7 = vld [vmem:[#allocation2 + $0x198] sm:$0xff] }
 0x263   : > { %v6188_v3 = vadd.f32 %v2261_v30, %v2149_v10  ;;  %2085 = vmatmul.f32.gmra.mxu2 %v5966_v58  ;;  %v2264_v15 = vpop.f32.mrf.mxu0  ;;  %v8174_v30 = vld [vmem:[#allocation59_spill] sm:$0xff] }
 0x264   : > { %2198 = vmatmul.f32.gmra.mxu3 %v8169_v22 }
 0x266   : > { %v2038_v45 = vpop.f32.mrf.mxu2  ;;  %2311 = vmatmul.f32.gmra.mxu0 %v5974_v12  ;;  %v3542_v12 = vld [vmem:[%s8025_s2 + $0x68] sm:$0xff] }
 0x267   : > { %v2151_v32 = vpop.f32.mrf.mxu3  ;;  %v2039_v59 = vadd.f32 %v2038_v45, %v8170_v39  ;;  %3675 = vmatpush.msra.mxu1 %v3542_v12  ;;  %v8177_v39 = vld [vmem:[#allocation63_spill] sm:$0xff] }
 0x269   : > { %v2152_v50 = vadd.f32 %v2151_v32, %v2039_v59  ;;  %3676 = vmatpush.msra.mxu1 %v3541_v60  ;;  %v3540_v59 = vld [vmem:[%s8025_s2 + $0x58] sm:$0xff] }
 0x26a   : > { %v856_v60 = vld [vmem:[#allocation2 + $0x19a] sm:$0xff] }
 0x26b   : > { %v6194_v35 = vadd.f32 %v2264_v15, %v2152_v50  ;;  %2088 = vmatmul.f32.gmra.mxu2 %v8171_v38  ;;  %v6198_v26 = vpop.f32.mrf.mxu0  ;;  %v8176_v15 = vld [vmem:[#allocation48_spill] sm:$0xff]  ;;  %3677 = vmatpush.msra.mxu1 %v3540_v59  ;;  %v8179_v50 = vld [vmem:[#allocation55_spill] sm:$0xff] }
 0x26c   : > { %2201 = vmatmul.f32.gmra.mxu3 %v8172_v25  ;;  %v3539_v59 = vld [vmem:[%s8025_s2 + $0x50] sm:$0xff] }
 0x26d   : > { %3678 = vmatpush.msra.mxu1 %v3539_v59  ;;  %v3538_v59 = vld [vmem:[%s8025_s2 + $0x48] sm:$0xff] }
 0x26e   : > { %v6202_v58 = vpop.f32.mrf.mxu2  ;;  %2314 = vmatmul.f32.gmra.mxu0 %v5994_v44  ;;  %v6219_v44 = vpop.f32.mrf.mxu1 }
 0x26f   : > { %v6204_v57 = vpop.f32.mrf.mxu3  ;;  %3679 = vmatpush.msra.mxu1 %v3538_v59  ;;  %v3537_v59 = vld [vmem:[%s8025_s2 + $0x40] sm:$0xff] }
 0x271   : > { %3680 = vmatpush.msra.mxu1 %v3537_v59 }
 0x273   : > { %2091 = vmatmul.f32.gmra.mxu2 %v8173_v36  ;;  %v6212_v5 = vpop.f32.mrf.mxu0  ;;  %v792_v36 = vld [vmem:[#allocation2 + $0x199] sm:$0xff] }
 0x274   : > { %2204 = vmatmul.f32.gmra.mxu3 %v6013_v61 }
 0x276   : > { %v6214_v16 = vpop.f32.mrf.mxu2  ;;  %2317 = vmatmul.f32.gmra.mxu0 %v6015_v27  ;;  %v6233_v27 = vpop.f32.mrf.mxu1 }
 0x277   : > { %v6216_v28 = vpop.f32.mrf.mxu3 }
 0x27b   : > { %2094 = vmatmul.f32.gmra.mxu2 %v6024_v56  ;;  %v6223_v47 = vpop.f32.mrf.mxu0  ;;  %v8175_v56 = vld [vmem:[#allocation61_spill] sm:$0xff] }
 0x27c   : > { %2207 = vmatmul.f32.gmra.mxu3 %v8174_v30 }
 0x27e   : > { %v6225_v37 = vpop.f32.mrf.mxu2  ;;  %2320 = vmatmul.f32.gmra.mxu0 %v6032_v43  ;;  %v6244_v43 = vpop.f32.mrf.mxu1 }
 0x27f   : > { %v6227_v61 = vpop.f32.mrf.mxu3 }
 0x283   : > { %2097 = vmatmul.f32.gmra.mxu2 %v6038_v6  ;;  %v6237_v18 = vpop.f32.mrf.mxu0 }
 0x284   : > { %2210 = vmatmul.f32.gmra.mxu3 %v8175_v56 }
 0x286   : > { %v6239_v10 = vpop.f32.mrf.mxu2  ;;  %2323 = vmatmul.f32.gmra.mxu0 %v6046_v23  ;;  %v8178_v23 = vld [vmem:[#allocation64_spill] sm:$0xff]  ;;  %v6262_v38 = vpop.f32.mrf.mxu1 }
 0x287   : > { %v6241_v22 = vpop.f32.mrf.mxu3 }
 0x28b   : > { %2100 = vmatmul.f32.gmra.mxu2 %v6052_v49  ;;  %v6248_v45 = vpop.f32.mrf.mxu0 }
 0x28c   : > { %2213 = vmatmul.f32.gmra.mxu3 %v8176_v15 }
 0x28e   : > { %v6250_v6 = vpop.f32.mrf.mxu2  ;;  %2326 = vmatmul.f32.gmra.mxu0 %v8177_v39  ;;  %v6275_v39 = vpop.f32.mrf.mxu1 }
 0x28f   : > { %v6252_v32 = vpop.f32.mrf.mxu3 }
 0x293   : > { %2103 = vmatmul.f32.gmra.mxu2 %v8178_v23  ;;  %v6260_v49 = vpop.f32.mrf.mxu0  ;;  %v729_v23 = vld [vmem:[#allocation2 + $0x1a0] sm:$0xff] }
 0x294   : > { %2216 = vmatmul.f32.gmra.mxu3 %v8179_v50 }
 0x296   : > { %v6264_v25 = vpop.f32.mrf.mxu2  ;;  %2329 = vmatmul.f32.gmra.mxu0 %v6070_v53  ;;  %v793_v53 = vld [vmem:[#allocation2 + $0x1a1] sm:$0xff] }
 0x297   : > { %v6266_v12 = vpop.f32.mrf.mxu3 }
 0x29b   : > { %2106 = vmatmul.f32.gmra.mxu2 %v728_v7  ;;  %v6269_v30 = vpop.f32.mrf.mxu0 }
 0x29c   : > { %2219 = vmatmul.f32.gmra.mxu3 %v792_v36  ;;  %v857_v36 = vld [vmem:[#allocation2 + $0x1a2] sm:$0xff] }
 0x29e   : > { %v6271_v56 = vpop.f32.mrf.mxu2  ;;  %2332 = vmatmul.f32.gmra.mxu0 %v856_v60  ;;  %v6286_v60 = vpop.f32.mrf.mxu1 }
 0x29f   : > { %v6273_v31 = vpop.f32.mrf.mxu3 }
 0x2a3   : > { %2109 = vmatmul.f32.gmra.mxu2 %v729_v23  ;;  %v6280_v7 = vpop.f32.mrf.mxu0 }
 0x2a4   : > { %2222 = vmatmul.f32.gmra.mxu3 %v793_v53  ;;  %8180 = vst [vmem:[#allocation37_spill] sm:$0xff] %v6280_v7  ;;  %v2339_v7 = vadd.f32 %v6144_v14, %v6136_v19 }
 0x2a6   : > { %v6282_v50 = vpop.f32.mrf.mxu2  ;;  %2335 = vmatmul.f32.gmra.mxu0 %v857_v36  ;;  %v6297_v23 = vpop.f32.mrf.mxu1 }
 0x2a7   : > { %v6284_v15 = vpop.f32.mrf.mxu3  ;;  %8182 = vst [vmem:[#allocation39_spill] sm:$0xff] %v6297_v23 }
 0x2ab   : > { %v6288_v40 = vpop.f32.mrf.mxu0 }
 0x2ac   : > { %8181 = vst [vmem:[#allocation40_spill] sm:$0xff] %v6288_v40 }
 0x2ae   : > { %v6290_v24 = vpop.f32.mrf.mxu2  ;;  %v6307_v63 = vpop.f32.mrf.mxu1 }
 0x2af   : > { %v6292_v29 = vpop.f32.mrf.mxu3  ;;  %8186 = vst [vmem:[#allocation43_spill] sm:$0xff] %v6307_v63 }
 0x2b3   : > { %v6299_v53 = vpop.f32.mrf.mxu0 }
 0x2b4   : > { %8183 = vst [vmem:[#allocation42_spill] sm:$0xff] %v6299_v53 }
 0x2b6   : > { %v6301_v8 = vpop.f32.mrf.mxu2  ;;  %v6322_v13 = vpop.f32.mrf.mxu1 }
 0x2b7   : > { %v6303_v36 = vpop.f32.mrf.mxu3  ;;  %8192 = vst [vmem:[#allocation52_spill] sm:$0xff] %v6322_v13 }
 0x2b8   : > { %8184 = vst [vmem:[#allocation41_spill] sm:$0xff] %v6303_v36 }
 0x2bb   : > { %v6305_v62 = vpop.f32.mrf.mxu0 }
 0x2bc   : > { %8185 = vst [vmem:[#allocation44_spill] sm:$0xff] %v6305_v62 }
 0x2be   : > { %v6309_v33 = vpop.f32.mrf.mxu2  ;;  %v6333_v59 = vpop.f32.mrf.mxu1 }
 0x2bf   : > { %8187 = vst [vmem:[#allocation45_spill] sm:$0xff] %v6309_v33  ;;  %v6311_v0 = vpop.f32.mrf.mxu3 }
 0x2c0   : > { %8188 = vst [vmem:[#allocation47_spill] sm:$0xff] %v6311_v0  ;;  %v3536_v0 = vld [vmem:[%s8025_s2 + $0x38] sm:$0xff] }
 0x2c1   : > { %3681 = vmatpush.msra.mxu1 %v3536_v0  ;;  %8196 = vst [vmem:[#allocation61_spill] sm:$0xff] %v6333_v59  ;;  %v8201_v0 = vld [vmem:[#allocation53_spill] sm:$0xff] }
 0x2c2   : > { %v1932_v59 = vadd.f32 %v6154_v55, %v8201_v0  ;;  %v2381_v55 = vmul.f32 %v6169_v1, %v6169_v1  ;;  %v8203_v0 = vld [vmem:[#allocation58_spill] sm:$0xff] }
 0x2c3   : > { %v6316_v11 = vpop.f32.mrf.mxu0 }
 0x2c4   : > { %8189 = vst [vmem:[#allocation46_spill] sm:$0xff] %v6316_v11  ;;  %v2045_v33 = vadd.f32 %v6214_v16, %v1932_v59 }
 0x2c6   : > { %v6318_v51 = vpop.f32.mrf.mxu2  ;;  %v2158_v59 = vadd.f32 %v6216_v28, %v2045_v33  ;;  %v3535_v28 = vld [vmem:[%s8025_s2 + $0x30] sm:$0xff] }
 0x2c7   : > { %8190 = vst [vmem:[#allocation51_spill] sm:$0xff] %v6318_v51  ;;  %v6320_v53 = vpop.f32.mrf.mxu3  ;;  %v8198_v51 = vld [vmem:[#allocation50_spill] sm:$0xff]  ;;  %3682 = vmatpush.msra.mxu1 %v3535_v28 }
 0x2c8   : > { %8191 = vst [vmem:[#allocation49_spill] sm:$0xff] %v6320_v53  ;;  %v2378_v53 = vmul.f32 %v6144_v14, %v6144_v14  ;;  %v1929_v13 = vadd.f32 %v6142_v52, %v8198_v51  ;;  %v2380_v51 = vmul.f32 %v6158_v20, %v6158_v20  ;;  %v8202_v52 = vld [vmem:[#allocation57_spill] sm:$0xff] }
 0x2c9   : > { %v1935_v48 = vadd.f32 %v6163_v9, %v8202_v52 }
 0x2cb   : > { %v6324_v62 = vpop.f32.mrf.mxu0 }
 0x2cc   : > { %8193 = vst [vmem:[#allocation54_spill] sm:$0xff] %v6324_v62  ;;  %v2377_v62 = vmul.f32 %v6136_v19, %v6136_v19 }
 0x2ce   : > { %v6326_v63 = vpop.f32.mrf.mxu2  ;;  %v2409_v23 = vadd.f32 %v2378_v53, %v2377_v62  ;;  %v2048_v53 = vadd.f32 %v6225_v37, %v1935_v48  ;;  %v2383_v48 = vmul.f32 %v6188_v3, %v6188_v3  ;;  %v8205_v37 = vld [vmem:[#allocation62_spill] sm:$0xff] }
 0x2cf   : > { %8194 = vst [vmem:[#allocation56_spill] sm:$0xff] %v6326_v63  ;;  %v6328_v40 = vpop.f32.mrf.mxu3 }
 0x2d0   : > { %8195 = vst [vmem:[#allocation59_spill] sm:$0xff] %v6328_v40  ;;  %v2379_v40 = vmul.f32 %v6150_v46, %v6150_v46  ;;  %v2161_v33 = vadd.f32 %v6227_v61, %v2048_v53 }
 0x2d3   : > { %v6335_v11 = vpop.f32.mrf.mxu0 }
 0x2d4   : > { %8197 = vst [vmem:[#allocation63_spill] sm:$0xff] %v6335_v11  ;;  %v2042_v11 = vadd.f32 %v6202_v58, %v1929_v13  ;;  %v1938_v13 = vadd.f32 %v6175_v42, %v8203_v0  ;;  %v6364_v58 = vpop.f32.mrf.mxu1 }
 0x2d6   : > { %v6345_v63 = vpop.f32.mrf.mxu2  ;;  %v2155_v62 = vadd.f32 %v6204_v57, %v2042_v11  ;;  %v2051_v42 = vadd.f32 %v6239_v10, %v1938_v13  ;;  %v8206_v10 = vld [vmem:[#allocation65_spill] sm:$0xff] }
 0x2d7   : > { %8199 = vst [vmem:[#allocation64_spill] sm:$0xff] %v6345_v63  ;;  %v6347_v36 = vpop.f32.mrf.mxu3  ;;  %v2340_v63 = vadd.f32 %v2339_v7, %v6150_v46  ;;  %v8204_v7 = vld [vmem:[#allocation60_spill] sm:$0xff] }
 0x2d8   : > { %8200 = vst [vmem:[#allocation50_spill] sm:$0xff] %v6347_v36  ;;  %v2410_v36 = vadd.f32 %v2409_v23, %v2379_v40  ;;  %v2382_v40 = vmul.f32 %v6177_v41, %v6177_v41  ;;  %v1941_v23 = vadd.f32 %v6186_v54, %v8204_v7  ;;  %v2164_v61 = vadd.f32 %v6241_v22, %v2051_v42 }
 0x2d9   : > { %v2341_v9 = vadd.f32 %v2340_v63, %v6158_v20 }
 0x2da   : > { %v2411_v16 = vadd.f32 %v2410_v36, %v2380_v51  ;;  %v1944_v36 = vadd.f32 %v6200_v4, %v8205_v37  ;;  %v6387_v51 = vadd.f32 %v6198_v26, %v2155_v62  ;;  %v2054_v54 = vadd.f32 %v6250_v6, %v1941_v23 }
 0x2db   : > { %v6368_v14 = vpop.f32.mrf.mxu0  ;;  %v2342_v52 = vadd.f32 %v2341_v9, %v6169_v1  ;;  %v2384_v4 = vmul.f32 %v6194_v35, %v6194_v35  ;;  %v6400_v26 = vadd.f32 %v6212_v5, %v2158_v59  ;;  %v6408_v9 = vadd.f32 %v6223_v47, %v2161_v33  ;;  %v8207_v5 = vld [vmem:[#allocation66_spill] sm:$0xff] }
 0x2dc   : > { %v2412_v11 = vadd.f32 %v2411_v16, %v2381_v55  ;;  %v1947_v55 = vadd.f32 %v6219_v44, %v8206_v10  ;;  %v2057_v6 = vadd.f32 %v6264_v25, %v1944_v36  ;;  %v2385_v44 = vmul.f32 %v6387_v51, %v6387_v51  ;;  %v6417_v23 = vpop.f32.mrf.mxu1 }
 0x2dd   : > { %v2343_v0 = vadd.f32 %v2342_v52, %v6177_v41  ;;  %v2167_v16 = vadd.f32 %v6252_v32, %v2054_v54  ;;  %v1950_v22 = vadd.f32 %v6233_v27, %v8207_v5  ;;  %v2386_v42 = vmul.f32 %v6400_v26, %v6400_v26 }
 0x2de   : > { %v6380_v57 = vpop.f32.mrf.mxu2  ;;  %v2413_v13 = vadd.f32 %v2412_v11, %v2382_v40  ;;  %v2060_v40 = vadd.f32 %v6271_v56, %v1947_v55  ;;  %v6422_v47 = vadd.f32 %v6237_v18, %v2164_v61  ;;  %v2170_v32 = vadd.f32 %v6266_v12, %v2057_v6 }
 0x2df   : > { %v6382_v63 = vpop.f32.mrf.mxu3  ;;  %v2344_v62 = vadd.f32 %v2343_v0, %v6188_v3  ;;  %v1953_v56 = vadd.f32 %v6244_v43, %v6079_v2  ;;  %v2063_v27 = vadd.f32 %v6282_v50, %v1950_v22  ;;  %v2387_v36 = vmul.f32 %v6408_v9, %v6408_v9 }
 0x2e0   : > { %v2414_v53 = vadd.f32 %v2413_v13, %v2383_v48  ;;  %v6436_v18 = vadd.f32 %v6248_v45, %v2167_v16  ;;  %v2173_v12 = vadd.f32 %v6273_v31, %v2060_v40  ;;  %v1956_v2 = vadd.f32 %v6262_v38, %v6082_v21  ;;  %v8208_v13 = vld [vmem:[#allocation45_spill] sm:$0xff] }
 0x2e1   : > { %v2345_v25 = vadd.f32 %v2344_v62, %v6194_v35  ;;  %v2066_v50 = vadd.f32 %v6290_v24, %v1953_v56  ;;  %v2388_v54 = vmul.f32 %v6422_v47, %v6422_v47  ;;  %v6446_v28 = vadd.f32 %v6260_v49, %v2170_v32  ;;  %v8212_v16 = vld [vmem:[#allocation41_spill] sm:$0xff]  ;;  %v8214_v56 = vld [vmem:[#allocation40_spill] sm:$0xff] }
 0x2e2   : > { %v2415_v59 = vadd.f32 %v2414_v53, %v2384_v4  ;;  %v1959_v45 = vadd.f32 %v6275_v39, %v6085_v34  ;;  %v2176_v31 = vadd.f32 %v6284_v15, %v2063_v27  ;;  %v2069_v21 = vadd.f32 %v6301_v8, %v1956_v2  ;;  %v8209_v4 = vld [vmem:[#allocation67_spill] sm:$0xff]  ;;  %v8211_v53 = vld [vmem:[#allocation37_spill] sm:$0xff]  ;;  %v8217_v2 = vld [vmem:[#allocation68_spill] sm:$0xff] }
 0x2e3   : > { %v6412_v7 = vpop.f32.mrf.mxu0  ;;  %v2346_v52 = vadd.f32 %v2345_v25, %v6387_v51  ;;  %v2389_v24 = vmul.f32 %v6436_v18, %v6436_v18  ;;  %v6456_v55 = vadd.f32 %v6269_v30, %v2173_v12  ;;  %v1962_v49 = vadd.f32 %v6286_v60, %v6088_v17  ;;  %v8210_v8 = vld [vmem:[#allocation39_spill] sm:$0xff] }
 0x2e4   : > { %v2416_v37 = vadd.f32 %v2415_v59, %v2385_v44  ;;  %v2179_v39 = vadd.f32 %v6292_v29, %v2066_v50  ;;  %v2072_v15 = vadd.f32 %v8208_v13, %v1959_v45  ;;  %v1965_v61 = vadd.f32 %v8210_v8, %v8209_v4  ;;  %v8213_v60 = vld [vmem:[#allocation51_spill] sm:$0xff]  ;;  %v1982_v22 = vpop.f32.mrf.mxu1  ;;  %v8223_v13 = vld [vmem:[#allocation64_spill] sm:$0xff] }
 0x2e5   : > { %v2347_v43 = vadd.f32 %v2346_v52, %v6400_v26  ;;  %v2390_v62 = vmul.f32 %v6446_v28, %v6446_v28  ;;  %v6471_v44 = vadd.f32 %v8211_v53, %v2176_v31  ;;  %v2182_v17 = vadd.f32 %v8212_v16, %v2069_v21  ;;  %v8215_v27 = vld [vmem:[#allocation47_spill] sm:$0xff]  ;;  %v8220_v21 = vld [vmem:[#allocation49_spill] sm:$0xff]  ;;  %v8226_v16 = vld [vmem:[#allocation70_spill] sm:$0xff] }
 0x2e6   : > { %v6429_v11 = vpop.f32.mrf.mxu2  ;;  %v2417_v33 = vadd.f32 %v2416_v37, %v2386_v42  ;;  %v2075_v40 = vadd.f32 %v8213_v60, %v1962_v49  ;;  %v2391_v59 = vmul.f32 %v6456_v55, %v6456_v55  ;;  %v3534_v42 = vld [vmem:[%s8025_s2 + $0x28] sm:$0xff]  ;;  %v6482_v52 = vadd.f32 %v8214_v56, %v2179_v39  ;;  %v8222_v49 = vld [vmem:[#allocation52_spill] sm:$0xff] }
 0x2e7   : > { %v6431_v48 = vpop.f32.mrf.mxu3  ;;  %v2348_v10 = vadd.f32 %v2347_v43, %v6408_v9  ;;  %v2185_v37 = vadd.f32 %v8215_v27, %v2072_v15  ;;  %3683 = vmatpush.msra.mxu1 %v3534_v42  ;;  %v8218_v43 = vld [vmem:[#allocation43_spill] sm:$0xff]  ;;  %v2392_v45 = vmul.f32 %v6471_v44, %v6471_v44 }
 0x2e8   : > { %v2418_v38 = vadd.f32 %v2417_v33, %v2387_v36  ;;  %v8216_v36 = vld [vmem:[#allocation56_spill] sm:$0xff]  ;;  %v1968_v50 = vadd.f32 %v8218_v43, %v8217_v2 }
 0x2e9   : > { %v2349_v34 = vadd.f32 %v2348_v10, %v6422_v47  ;;  %v2078_v12 = vadd.f32 %v8216_v36, %v1965_v61  ;;  %v8219_v10 = vld [vmem:[#allocation42_spill] sm:$0xff]  ;;  %v2393_v61 = vmul.f32 %v6482_v52, %v6482_v52 }
 0x2ea   : > { %v2419_v6 = vadd.f32 %v2418_v38, %v2388_v54  ;;  %v6492_v31 = vadd.f32 %v8219_v10, %v2182_v17  ;;  %v2188_v38 = vadd.f32 %v8220_v21, %v2075_v40  ;;  %v2081_v15 = vadd.f32 %v8223_v13, %v1968_v50  ;;  %v8227_v17 = vld [vmem:[#allocation61_spill] sm:$0xff]  ;;  %v8232_v21 = vld [vmem:[#allocation72_spill] sm:$0xff]  ;;  %v8233_v13 = vld [vmem:[#allocation63_spill] sm:$0xff] }
 0x2eb   : > { %v6458_v0 = vpop.f32.mrf.mxu0  ;;  %v2350_v30 = vadd.f32 %v2349_v34, %v6436_v18  ;;  %v1974_v60 = vadd.f32 %v8227_v17, %v8226_v16 }
 0x2ec   : > { %v2420_v25 = vadd.f32 %v2419_v6, %v2389_v24  ;;  %v8221_v24 = vld [vmem:[#allocation69_spill] sm:$0xff]  ;;  %v8224_v6 = vld [vmem:[#allocation44_spill] sm:$0xff]  ;;  %v2394_v42 = vmul.f32 %v6492_v31, %v6492_v31 }
 0x2ed   : > { %v2351_v32 = vadd.f32 %v2350_v30, %v6446_v28  ;;  %v1971_v34 = vadd.f32 %v8222_v49, %v8221_v24  ;;  %v8225_v30 = vld [vmem:[#allocation59_spill] sm:$0xff]  ;;  %v2087_v50 = vadd.f32 %v6429_v11, %v1974_v60  ;;  %v1985_v24 = vpop.f32.mrf.mxu1 }
 0x2ee   : > { %v2089_v5 = vpop.f32.mrf.mxu2  ;;  %v2421_v33 = vadd.f32 %v2420_v25, %v2390_v62  ;;  %v6502_v62 = vadd.f32 %v8224_v6, %v2185_v37  ;;  %v2191_v53 = vadd.f32 %v8225_v30, %v2078_v12  ;;  %v8229_v37 = vld [vmem:[#allocation71_spill] sm:$0xff]  ;;  %v8230_v12 = vld [vmem:[#allocation50_spill] sm:$0xff] }
 0x2ef   : > { %v2202_v29 = vpop.f32.mrf.mxu3  ;;  %v2352_v54 = vadd.f32 %v2351_v32, %v6456_v55  ;;  %v2084_v40 = vadd.f32 %v6380_v57, %v1971_v34  ;;  %v8228_v32 = vld [vmem:[#allocation46_spill] sm:$0xff]  ;;  %v1977_v2 = vadd.f32 %v6364_v58, %v8229_v37  ;;  %v2194_v43 = vadd.f32 %v8230_v12, %v2081_v15 }
 0x2f0   : > { %v2422_v39 = vadd.f32 %v2421_v33, %v2391_v59  ;;  %v6512_v56 = vadd.f32 %v8228_v32, %v2188_v38  ;;  %v1980_v38 = vadd.f32 %v6417_v23, %v8232_v21 }
 0x2f1   : > { %v2353_v8 = vadd.f32 %v2352_v54, %v6471_v44  ;;  %v2395_v54 = vmul.f32 %v6502_v62, %v6502_v62  ;;  %v2197_v49 = vadd.f32 %v6382_v63, %v2084_v40  ;;  %v2090_v58 = vadd.f32 %v2089_v5, %v1977_v2  ;;  %v8234_v5 = vld [vmem:[#allocation73_spill] sm:$0xff] }
 0x2f2   : > { %v2423_v25 = vadd.f32 %v2422_v39, %v2392_v45  ;;  %v8231_v45 = vld [vmem:[#allocation54_spill] sm:$0xff]  ;;  %v2396_v11 = vmul.f32 %v6512_v56, %v6512_v56  ;;  %v6531_v15 = vadd.f32 %v8233_v13, %v2194_v43 }
 0x2f3   : > { %v2318_v4 = vpop.f32.mrf.mxu0  ;;  %v2354_v59 = vadd.f32 %v2353_v8, %v6482_v52  ;;  %v6522_v10 = vadd.f32 %v8231_v45, %v2191_v53  ;;  %v2200_v8 = vadd.f32 %v6431_v48, %v2087_v50  ;;  %v1983_v53 = vadd.f32 %v1982_v22, %v8234_v5  ;;  %v3533_v22 = vld [vmem:[%s8025_s2 + $0x20] sm:$0xff] }
 0x2f4   : > { %v2424_v33 = vadd.f32 %v2423_v25, %v2393_v61  ;;  %v6539_v16 = vadd.f32 %v6368_v14, %v2197_v49  ;;  %v2203_v17 = vadd.f32 %v2202_v29, %v2090_v58  ;;  %v2398_v48 = vmul.f32 %v6531_v15, %v6531_v15  ;;  %3684 = vmatpush.msra.mxu1 %v3533_v22 }
 0x2f5   : > { %v2355_v57 = vadd.f32 %v2354_v59, %v6492_v31  ;;  %v2397_v63 = vmul.f32 %v6522_v10, %v6522_v10  ;;  %v1988_v43 = vpop.f32.mrf.mxu1 }
 0x2f6   : > { %v2092_v27 = vpop.f32.mrf.mxu2  ;;  %v2425_v34 = vadd.f32 %v2424_v33, %v2394_v42  ;;  %v6545_v42 = vadd.f32 %v6412_v7, %v2200_v8  ;;  %v2399_v37 = vmul.f32 %v6539_v16, %v6539_v16  ;;  %v6554_v2 = vadd.f32 %v6458_v0, %v2203_v17 }
 0x2f7   : > { %v2205_v36 = vpop.f32.mrf.mxu3  ;;  %v2356_v39 = vadd.f32 %v2355_v57, %v6502_v62  ;;  %v2093_v61 = vadd.f32 %v2092_v27, %v1980_v38 }
 0x2f8   : > { %v2426_v30 = vadd.f32 %v2425_v34, %v2395_v54  ;;  %v2400_v50 = vmul.f32 %v6545_v42, %v6545_v42  ;;  %v8235_v54 = vld [vmem:[#allocation74_spill] sm:$0xff]  ;;  %v2401_v0 = vmul.f32 %v6554_v2, %v6554_v2 }
 0x2f9   : > { %v2357_v23 = vadd.f32 %v2356_v39, %v6512_v56  ;;  %v2206_v32 = vadd.f32 %v2205_v36, %v2093_v61  ;;  %v1986_v45 = vadd.f32 %v1985_v24, %v8235_v54 }
 0x2fa   : > { %v2427_v60 = vadd.f32 %v2426_v30, %v2396_v11 }
 0x2fb   : > { %v2321_v6 = vpop.f32.mrf.mxu0  ;;  %v2358_v40 = vadd.f32 %v2357_v23, %v6522_v10  ;;  %v6559_v33 = vadd.f32 %v2318_v4, %v2206_v32 }
 0x2fc   : > { %v2428_v14 = vadd.f32 %v2427_v60, %v2397_v63 }
 0x2fd   : > { %v2359_v29 = vadd.f32 %v2358_v40, %v6531_v15  ;;  %v2402_v4 = vmul.f32 %v6559_v33, %v6559_v33  ;;  %v1991_v60 = vpop.f32.mrf.mxu1 }
 0x2fe   : > { %v2095_v25 = vpop.f32.mrf.mxu2  ;;  %v2429_v7 = vadd.f32 %v2428_v14, %v2398_v48 }
 0x2ff   : > { %v2208_v59 = vpop.f32.mrf.mxu3  ;;  %v2096_v27 = vadd.f32 %v2095_v25, %v1983_v53  ;;  %v2360_v36 = vadd.f32 %v2359_v29, %v6539_v16  ;;  %v8236_v53 = vld [vmem:[#allocation75_spill] sm:$0xff] }
 0x300   : > { %v2430_v21 = vadd.f32 %v2429_v7, %v2399_v37  ;;  %v1989_v17 = vadd.f32 %v1988_v43, %v8236_v53 }
 0x301   : > { %v2209_v12 = vadd.f32 %v2208_v59, %v2096_v27  ;;  %v2361_v38 = vadd.f32 %v2360_v36, %v6545_v42 }
 0x302   : > { %v2431_v39 = vadd.f32 %v2430_v21, %v2400_v50 }
 0x303   : > { %v2324_v57 = vpop.f32.mrf.mxu0  ;;  %v6565_v49 = vadd.f32 %v2321_v6, %v2209_v12  ;;  %v2362_v11 = vadd.f32 %v2361_v38, %v6554_v2  ;;  %v8237_v12 = vld [vmem:[#allocation34_spill] sm:$0xff] }
 0x304   : > { %v2432_v8 = vadd.f32 %v2431_v39, %v2401_v0  ;;  %v1992_v7 = vadd.f32 %v1991_v60, %v8237_v12 }
 0x305   : > { %v2363_v24 = vadd.f32 %v2362_v11, %v6559_v33  ;;  %v2403_v61 = vmul.f32 %v6565_v49, %v6565_v49  ;;  %v1994_v21 = vpop.f32.mrf.mxu1 }
 0x306   : > { %v2098_v58 = vpop.f32.mrf.mxu2  ;;  %v2433_v23 = vadd.f32 %v2432_v8, %v2402_v4 }
 0x307   : > { %v2211_v34 = vpop.f32.mrf.mxu3  ;;  %v2099_v13 = vadd.f32 %v2098_v58, %v1986_v45  ;;  %v2364_v6 = vadd.f32 %v2363_v24, %v6565_v49  ;;  %v8238_v58 = vld [vmem:[#allocation35_spill] sm:$0xff] }
 0x308   : > { %v2434_v40 = vadd.f32 %v2433_v23, %v2403_v61 }
 0x309   : > { %v2212_v30 = vadd.f32 %v2211_v34, %v2099_v13  ;;  %v1995_v34 = vadd.f32 %v1994_v21, %v8238_v58 }
 0x30b   : > { %v6574_v63 = vadd.f32 %v2324_v57, %v2212_v30  ;;  %v2327_v5 = vpop.f32.mrf.mxu0 }
 0x30d   : > { %v2365_v25 = vadd.f32 %v2364_v6, %v6574_v63  ;;  %v2404_v59 = vmul.f32 %v6574_v63, %v6574_v63  ;;  %v1997_v23 = vpop.f32.mrf.mxu1 }
 0x30e   : > { %v2101_v48 = vpop.f32.mrf.mxu2 }
 0x30f   : > { %v2214_v32 = vpop.f32.mrf.mxu3  ;;  %v2435_v27 = vadd.f32 %v2434_v40, %v2404_v59  ;;  %v2102_v22 = vadd.f32 %v2101_v48, %v1989_v17 }
 0x311   : > { %v2215_v14 = vadd.f32 %v2214_v32, %v2102_v22 }
 0x313   : > { %v6580_v29 = vadd.f32 %v2327_v5, %v2215_v14  ;;  %v2330_v37 = vpop.f32.mrf.mxu0  ;;  %v8239_v5 = vld [vmem:[#allocation36_spill] sm:$0xff] }
 0x314   : > { %v1998_v53 = vadd.f32 %v1997_v23, %v8239_v5  ;;  %v3560_v23 = vld [vmem:[%s8025_s2 + $0xf8] sm:$0xff] }
 0x315   : > { %v2366_v36 = vadd.f32 %v2365_v25, %v6580_v29  ;;  %v2405_v43 = vmul.f32 %v6580_v29, %v6580_v29  ;;  %3786 = vmatpush.msrb.mxu2 %v3560_v23 }
 0x316   : > { %v2104_v50 = vpop.f32.mrf.mxu2 }
 0x317   : > { %v2217_v57 = vpop.f32.mrf.mxu3  ;;  %v2436_v54 = vadd.f32 %v2435_v27, %v2405_v43  ;;  %v2105_v45 = vadd.f32 %v2104_v50, %v1992_v7 }
 0x319   : > { %v2218_v38 = vadd.f32 %v2217_v57, %v2105_v45 }
 0x31b   : > { %v6586_v0 = vadd.f32 %v2330_v37, %v2218_v38  ;;  %v2333_v4 = vpop.f32.mrf.mxu0 }
 0x31d   : > { %v2367_v39 = vadd.f32 %v2366_v36, %v6586_v0  ;;  %v2406_v11 = vmul.f32 %v6586_v0, %v6586_v0 }
 0x31e   : > { %v2107_v13 = vpop.f32.mrf.mxu2 }
 0x31f   : > { %v2220_v8 = vpop.f32.mrf.mxu3  ;;  %v2437_v24 = vadd.f32 %v2436_v54, %v2406_v11  ;;  %v2108_v61 = vadd.f32 %v2107_v13, %v1995_v34 }
 0x321   : > { %v2221_v30 = vadd.f32 %v2220_v8, %v2108_v61 }
 0x323   : > { %v6592_v6 = vadd.f32 %v2333_v4, %v2221_v30  ;;  %v2336_v32 = vpop.f32.mrf.mxu0 }
 0x325   : > { %v2368_v17 = vadd.f32 %v2367_v39, %v6592_v6  ;;  %v2407_v60 = vmul.f32 %v6592_v6, %v6592_v6 }
 0x326   : > { %v2110_v40 = vpop.f32.mrf.mxu2 }
 0x327   : > { %v2223_v25 = vpop.f32.mrf.mxu3  ;;  %v2438_v59 = vadd.f32 %v2437_v24, %v2407_v60  ;;  %v2111_v48 = vadd.f32 %v2110_v40, %v1998_v53 }
 0x329   : > { %v2224_v27 = vadd.f32 %v2223_v25, %v2111_v48  ;;  %v3532_v48 = vld [vmem:[%s8025_s2 + $0x18] sm:$0xff] }
 0x32a   : > { %3685 = vmatpush.msra.mxu1 %v3532_v48 }
 0x32b   : > { %v6598_v22 = vadd.f32 %v2336_v32, %v2224_v27  ;;  %v3557_v32 = vld [vmem:[%s8025_s2 + $0xe0] sm:$0xff] }
 0x32d   : > { %v2369_v14 = vadd.f32 %v2368_v17, %v6598_v22  ;;  %v2408_v37 = vmul.f32 %v6598_v22, %v6598_v22  ;;  %v3559_v17 = vld [vmem:[%s8025_s2 + $0xf0] sm:$0xff] }
 0x32e   : > { %3787 = vmatpush.msrb.mxu2 %v3559_v17 }
 0x32f   : > { %v2370_v12 = vrot.slane %v2369_v14, 4  ;;  %v2439_v7 = vadd.f32 %v2438_v59, %v2408_v37  ;;  %v3558_v59 = vld [vmem:[%s8025_s2 + $0xe8] sm:$0xff]  ;;  %v3556_v37 = vld [vmem:[%s8025_s2 + $0xd8] sm:$0xff] }
 0x330   : > { %3788 = vmatpush.msrb.mxu2 %v3558_v59 }
 0x331   : > { %v2371_v36 = vadd.f32 %v2370_v12, %v2369_v14  ;;  %v2440_v43 = vrot.slane %v2439_v7, 4  ;;  %v3576_v14 = vld [vmem:[%s8025_s2 + $0x178] sm:$0xff] }
 0x332   : > { %3789 = vmatpush.msrb.mxu2 %v3557_v32  ;;  %3899 = vmatpush.msrb.mxu3 %v3576_v14 }
 0x333   : > { %v2372_v50 = vrot.slane %v2371_v36, 2  ;;  %v2441_v57 = vadd.f32 %v2440_v43, %v2439_v7  ;;  %v3575_v7 = vld [vmem:[%s8025_s2 + $0x170] sm:$0xff] }
 0x334   : > { %3790 = vmatpush.msrb.mxu2 %v3556_v37  ;;  %3900 = vmatpush.msrb.mxu3 %v3575_v7 }
 0x335   : > { %v2373_v54 = vadd.f32 %v2372_v50, %v2371_v36  ;;  %v2442_v45 = vrot.slane %v2441_v57, 2  ;;  %v3555_v36 = vld [vmem:[%s8025_s2 + $0xd0] sm:$0xff] }
 0x336   : > { %3791 = vmatpush.msrb.mxu2 %v3555_v36 }
 0x337   : > { %v2374_v21 = vrot.slane %v2373_v54, 1  ;;  %v2443_v38 = vadd.f32 %v2442_v45, %v2441_v57  ;;  %v8240_v57 = vld [vmem:[#allocation38_spill] sm:$0xff] }
 0x339   : > { %v2375_v58 = vadd.f32 %v2374_v21, %v2373_v54  ;;  %v2444_v34 = vrot.slane %v2443_v38, 1 }
 0x33b   : > { %v6603_v39 = vmul.f32 0.00390625, %v2375_v58  ;;  %v2445_v11 = vadd.f32 %v2444_v34, %v2443_v38  ;;  %v3554_v34 = vld [vmem:[%s8025_s2 + $0xc8] sm:$0xff] }
 0x33c   : > { %3792 = vmatpush.msrb.mxu2 %v3554_v34 }
 0x33d   : > { %v2446_v4 = vmul.f32 0.00390625, %v2445_v11  ;;  %v2447_v13 = vmul.f32 %v6603_v39, %v6603_v39  ;;  %v2481_v8 = vsub.f32 %v6598_v22, %v6603_v39  ;;  %v2476_v5 = vsub.f32 %v6565_v49, %v6603_v39  ;;  %v3548_v49 = vld [vmem:[%s8025_s2 + $0x98] sm:$0xff] }
 0x33e   : > { %v2477_v53 = vsub.f32 %v6574_v63, %v6603_v39  ;;  %v2478_v60 = vsub.f32 %v6580_v29, %v6603_v39  ;;  %v2479_v40 = vsub.f32 %v6586_v0, %v6603_v39  ;;  %v2480_v25 = vsub.f32 %v6592_v6, %v6603_v39  ;;  %v3566_v0 = vld [vmem:[%s8025_s2 + $0x128] sm:$0xff]  ;;  %v3547_v6 = vld [vmem:[%s8025_s2 + $0x90] sm:$0xff] }
 0x33f   : > { %v2448_v24 = vsub.f32 %v2446_v4, %v2447_v13  ;;  %v2450_v50 = vsub.f32 %v6136_v19, %v6603_v39  ;;  %v2451_v54 = vsub.f32 %v8240_v57, %v6603_v39  ;;  %v2452_v45 = vsub.f32 %v6150_v46, %v6603_v39  ;;  %v3574_v19 = vld [vmem:[%s8025_s2 + $0x168] sm:$0xff] }
 0x340   : > { %v2453_v21 = vsub.f32 %v6158_v20, %v6603_v39  ;;  %v2454_v38 = vsub.f32 %v6169_v1, %v6603_v39  ;;  %v2455_v58 = vsub.f32 %v6177_v41, %v6603_v39  ;;  %v2456_v46 = vsub.f32 %v6188_v3, %v6603_v39  ;;  %3901 = vmatpush.msrb.mxu3 %v3574_v19  ;;  %v3573_v3 = vld [vmem:[%s8025_s2 + $0x160] sm:$0xff] }
 0x341   : > { %v2449_v61 = vmax.f32 %v2448_v24, 0.0  ;;  %v2457_v20 = vsub.f32 %v6194_v35, %v6603_v39  ;;  %v2458_v1 = vsub.f32 %v6387_v51, %v6603_v39  ;;  %v2459_v41 = vsub.f32 %v6400_v26, %v6603_v39  ;;  %v3553_v35 = vld [vmem:[%s8025_s2 + $0xc0] sm:$0xff] }
 0x342   : > { %v2460_v4 = vsub.f32 %v6408_v9, %v6603_v39  ;;  %v2461_v13 = vsub.f32 %v6422_v47, %v6603_v39  ;;  %v2462_v24 = vsub.f32 %v6436_v18, %v6603_v39  ;;  %v2463_v26 = vsub.f32 %v6446_v28, %v6603_v39  ;;  %3902 = vmatpush.msrb.mxu3 %v3573_v3  ;;  %v3572_v18 = vld [vmem:[%s8025_s2 + $0x158] sm:$0xff] }
 0x343   : > { %v2482_v30 = vadd.f32 1e-05, %v2449_v61  ;;  %v2464_v9 = vsub.f32 %v6456_v55, %v6603_v39  ;;  %3793 = vmatpush.msrb.mxu2 %v3553_v35  ;;  %v2465_v47 = vsub.f32 %v6471_v44, %v6603_v39  ;;  %v2466_v61 = vsub.f32 %v6482_v52, %v6603_v39  ;;  %v3592_v28 = vld [vmem:[%s8025_s2 + $0x1f8] sm:$0xff] }
 0x344   : > { %v2467_v23 = vsub.f32 %v6492_v31, %v6603_v39  ;;  %v3552_v55 = vld [vmem:[%s8025_s2 + $0xb8] sm:$0xff]  ;;  %v2468_v44 = vsub.f32 %v6502_v62, %v6603_v39  ;;  %v2469_v52 = vsub.f32 %v6512_v56, %v6603_v39  ;;  %3903 = vmatpush.msrb.mxu3 %v3572_v18  ;;  %4012 = vmatpush.msrb.mxu0 %v3592_v28  ;;  %v3571_v62 = vld [vmem:[%s8025_s2 + $0x150] sm:$0xff] }
 0x345   : > { %5048 = vrsqrt.f32 %v2482_v30  ;;  %vm2489_vm1 = vweird.f32 %v2482_v30  ;;  %v2470_v31 = vsub.f32 %v6522_v10, %v6603_v39  ;;  %v2471_v17 = vsub.f32 %v6531_v15, %v6603_v39  ;;  %v3591_v56 = vld [vmem:[%s8025_s2 + $0x1f0] sm:$0xff]  ;;  %3794 = vmatpush.msrb.mxu2 %v3552_v55 }
 0x346   : > { %v2472_v59 = vsub.f32 %v6539_v16, %v6603_v39  ;;  %v2473_v48 = vsub.f32 %v6545_v42, %v6603_v39  ;;  %v3551_v10 = vld [vmem:[%s8025_s2 + $0xb0] sm:$0xff]  ;;  %v2474_v16 = vsub.f32 %v6554_v2, %v6603_v39  ;;  %v2475_v42 = vsub.f32 %v6559_v33, %v6603_v39  ;;  %3904 = vmatpush.msrb.mxu3 %v3571_v62  ;;  %v3590_v2 = vld [vmem:[%s8025_s2 + $0x1e8] sm:$0xff]  ;;  %v3565_v39 = vld [vmem:[%s8025_s2 + $0x120] sm:$0xff] }
 0x347   : > { %4013 = vmatpush.msrb.mxu0 %v3591_v56  ;;  %3795 = vmatpush.msrb.mxu2 %v3551_v10  ;;  %v3550_v33 = vld [vmem:[%s8025_s2 + $0xa8] sm:$0xff]  ;;  %v3587_v18 = vld [vmem:[%s8025_s2 + $0x1d0] sm:$0xff] }
 0x349   : > { %4014 = vmatpush.msrb.mxu0 %v3590_v2  ;;  %3796 = vmatpush.msrb.mxu2 %v3550_v33  ;;  %v3562_v2 = vld [vmem:[%s8025_s2 + $0x108] sm:$0xff]  ;;  %v3545_v33 = vld [vmem:[%s8025_s2 + $0x80] sm:$0xff] }
 0x34b   : > { %v5049_v27 = vpop.eup %5048 }
 0x34c   : > { %v2484_v12 = vmul.f32 %v5049_v27, %v2482_v30  ;;  %vm2490_vm0 = vweird.f32 %v5049_v27 }
 0x34d   : > { %vm2491_vm2 = vmor %vm2489_vm1, %vm2490_vm0 }
 0x34e   : > { %v2485_v43 = vmul.f32 %v5049_v27, %v2484_v12 }
 0x350   : > { %v2486_v11 = vmul.f32 0.5, %v2485_v43 }
 0x352   : > { %v2487_v51 = vsub.f32 1.5, %v2486_v11 }
 0x354   : > { %v2488_v30 = vmul.f32 %v5049_v27, %v2487_v51 }
 0x356   : > { %v2492_v15 = vsel %vm2491_vm2, %v5049_v27, %v2488_v30  ;;  %v3570_v27 = vld [vmem:[%s8025_s2 + $0x148] sm:$0xff] }
 0x357   : > { %v2524_v32 = vmul.f32 %v2492_v15, %v2481_v8  ;;  %v6732_v14 = vmul.f32 %v2492_v15, %v2450_v50  ;;  %v6734_v37 = vmul.f32 %v2492_v15, %v2451_v54  ;;  %v2495_v12 = vmul.f32 %v2492_v15, %v2452_v45  ;;  %3905 = vmatpush.msrb.mxu3 %v3570_v27  ;;  %v3569_v45 = vld [vmem:[%s8025_s2 + $0x140] sm:$0xff] }
 0x358   : > { %v2496_v22 = vmul.f32 %v2492_v15, %v2453_v21  ;;  %v6745_v8 = vmul.f32 %v2492_v15, %v2454_v38  ;;  %v6747_v7 = vmul.f32 %v2492_v15, %v2455_v58  ;;  %v6749_v36 = vmul.f32 %v2492_v15, %v2456_v46  ;;  %v3589_v21 = vld [vmem:[%s8025_s2 + $0x1e0] sm:$0xff] }
 0x359   : > { %v2556_v43 = vmax.f32 %v2524_v32, 0.0  ;;  %v6751_v50 = vmul.f32 %v2492_v15, %v2457_v20  ;;  %v6753_v57 = vmul.f32 %v2492_v15, %v2458_v1  ;;  %v6755_v54 = vmul.f32 %v2492_v15, %v2459_v41  ;;  %3906 = vmatpush.msrb.mxu3 %v3569_v45  ;;  %v3568_v41 = vld [vmem:[%s8025_s2 + $0x138] sm:$0xff]  ;;  %4015 = vmatpush.msrb.mxu0 %v3589_v21  ;;  %v3563_v32 = vld [vmem:[%s8025_s2 + $0x110] sm:$0xff]  ;;  %v3561_v21 = vld [vmem:[%s8025_s2 + $0x100] sm:$0xff] }
 0x35a   : > { %v6763_v38 = vmul.f32 %v2492_v15, %v2460_v4  ;;  %v6765_v58 = vmul.f32 %v2492_v15, %v2461_v13  ;;  %v6767_v19 = vmul.f32 %v2492_v15, %v2462_v24  ;;  %v6769_v34 = vmul.f32 %v2492_v15, %v2463_v26  ;;  %v3588_v4 = vld [vmem:[%s8025_s2 + $0x1d8] sm:$0xff]  ;;  %v3549_v24 = vld [vmem:[%s8025_s2 + $0xa0] sm:$0xff] }
 0x35b   : > { %2588 = vst [vmem:[#allocation2 + $0x189] sm:$0xff] %v2556_v43  ;;  %v6771_v11 = vmul.f32 %v2492_v15, %v2464_v9  ;;  %v6773_v46 = vmul.f32 %v2492_v15, %v2465_v47  ;;  %v6775_v20 = vmul.f32 %v2492_v15, %v2466_v61  ;;  %v6777_v1 = vmul.f32 %v2492_v15, %v2467_v23  ;;  %v3567_v23 = vld [vmem:[%s8025_s2 + $0x130] sm:$0xff]  ;;  %v3582_v43 = vld [vmem:[%s8025_s2 + $0x1a8] sm:$0xff] }
 0x35c   : > { %v6785_v13 = vmul.f32 %v2492_v15, %v2468_v44  ;;  %v6787_v3 = vmul.f32 %v2492_v15, %v2469_v52  ;;  %v6789_v35 = vmul.f32 %v2492_v15, %v2470_v31  ;;  %v6791_v51 = vmul.f32 %v2492_v15, %v2471_v17  ;;  %3907 = vmatpush.msrb.mxu3 %v3568_v41  ;;  %v3546_v52 = vld [vmem:[%s8025_s2 + $0x88] sm:$0xff]  ;;  %v3531_v17 = vld [vmem:[%s8025_s2 + $0x10] sm:$0xff] }
 0x35d   : > { %v6796_v26 = vmul.f32 %v2492_v15, %v2472_v59  ;;  %v6798_v9 = vmul.f32 %v2492_v15, %v2473_v48  ;;  %v6800_v47 = vmul.f32 %v2492_v15, %v2474_v16  ;;  %v6802_v61 = vmul.f32 %v2492_v15, %v2475_v42  ;;  %4016 = vmatpush.msrb.mxu0 %v3588_v4  ;;  %v3530_v59 = vld [vmem:[%s8025_s2 + $0x8] sm:$0xff]  ;;  %v3529_v48 = vld [vmem:[%s8025_s2] sm:$0xff]  ;;  %v3584_v42 = vld [vmem:[%s8025_s2 + $0x1b8] sm:$0xff] }
 0x35e   : > { %v6813_v28 = vmul.f32 %v2492_v15, %v2476_v5  ;;  %v6818_v55 = vmul.f32 %v2492_v15, %v2477_v53  ;;  %v6823_v30 = vmul.f32 %v2492_v15, %v2478_v60  ;;  %v6828_v44 = vmul.f32 %v2492_v15, %v2479_v40  ;;  %3908 = vmatpush.msrb.mxu3 %v3567_v23  ;;  %v3586_v53 = vld [vmem:[%s8025_s2 + $0x1c8] sm:$0xff]  ;;  %v3581_v4 = vld [vmem:[%s8025_s2 + $0x1a0] sm:$0xff] }
 0x35f   : > { %v6836_v63 = vmul.f32 %v2492_v15, %v2480_v25  ;;  %v2525_v5 = vmax.f32 %v6732_v14, 0.0  ;;  %v6839_v29 = vmax.f32 %v2495_v12, 0.0  ;;  %3797 = vmatpush.msrb.mxu2 %v3549_v24  ;;  %v2526_v60 = vmax.f32 %v6734_v37, 0.0  ;;  %4017 = vmatpush.msrb.mxu0 %v3587_v18  ;;  %v3585_v25 = vld [vmem:[%s8025_s2 + $0x1c0] sm:$0xff]  ;;  %v3564_v15 = vld [vmem:[%s8025_s2 + $0x118] sm:$0xff]  ;;  %v3583_v12 = vld [vmem:[%s8025_s2 + $0x1b0] sm:$0xff] }
 0x360   : > { %v6848_v40 = vmax.f32 %v2496_v22, 0.0  ;;  %3909 = vmatpush.msrb.mxu3 %v3566_v0  ;;  %v2529_v31 = vmax.f32 %v6745_v8, 0.0  ;;  %3686 = vmatpush.msra.mxu1 %v3531_v17  ;;  %v2530_v62 = vmax.f32 %v6747_v7, 0.0  ;;  %v2553_v56 = vmax.f32 %v6823_v30, 0.0  ;;  %v3578_v17 = vld [vmem:[%s8025_s2 + $0x188] sm:$0xff]  ;;  %v3607_v14 = vld [vmem:[%s8025_s2 + $0x270] sm:$0xff] }
 0x361   : > { %2589 = vst [vmem:[#allocation2 + $0x1] sm:$0xff] %v6839_v29  ;;  %3798 = vmatpush.msrb.mxu2 %v3548_v49  ;;  %4018 = vmatpush.msrb.mxu0 %v3586_v53  ;;  %v2554_v10 = vmax.f32 %v6828_v44, 0.0  ;;  %v2531_v16 = vmax.f32 %v6749_v36, 0.0  ;;  %v2532_v27 = vmax.f32 %v6751_v50, 0.0  ;;  %v2533_v22 = vmax.f32 %v6753_v57, 0.0  ;;  %v3580_v49 = vld [vmem:[%s8025_s2 + $0x198] sm:$0xff] }
 0x362   : > { %2590 = vst [vmem:[#allocation2 + $0x9] sm:$0xff] %v6848_v40  ;;  %3910 = vmatpush.msrb.mxu3 %v3565_v39  ;;  %3687 = vmatpush.msra.mxu1 %v3530_v59  ;;  %v2534_v45 = vmax.f32 %v6755_v54, 0.0  ;;  %v2535_v41 = vmax.f32 %v6763_v38, 0.0  ;;  %v2536_v23 = vmax.f32 %v6765_v58, 0.0  ;;  %v2537_v18 = vmax.f32 %v6767_v19, 0.0  ;;  %v3608_v53 = vld [vmem:[%s8025_s2 + $0x278] sm:$0xff] }
 0x363   : > { %2557 = vst [vmem:[#allocation2 + $0x19] sm:$0xff] %v2525_v5  ;;  %3799 = vmatpush.msrb.mxu2 %v3547_v6  ;;  %4019 = vmatpush.msrb.mxu0 %v3585_v25  ;;  %v2538_v0 = vmax.f32 %v6769_v34, 0.0  ;;  %v2539_v6 = vmax.f32 %v6771_v11, 0.0  ;;  %v3579_v39 = vld [vmem:[%s8025_s2 + $0x190] sm:$0xff]  ;;  %v2540_v25 = vmax.f32 %v6773_v46, 0.0  ;;  %v2542_v59 = vmax.f32 %v6777_v1, 0.0 }
 0x364   : > { %2558 = vst [vmem:[#allocation2 + $0x21] sm:$0xff] %v2526_v60  ;;  %3911 = vmatpush.msrb.mxu3 %v3564_v15  ;;  %3688 = vmatpush.msra.mxu1 %v3529_v48  ;;  %v2543_v48 = vmax.f32 %v6785_v13, 0.0  ;;  %v3577_v15 = vld [vmem:[%s8025_s2 + $0x180] sm:$0xff]  ;;  %v3604_v7 = vld [vmem:[%s8025_s2 + $0x258] sm:$0xff]  ;;  %v3603_v50 = vld [vmem:[%s8025_s2 + $0x250] sm:$0xff] }
 0x365   : > { %2559 = vst [vmem:[#allocation2 + $0x31] sm:$0xff] %v6839_v29  ;;  %3800 = vmatpush.msrb.mxu2 %v3546_v52  ;;  %4020 = vmatpush.msrb.mxu0 %v3584_v42  ;;  %v2541_v52 = vmax.f32 %v6775_v20, 0.0  ;;  %v2544_v42 = vmax.f32 %v6787_v3, 0.0  ;;  %v3599_v46 = vld [vmem:[%s8025_s2 + $0x230] sm:$0xff] }
 0x366   : > { %2560 = vst [vmem:[#allocation2 + $0x39] sm:$0xff] %v6848_v40  ;;  %3912 = vmatpush.msrb.mxu3 %v3563_v32  ;;  %4125 = vmatpush.msrb.mxu1 %v3608_v53  ;;  %v2545_v32 = vmax.f32 %v6789_v35, 0.0 }
 0x367   : > { %2561 = vst [vmem:[#allocation2 + $0x49] sm:$0xff] %v2529_v31  ;;  %3801 = vmatpush.msrb.mxu2 %v3545_v33  ;;  %4021 = vmatpush.msrb.mxu0 %v3583_v12  ;;  %v2546_v12 = vmax.f32 %v6791_v51, 0.0  ;;  %v2548_v33 = vmax.f32 %v6798_v9, 0.0 }
 0x368   : > { %2591 = vst [vmem:[#allocation2 + $0x199] sm:$0xff] %v2553_v56  ;;  %3802 = vmatmul.f32.vlgmr.msrb.gmra.mxu2 %v6839_v29  ;;  %3913 = vmatpush.msrb.mxu3 %v3562_v2  ;;  %v2547_v2 = vmax.f32 %v6796_v26, 0.0 }
 0x369   : > { %2592 = vst [vmem:[#allocation2 + $0x1a1] sm:$0xff] %v2554_v10  ;;  %v2793_v24 = vld [vmem:[#allocation2 + $0x2] sm:$0xff]  ;;  %4022 = vmatpush.msrb.mxu0 %v3582_v43  ;;  %v2549_v43 = vmax.f32 %v6800_v47, 0.0  ;;  %4126 = vmatpush.msrb.mxu1 %v3607_v14 }
 0x36a   : > { %2562 = vst [vmem:[#allocation2 + $0x51] sm:$0xff] %v2530_v62  ;;  %3914 = vmatpush.msrb.mxu3 %v3561_v21  ;;  %v2550_v21 = vmax.f32 %v6802_v61, 0.0  ;;  %v2594_v53 = vld [vmem:[#allocation2 + $0x1a] sm:$0x1] }
 0x36b   : > { %2563 = vst [vmem:[#allocation2 + $0x61] sm:$0xff] %v2531_v16  ;;  %4023 = vmatpush.msrb.mxu0 %v3581_v4  ;;  %3915 = vmatmul.f32.vlgmr.msrb.gmra.mxu3 %v2793_v24  ;;  %v2551_v4 = vmax.f32 %v6813_v28, 0.0  ;;  %v2552_v24 = vmax.f32 %v6818_v55, 0.0  ;;  %v2593_v55 = vld [vmem:[#allocation2 + $0x2] sm:$0x1]  ;;  %v3640_v61 = vld [vmem:[%s8025_s2 + $0x378] sm:$0xff] }
 0x36c   : > { %2564 = vst [vmem:[#allocation2 + $0x69] sm:$0xff] %v2532_v27  ;;  %4351 = vmatpush.msra.mxu3 %v3640_v61  ;;  %v3638_v28 = vld [vmem:[%s8025_s2 + $0x368] sm:$0xff] }
 0x36d   : > { %2565 = vst [vmem:[#allocation2 + $0x79] sm:$0xff] %v2533_v22  ;;  %4024 = vmatpush.msrb.mxu0 %v3580_v49  ;;  %v2629_v49 = vld [vmem:[#allocation2 + $0xf] sm:$0x1] }
 0x36e   : > { %2566 = vst [vmem:[#allocation2 + $0x81] sm:$0xff] %v2534_v45  ;;  %v3614_v61 = vld [vmem:[%s8025_s2 + $0x2a8] sm:$0xff] }
 0x36f   : > { %2567 = vst [vmem:[#allocation2 + $0x91] sm:$0xff] %v2535_v41  ;;  %4025 = vmatpush.msrb.mxu0 %v3579_v39  ;;  %v2595_v39 = vld [vmem:[#allocation2 + $0x32] sm:$0x1] }
 0x370   : > { %2568 = vst [vmem:[#allocation2 + $0x99] sm:$0xff] %v2536_v23  ;;  %3805 = vmatmul.f32.gmra.mxu2 %v6848_v40 }
 0x371   : > { %2569 = vst [vmem:[#allocation2 + $0xa9] sm:$0xff] %v2537_v18  ;;  %4026 = vmatpush.msrb.mxu0 %v3578_v17  ;;  %v2631_v17 = vld [vmem:[#allocation2 + $0x3f] sm:$0x1]  ;;  %v2632_v30 = vld [vmem:[#allocation2 + $0x57] sm:$0x1] }
 0x372   : > { %2570 = vst [vmem:[#allocation2 + $0xb1] sm:$0xff] %v2538_v0  ;;  %v2862_v36 = vld [vmem:[#allocation2 + $0x50] sm:$0xff] }
 0x373   : > { %2571 = vst [vmem:[#allocation2 + $0xc1] sm:$0xff] %v2539_v6  ;;  %4027 = vmatpush.msrb.mxu0 %v3577_v15  ;;  %v2596_v15 = vld [vmem:[#allocation2 + $0x4a] sm:$0x1]  ;;  %v2633_v44 = vld [vmem:[#allocation2 + $0x6f] sm:$0x1] }
 0x374   : > { %2572 = vst [vmem:[#allocation2 + $0xc9] sm:$0xff] %v2540_v25 }
 0x375   : > { %2573 = vst [vmem:[#allocation2 + $0xd9] sm:$0xff] %v2541_v52  ;;  %v2803_v54 = vld [vmem:[#allocation2 + $0x7a] sm:$0xff] }
 0x376   : > { %2574 = vst [vmem:[#allocation2 + $0xe1] sm:$0xff] %v2542_v59 }
 0x377   : > { %2575 = vst [vmem:[#allocation2 + $0xf1] sm:$0xff] %v2543_v48  ;;  %v2805_v58 = vld [vmem:[#allocation2 + $0x92] sm:$0xff] }
 0x378   : > { %2576 = vst [vmem:[#allocation2 + $0xf9] sm:$0xff] %v2544_v42  ;;  %3808 = vmatmul.f32.gmra.mxu2 %v2525_v5  ;;  %v2555_v5 = vmax.f32 %v6836_v63, 0.0  ;;  %v2630_v63 = vld [vmem:[#allocation2 + $0x27] sm:$0x1] }
 0x379   : > { %2577 = vst [vmem:[#allocation2 + $0x109] sm:$0xff] %v2545_v32  ;;  %v2807_v34 = vld [vmem:[#allocation2 + $0xaa] sm:$0xff] }
 0x37a   : > { %2578 = vst [vmem:[#allocation2 + $0x111] sm:$0xff] %v2546_v12 }
 0x37b   : > { %2579 = vst [vmem:[#allocation2 + $0x121] sm:$0xff] %v2547_v2 }
 0x37c   : > { %2580 = vst [vmem:[#allocation2 + $0x129] sm:$0xff] %v2548_v33 }
 0x37d   : > { %2581 = vst [vmem:[#allocation2 + $0x139] sm:$0xff] %v2549_v43 }
 0x37e   : > { %2582 = vst [vmem:[#allocation2 + $0x141] sm:$0xff] %v2550_v21 }
 0x37f   : > { %2583 = vst [vmem:[#allocation2 + $0x151] sm:$0xff] %v2551_v4 }
 0x380   : > { %2584 = vst [vmem:[#allocation2 + $0x159] sm:$0xff] %v2552_v24  ;;  %3811 = vmatmul.f32.gmra.mxu2 %v2526_v60  ;;  %v2598_v60 = vld [vmem:[#allocation2 + $0x7a] sm:$0x1]  ;;  %v2634_v24 = vld [vmem:[#allocation2 + $0x87] sm:$0x1] }
 0x381   : > { %2585 = vst [vmem:[#allocation2 + $0x169] sm:$0xff] %v2553_v56  ;;  %v2597_v56 = vld [vmem:[#allocation2 + $0x62] sm:$0x1] }
 0x382   : > { %2586 = vst [vmem:[#allocation2 + $0x171] sm:$0xff] %v2554_v10 }
 0x383   : > { %2587 = vst [vmem:[#allocation2 + $0x181] sm:$0xff] %v2555_v5  ;;  %v2599_v5 = vld [vmem:[#allocation2 + $0x92] sm:$0x1] }
 0x384   : > { %2611 = vst [vmem:[#allocation2] sm:$0x1] %v2593_v55  ;;  %v3606_v55 = vld [vmem:[%s8025_s2 + $0x268] sm:$0xff] }
 0x385   : > { %2647 = vst [vmem:[#allocation2 + $0x11] sm:$0x1] %v2629_v49  ;;  %4127 = vmatpush.msrb.mxu1 %v3606_v55  ;;  %v2600_v49 = vld [vmem:[#allocation2 + $0xaa] sm:$0x1]  ;;  %v2606_v55 = vld [vmem:[#allocation2 + $0x13a] sm:$0x1] }
 0x386   : > { %2612 = vst [vmem:[#allocation2 + $0x18] sm:$0x1] %v2594_v53  ;;  %v2636_v53 = vld [vmem:[#allocation2 + $0xb7] sm:$0x1] }
 0x387   : > { %2648 = vst [vmem:[#allocation2 + $0x29] sm:$0x1] %v2630_v63  ;;  %v2601_v63 = vld [vmem:[#allocation2 + $0xc2] sm:$0x1]  ;;  %v2643_v8 = vld [vmem:[#allocation2 + $0x15f] sm:$0x1] }
 0x388   : > { %2613 = vst [vmem:[#allocation2 + $0x30] sm:$0x1] %v2595_v39  ;;  %3814 = vmatmul.f32.gmra.mxu2 %v6839_v29  ;;  %v2635_v29 = vld [vmem:[#allocation2 + $0x9f] sm:$0x1]  ;;  %v2637_v39 = vld [vmem:[#allocation2 + $0xcf] sm:$0x1] }
 0x389   : > { %2649 = vst [vmem:[#allocation2 + $0x41] sm:$0x1] %v2631_v17  ;;  %v2666_v17 = vld [vmem:[#allocation2 + $0x8] sm:$0xff] }
 0x38a   : > { %2614 = vst [vmem:[#allocation2 + $0x48] sm:$0x1] %v2596_v15  ;;  %v2602_v15 = vld [vmem:[#allocation2 + $0xda] sm:$0x1] }
 0x38b   : > { %v2665_v37 = vld [vmem:[#allocation2] sm:$0xff]  ;;  %2650 = vst [vmem:[#allocation2 + $0x59] sm:$0x1] %v2632_v30 }
 0x38c   : > { %3689 = vmatmul.f32.vlgmr.msra.gmra.mxu1 %v2665_v37  ;;  %v2794_v10 = vld [vmem:[#allocation2 + $0xa] sm:$0xff]  ;;  %2615 = vst [vmem:[#allocation2 + $0x60] sm:$0x1] %v2597_v56  ;;  %v2795_v30 = vld [vmem:[#allocation2 + $0x1a] sm:$0xff]  ;;  %v2638_v56 = vld [vmem:[#allocation2 + $0xe7] sm:$0x1] }
 0x38d   : > { %3918 = vmatmul.f32.gmra.mxu3 %v2794_v10  ;;  %v2857_v14 = vld [vmem:[#allocation2 + $0x18] sm:$0xff]  ;;  %2651 = vst [vmem:[#allocation2 + $0x71] sm:$0x1] %v2633_v44  ;;  %v2858_v44 = vld [vmem:[#allocation2 + $0x20] sm:$0xff]  ;;  %v2603_v37 = vld [vmem:[#allocation2 + $0xf2] sm:$0x1] }
 0x38e   : > { %4028 = vmatmul.f32.vlgmr.msrb.gmra.mxu0 %v2857_v14  ;;  %2616 = vst [vmem:[#allocation2 + $0x78] sm:$0x1] %v2598_v60  ;;  %v2639_v60 = vld [vmem:[#allocation2 + $0xff] sm:$0x1]  ;;  %v2604_v10 = vld [vmem:[#allocation2 + $0x10a] sm:$0x1] }
 0x38f   : > { %2652 = vst [vmem:[#allocation2 + $0x89] sm:$0x1] %v2634_v24  ;;  %v2605_v24 = vld [vmem:[#allocation2 + $0x122] sm:$0x1] }
 0x390   : > { %2617 = vst [vmem:[#allocation2 + $0x90] sm:$0x1] %v2599_v5  ;;  %3817 = vmatmul.f32.gmra.mxu2 %v6848_v40  ;;  %v2640_v40 = vld [vmem:[#allocation2 + $0x117] sm:$0x1]  ;;  %v2641_v5 = vld [vmem:[#allocation2 + $0x12f] sm:$0x1] }
 0x391   : > { %2653 = vst [vmem:[#allocation2 + $0xa1] sm:$0x1] %v2635_v29  ;;  %v2796_v29 = vld [vmem:[#allocation2 + $0x22] sm:$0xff] }
 0x392   : > { %2618 = vst [vmem:[#allocation2 + $0xa8] sm:$0x1] %v2600_v49  ;;  %v2642_v49 = vld [vmem:[#allocation2 + $0x147] sm:$0x1] }
 0x393   : > { %2654 = vst [vmem:[#allocation2 + $0xb9] sm:$0x1] %v2636_v53  ;;  %v2859_v53 = vld [vmem:[#allocation2 + $0x30] sm:$0xff] }
 0x394   : > { %3692 = vmatmul.f32.gmra.mxu1 %v2666_v17  ;;  %2619 = vst [vmem:[#allocation2 + $0xc0] sm:$0x1] %v2601_v63  ;;  %v2607_v63 = vld [vmem:[#allocation2 + $0x152] sm:$0x1]  ;;  %v2644_v17 = vld [vmem:[#allocation2 + $0x177] sm:$0x1] }
 0x395   : > { %3921 = vmatmul.f32.gmra.mxu3 %v2795_v30  ;;  %2655 = vst [vmem:[#allocation2 + $0xd1] sm:$0x1] %v2637_v39  ;;  %v3605_v39 = vld [vmem:[%s8025_s2 + $0x260] sm:$0xff]  ;;  %v2860_v30 = vld [vmem:[#allocation2 + $0x38] sm:$0xff]  ;;  %v2802_v57 = vld [vmem:[#allocation2 + $0x6a] sm:$0xff] }
 0x396   : > { %4031 = vmatmul.f32.gmra.mxu0 %v2858_v44  ;;  %2620 = vst [vmem:[#allocation2 + $0xd8] sm:$0x1] %v2602_v15  ;;  %4128 = vmatpush.msrb.mxu1 %v3605_v39  ;;  %v2797_v15 = vld [vmem:[#allocation2 + $0x32] sm:$0xff]  ;;  %v2804_v38 = vld [vmem:[#allocation2 + $0x82] sm:$0xff] }
 0x397   : > { %2656 = vst [vmem:[#allocation2 + $0xe9] sm:$0x1] %v2638_v56  ;;  %v2798_v56 = vld [vmem:[#allocation2 + $0x3a] sm:$0xff]  ;;  %v2872_v39 = vld [vmem:[#allocation2 + $0xc8] sm:$0xff] }
 0x398   : > { %2621 = vst [vmem:[#allocation2 + $0xf0] sm:$0x1] %v2603_v37  ;;  %3820 = vmatmul.f32.gmra.mxu2 %v2529_v31  ;;  %v2608_v31 = vld [vmem:[#allocation2 + $0x16a] sm:$0x1]  ;;  %4129 = vmatpush.msrb.mxu1 %v3604_v7  ;;  %v2806_v19 = vld [vmem:[#allocation2 + $0x9a] sm:$0xff] }
 0x399   : > { %2657 = vst [vmem:[#allocation2 + $0x101] sm:$0x1] %v2639_v60  ;;  %v2861_v37 = vld [vmem:[#allocation2 + $0x48] sm:$0xff] }
 0x39a   : > { %2622 = vst [vmem:[#allocation2 + $0x108] sm:$0x1] %v2604_v10  ;;  %v2645_v60 = vld [vmem:[#allocation2 + $0x18f] sm:$0x1]  ;;  %v2800_v10 = vld [vmem:[#allocation2 + $0x52] sm:$0xff]  ;;  %4130 = vmatpush.msrb.mxu1 %v3603_v50 }
 0x39b   : > { %2658 = vst [vmem:[#allocation2 + $0x119] sm:$0x1] %v2640_v40  ;;  %v2863_v40 = vld [vmem:[#allocation2 + $0x60] sm:$0xff] }
 0x39c   : > { %3695 = vmatmul.f32.gmra.mxu1 %v2857_v14  ;;  %2623 = vst [vmem:[#allocation2 + $0x120] sm:$0x1] %v2605_v24  ;;  %v2609_v14 = vld [vmem:[#allocation2 + $0x182] sm:$0x1]  ;;  %v2864_v24 = vld [vmem:[#allocation2 + $0x68] sm:$0xff] }
 0x39d   : > { %3924 = vmatmul.f32.gmra.mxu3 %v2796_v29  ;;  %2659 = vst [vmem:[#allocation2 + $0x131] sm:$0x1] %v2641_v5  ;;  %v3602_v5 = vld [vmem:[%s8025_s2 + $0x248] sm:$0xff] }
 0x39e   : > { %4034 = vmatmul.f32.gmra.mxu0 %v2859_v53  ;;  %2624 = vst [vmem:[#allocation2 + $0x138] sm:$0x1] %v2606_v55  ;;  %4131 = vmatpush.msrb.mxu1 %v3602_v5  ;;  %v3601_v55 = vld [vmem:[%s8025_s2 + $0x240] sm:$0xff] }
 0x39f   : > { %2660 = vst [vmem:[#allocation2 + $0x149] sm:$0x1] %v2642_v49  ;;  %v3600_v49 = vld [vmem:[%s8025_s2 + $0x238] sm:$0xff]  ;;  %v2812_v3 = vld [vmem:[#allocation2 + $0xe2] sm:$0xff] }
 0x3a0   : > { %2625 = vst [vmem:[#allocation2 + $0x150] sm:$0x1] %v2607_v63  ;;  %3823 = vmatmul.f32.gmra.mxu2 %v2530_v62  ;;  %v2799_v62 = vld [vmem:[#allocation2 + $0x4a] sm:$0xff]  ;;  %4132 = vmatpush.msrb.mxu1 %v3601_v55  ;;  %v3597_v5 = vld [vmem:[%s8025_s2 + $0x220] sm:$0xff]  ;;  %v2876_v55 = vld [vmem:[#allocation2 + $0xf8] sm:$0xff] }
 0x3a1   : > { %2661 = vst [vmem:[#allocation2 + $0x161] sm:$0x1] %v2643_v8  ;;  %v2814_v51 = vld [vmem:[#allocation2 + $0xfa] sm:$0xff] }
 0x3a2   : > { %2626 = vst [vmem:[#allocation2 + $0x168] sm:$0x1] %v2608_v31  ;;  %4133 = vmatpush.msrb.mxu1 %v3600_v49 }
 0x3a3   : > { %2662 = vst [vmem:[#allocation2 + $0x179] sm:$0x1] %v2644_v17 }
 0x3a4   : > { %3698 = vmatmul.f32.gmra.mxu1 %v2858_v44  ;;  %2627 = vst [vmem:[#allocation2 + $0x180] sm:$0x1] %v2609_v14  ;;  %v2610_v44 = vld [vmem:[#allocation2 + $0x19a] sm:$0x1] }
 0x3a5   : > { %3927 = vmatmul.f32.gmra.mxu3 %v2797_v15  ;;  %2628 = vst [vmem:[#allocation2 + $0x198] sm:$0x1] %v2610_v44  ;;  %4134 = vmatpush.msrb.mxu1 %v3599_v46  ;;  %v2810_v15 = vld [vmem:[#allocation2 + $0xca] sm:$0xff]  ;;  %v2811_v44 = vld [vmem:[#allocation2 + $0xda] sm:$0xff] }
 0x3a6   : > { %4037 = vmatmul.f32.gmra.mxu0 %v2860_v30  ;;  %2663 = vst [vmem:[#allocation2 + $0x191] sm:$0x1] %v2645_v60  ;;  %v2874_v60 = vld [vmem:[#allocation2 + $0xe0] sm:$0xff] }
 0x3a8   : > { %3826 = vmatmul.f32.gmra.mxu2 %v2531_v16  ;;  %v2646_v16 = vld [vmem:[#allocation2 + $0x1a7] sm:$0x1] }
 0x3a9   : > { %2664 = vst [vmem:[#allocation2 + $0x1a9] sm:$0x1] %v2646_v16 }
 0x3ac   : > { %3701 = vmatmul.f32.gmra.mxu1 %v2859_v53  ;;  %v2871_v53 = vld [vmem:[#allocation2 + $0xc0] sm:$0xff] }
 0x3ad   : > { %3930 = vmatmul.f32.gmra.mxu3 %v2798_v56  ;;  %v3598_v56 = vld [vmem:[%s8025_s2 + $0x228] sm:$0xff] }
 0x3ae   : > { %4040 = vmatmul.f32.gmra.mxu0 %v2861_v37  ;;  %4135 = vmatpush.msrb.mxu1 %v3598_v56  ;;  %v3595_v56 = vld [vmem:[%s8025_s2 + $0x210] sm:$0xff] }
 0x3b0   : > { %3829 = vmatmul.f32.gmra.mxu2 %v2532_v27  ;;  %v2801_v27 = vld [vmem:[#allocation2 + $0x62] sm:$0xff]  ;;  %4136 = vmatpush.msrb.mxu1 %v3597_v5 }
 0x3b4   : > { %3704 = vmatmul.f32.gmra.mxu1 %v2860_v30  ;;  %v2873_v30 = vld [vmem:[#allocation2 + $0xd8] sm:$0xff] }
 0x3b5   : > { %3933 = vmatmul.f32.gmra.mxu3 %v2799_v62 }
 0x3b6   : > { %4043 = vmatmul.f32.gmra.mxu0 %v2862_v36 }
 0x3b8   : > { %3832 = vmatmul.f32.gmra.mxu2 %v2533_v22  ;;  %v2865_v22 = vld [vmem:[#allocation2 + $0x78] sm:$0xff] }
 0x3bc   : > { %3707 = vmatmul.f32.gmra.mxu1 %v2861_v37 }
 0x3bd   : > { %3936 = vmatmul.f32.gmra.mxu3 %v2800_v10 }
 0x3be   : > { %4046 = vmatmul.f32.gmra.mxu0 %v2863_v40 }
 0x3c0   : > { %3835 = vmatmul.f32.gmra.mxu2 %v2534_v45  ;;  %v2866_v45 = vld [vmem:[#allocation2 + $0x80] sm:$0xff] }
 0x3c4   : > { %3710 = vmatmul.f32.gmra.mxu1 %v2862_v36 }
 0x3c5   : > { %3939 = vmatmul.f32.gmra.mxu3 %v2801_v27 }
 0x3c6   : > { %4049 = vmatmul.f32.gmra.mxu0 %v2864_v24 }
 0x3c8   : > { %3838 = vmatmul.f32.gmra.mxu2 %v2535_v41  ;;  %v2867_v41 = vld [vmem:[#allocation2 + $0x90] sm:$0xff] }
 0x3cc   : > { %3713 = vmatmul.f32.gmra.mxu1 %v2863_v40 }
 0x3cd   : > { %3942 = vmatmul.f32.gmra.mxu3 %v2802_v57 }
 0x3ce   : > { %4052 = vmatmul.f32.gmra.mxu0 %v2865_v22 }
 0x3d0   : > { %3841 = vmatmul.f32.gmra.mxu2 %v2536_v23  ;;  %v2868_v23 = vld [vmem:[#allocation2 + $0x98] sm:$0xff] }
 0x3d4   : > { %3716 = vmatmul.f32.gmra.mxu1 %v2864_v24 }
 0x3d5   : > { %3945 = vmatmul.f32.gmra.mxu3 %v2803_v54 }
 0x3d6   : > { %4055 = vmatmul.f32.gmra.mxu0 %v2866_v45 }
 0x3d8   : > { %3844 = vmatmul.f32.gmra.mxu2 %v2537_v18  ;;  %v2869_v18 = vld [vmem:[#allocation2 + $0xa8] sm:$0xff] }
 0x3dc   : > { %3719 = vmatmul.f32.gmra.mxu1 %v2865_v22 }
 0x3dd   : > { %3948 = vmatmul.f32.gmra.mxu3 %v2804_v38 }
 0x3de   : > { %4058 = vmatmul.f32.gmra.mxu0 %v2867_v41 }
 0x3e0   : > { %3847 = vmatmul.f32.gmra.mxu2 %v2538_v0  ;;  %v2870_v0 = vld [vmem:[#allocation2 + $0xb0] sm:$0xff] }
 0x3e4   : > { %3722 = vmatmul.f32.gmra.mxu1 %v2866_v45 }
 0x3e5   : > { %3951 = vmatmul.f32.gmra.mxu3 %v2805_v58 }
 0x3e6   : > { %4061 = vmatmul.f32.gmra.mxu0 %v2868_v23 }
 0x3e8   : > { %3850 = vmatmul.f32.gmra.mxu2 %v2539_v6  ;;  %v2808_v6 = vld [vmem:[#allocation2 + $0xb2] sm:$0xff] }
 0x3eb   : > { %v3803_v29 = vpop.f32.mrf.mxu2 }
 0x3ec   : > { %3725 = vmatmul.f32.gmra.mxu1 %v2867_v41  ;;  %v2813_v41 = vld [vmem:[#allocation2 + $0xf2] sm:$0xff] }
 0x3ed   : > { %3954 = vmatmul.f32.gmra.mxu3 %v2806_v19 }
 0x3ee   : > { %4064 = vmatmul.f32.gmra.mxu0 %v2869_v18 }
 0x3f0   : > { %3853 = vmatmul.f32.gmra.mxu2 %v2540_v25  ;;  %v2809_v25 = vld [vmem:[#allocation2 + $0xc2] sm:$0xff] }
 0x3f3   : > { %v3806_v11 = vpop.f32.mrf.mxu2 }
 0x3f4   : > { %3728 = vmatmul.f32.gmra.mxu1 %v2868_v23 }
 0x3f5   : > { %3957 = vmatmul.f32.gmra.mxu3 %v2807_v34 }
 0x3f6   : > { %4067 = vmatmul.f32.gmra.mxu0 %v2870_v0 }
 0x3f8   : > { %3856 = vmatmul.f32.gmra.mxu2 %v2541_v52  ;;  %v3916_v52 = vpop.f32.mrf.mxu3 }
 0x3fb   : > { %v3809_v63 = vpop.f32.mrf.mxu2 }
 0x3fc   : > { %3731 = vmatmul.f32.gmra.mxu1 %v2869_v18 }
 0x3fd   : > { %3960 = vmatmul.f32.gmra.mxu3 %v2808_v6  ;;  %v3596_v6 = vld [vmem:[%s8025_s2 + $0x218] sm:$0xff] }
 0x3fe   : > { %4070 = vmatmul.f32.gmra.mxu0 %v2871_v53  ;;  %4137 = vmatpush.msrb.mxu1 %v3596_v6  ;;  %v2819_v6 = vld [vmem:[#allocation2 + $0x13a] sm:$0xff] }
 0x400   : > { %3859 = vmatmul.f32.gmra.mxu2 %v2542_v59  ;;  %4138 = vmatpush.msrb.mxu1 %v3595_v56 }
 0x403   : > { %v3812_v20 = vpop.f32.mrf.mxu2 }
 0x404   : > { %3734 = vmatmul.f32.gmra.mxu1 %v2870_v0 }
 0x405   : > { %3963 = vmatmul.f32.gmra.mxu3 %v2809_v25  ;;  %v2815_v25 = vld [vmem:[#allocation2 + $0x10a] sm:$0xff] }
 0x406   : > { %4073 = vmatmul.f32.gmra.mxu0 %v2872_v39 }
 0x408   : > { %3862 = vmatmul.f32.gmra.mxu2 %v2543_v48 }
 0x409   : > { %v3690_v8 = vpop.f32.mrf.mxu1 }
 0x40a   : > { %v3804_v31 = vadd.f32 %v3803_v29, %v3690_v8 }
 0x40b   : > { %v4029_v17 = vpop.f32.mrf.mxu0  ;;  %v3815_v1 = vpop.f32.mrf.mxu2 }
 0x40c   : > { %v3917_v14 = vadd.f32 %v3916_v52, %v3804_v31  ;;  %3737 = vmatmul.f32.gmra.mxu1 %v2871_v53 }
 0x40d   : > { %3966 = vmatmul.f32.gmra.mxu3 %v2810_v15  ;;  %v2879_v15 = vld [vmem:[#allocation2 + $0x120] sm:$0xff] }
 0x40e   : > { %v7067_v59 = vadd.f32 %v4029_v17, %v3917_v14  ;;  %4076 = vmatmul.f32.gmra.mxu0 %v2873_v30 }
 0x410   : > { %v3919_v37 = vpop.f32.mrf.mxu3  ;;  %3865 = vmatmul.f32.gmra.mxu2 %v2544_v42  ;;  %v2875_v42 = vld [vmem:[#allocation2 + $0xf0] sm:$0xff] }
 0x411   : > { %v3693_v7 = vpop.f32.mrf.mxu1 }
 0x412   : > { %v3807_v62 = vadd.f32 %v3806_v11, %v3693_v7 }
 0x413   : > { %v4032_v13 = vpop.f32.mrf.mxu0  ;;  %v3818_v36 = vpop.f32.mrf.mxu2 }
 0x414   : > { %v3920_v48 = vadd.f32 %v3919_v37, %v3807_v62  ;;  %3740 = vmatmul.f32.gmra.mxu1 %v2872_v39  ;;  %v2878_v39 = vld [vmem:[#allocation2 + $0x110] sm:$0xff] }
 0x415   : > { %3969 = vmatmul.f32.gmra.mxu3 %v2811_v44 }
 0x416   : > { %v7074_v16 = vadd.f32 %v4032_v13, %v3920_v48  ;;  %4079 = vmatmul.f32.gmra.mxu0 %v2874_v60  ;;  %v2817_v13 = vld [vmem:[#allocation2 + $0x122] sm:$0xff] }
 0x417   : > { %v2880_v48 = vld [vmem:[#allocation2 + $0x128] sm:$0xff] }
 0x418   : > { %v3922_v10 = vpop.f32.mrf.mxu3  ;;  %3868 = vmatmul.f32.gmra.mxu2 %v2545_v32 }
 0x419   : > { %v3696_v40 = vpop.f32.mrf.mxu1 }
 0x41a   : > { %v3810_v50 = vadd.f32 %v3809_v63, %v3696_v40  ;;  %v3639_v40 = vld [vmem:[%s8025_s2 + $0x370] sm:$0xff] }
 0x41b   : > { %v4035_v27 = vpop.f32.mrf.mxu0  ;;  %v3821_v57 = vpop.f32.mrf.mxu2  ;;  %4352 = vmatpush.msra.mxu3 %v3639_v40  ;;  %v3613_v40 = vld [vmem:[%s8025_s2 + $0x2a0] sm:$0xff] }
 0x41c   : > { %v3923_v24 = vadd.f32 %v3922_v10, %v3810_v50  ;;  %3743 = vmatmul.f32.gmra.mxu1 %v2873_v30  ;;  %v3623_v10 = vld [vmem:[%s8025_s2 + $0x2f0] sm:$0xff] }
 0x41d   : > { %3972 = vmatmul.f32.gmra.mxu3 %v2812_v3 }
 0x41e   : > { %v7078_v22 = vadd.f32 %v4035_v27, %v3923_v24  ;;  %4082 = vmatmul.f32.gmra.mxu0 %v2875_v42  ;;  %4353 = vmatpush.msra.mxu3 %v3638_v28 }
 0x420   : > { %v3925_v54 = vpop.f32.mrf.mxu3  ;;  %3871 = vmatmul.f32.gmra.mxu2 %v2546_v12  ;;  %v2877_v12 = vld [vmem:[#allocation2 + $0x108] sm:$0xff] }
 0x421   : > { %v3699_v45 = vpop.f32.mrf.mxu1 }
 0x422   : > { %v3813_v38 = vadd.f32 %v3812_v20, %v3699_v45  ;;  %v3622_v45 = vld [vmem:[%s8025_s2 + $0x2e8] sm:$0xff] }
 0x423   : > { %v4038_v35 = vpop.f32.mrf.mxu0  ;;  %v3824_v58 = vpop.f32.mrf.mxu2 }
 0x424   : > { %v3926_v32 = vadd.f32 %v3925_v54, %v3813_v38  ;;  %3746 = vmatmul.f32.gmra.mxu1 %v2874_v60  ;;  %v3637_v38 = vld [vmem:[%s8025_s2 + $0x360] sm:$0xff] }
 0x425   : > { %3975 = vmatmul.f32.gmra.mxu3 %v2813_v41  ;;  %v3620_v41 = vld [vmem:[%s8025_s2 + $0x2d8] sm:$0xff] }
 0x426   : > { %v7085_v23 = vadd.f32 %v4038_v35, %v3926_v32  ;;  %4085 = vmatmul.f32.gmra.mxu0 %v2876_v55  ;;  %v3594_v35 = vld [vmem:[%s8025_s2 + $0x208] sm:$0xff]  ;;  %4354 = vmatpush.msra.mxu3 %v3637_v38 }
 0x427   : > { %4139 = vmatpush.msrb.mxu1 %v3594_v35  ;;  %v3628_v35 = vld [vmem:[%s8025_s2 + $0x318] sm:$0xff] }
 0x428   : > { %v3928_v19 = vpop.f32.mrf.mxu3  ;;  %3874 = vmatmul.f32.gmra.mxu2 %v2547_v2 }
 0x429   : > { %v3702_v18 = vpop.f32.mrf.mxu1 }
 0x42a   : > { %v3816_v29 = vadd.f32 %v3815_v1, %v3702_v18  ;;  %v2758_v18 = vld [vmem:[#allocation2 + $0x159] sm:$0xff] }
 0x42b   : > { %v4041_v49 = vpop.f32.mrf.mxu0  ;;  %v3827_v0 = vpop.f32.mrf.mxu2 }
 0x42c   : > { %v3929_v34 = vadd.f32 %v3928_v19, %v3816_v29  ;;  %3749 = vmatmul.f32.gmra.mxu1 %v2875_v42  ;;  %v2818_v42 = vld [vmem:[#allocation2 + $0x12a] sm:$0xff] }
 0x42d   : > { %3978 = vmatmul.f32.gmra.mxu3 %v2814_v51  ;;  %v3655_v29 = vld [vmem:[%s8025_s2 + $0x3f0] sm:$0xff] }
 0x42e   : > { %v7089_v11 = vadd.f32 %v4041_v49, %v3929_v34  ;;  %4088 = vmatmul.f32.gmra.mxu0 %v2877_v12  ;;  %v3619_v34 = vld [vmem:[%s8025_s2 + $0x2d0] sm:$0xff] }
 0x430   : > { %v3931_v53 = vpop.f32.mrf.mxu3  ;;  %3877 = vmatmul.f32.gmra.mxu2 %v2548_v33  ;;  %v2816_v33 = vld [vmem:[#allocation2 + $0x112] sm:$0xff] }
 0x431   : > { %v3705_v63 = vpop.f32.mrf.mxu1 }
 0x432   : > { %v3819_v46 = vadd.f32 %v3818_v36, %v3705_v63  ;;  %v3624_v36 = vld [vmem:[%s8025_s2 + $0x2f8] sm:$0xff] }
 0x433   : > { %v4044_v26 = vpop.f32.mrf.mxu0  ;;  %v7096_v20 = vpop.f32.mrf.mxu2  ;;  %4238 = vmatpush.msra.mxu2 %v3624_v36 }
 0x434   : > { %v3932_v2 = vadd.f32 %v3931_v53, %v3819_v46  ;;  %3752 = vmatmul.f32.gmra.mxu1 %v2876_v55  ;;  %v3636_v55 = vld [vmem:[%s8025_s2 + $0x358] sm:$0xff]  ;;  %v7170_v53 = vld [vmem:[#allocation2 + $0x140] sm:$0xff] }
 0x435   : > { %3981 = vmatmul.f32.gmra.mxu3 %v2815_v25  ;;  %4239 = vmatpush.msra.mxu2 %v3623_v10  ;;  %v3654_v25 = vld [vmem:[%s8025_s2 + $0x3e8] sm:$0xff] }
 0x436   : > { %v7098_v52 = vadd.f32 %v4044_v26, %v3932_v2  ;;  %4091 = vmatmul.f32.gmra.mxu0 %v2878_v39  ;;  %4355 = vmatpush.msra.mxu3 %v3636_v55  ;;  %v3618_v26 = vld [vmem:[%s8025_s2 + $0x2c8] sm:$0xff]  ;;  %v3647_v55 = vld [vmem:[%s8025_s2 + $0x3b0] sm:$0xff] }
 0x437   : > { %4240 = vmatpush.msra.mxu2 %v3622_v45  ;;  %v3634_v2 = vld [vmem:[%s8025_s2 + $0x348] sm:$0xff]  ;;  %v3612_v45 = vld [vmem:[%s8025_s2 + $0x298] sm:$0xff] }
 0x438   : > { %v3934_v8 = vpop.f32.mrf.mxu3  ;;  %3880 = vmatmul.f32.gmra.mxu2 %v2549_v43  ;;  %v3650_v10 = vld [vmem:[%s8025_s2 + $0x3c8] sm:$0xff] }
 0x439   : > { %v3708_v31 = vpop.f32.mrf.mxu1 }
 0x43a   : > { %v3822_v17 = vadd.f32 %v3821_v57, %v3708_v31  ;;  %v7129_v57 = vld [vmem:[#allocation2 + $0x138] sm:$0xff] }
 0x43b   : > { %v4047_v14 = vpop.f32.mrf.mxu0  ;;  %v7102_v30 = vpop.f32.mrf.mxu2 }
 0x43c   : > { %v3935_v9 = vadd.f32 %v3934_v8, %v3822_v17  ;;  %3755 = vmatmul.f32.gmra.mxu1 %v2877_v12  ;;  %v3635_v12 = vld [vmem:[%s8025_s2 + $0x350] sm:$0xff]  ;;  %v3653_v8 = vld [vmem:[%s8025_s2 + $0x3e0] sm:$0xff]  ;;  %v3616_v17 = vld [vmem:[%s8025_s2 + $0x2b8] sm:$0xff] }
 0x43d   : > { %3984 = vmatmul.f32.gmra.mxu3 %v2816_v33  ;;  %v2759_v33 = vld [vmem:[#allocation2 + $0x169] sm:$0xff] }
 0x43e   : > { %v7104_v1 = vadd.f32 %v4047_v14, %v3935_v9  ;;  %4094 = vmatmul.f32.gmra.mxu0 %v2879_v15  ;;  %4356 = vmatpush.msra.mxu3 %v3635_v12  ;;  %v3652_v14 = vld [vmem:[%s8025_s2 + $0x3d8] sm:$0xff] }
 0x440   : > { %v3937_v37 = vpop.f32.mrf.mxu3  ;;  %3883 = vmatmul.f32.gmra.mxu2 %v2550_v21  ;;  %4357 = vmatpush.msra.mxu3 %v3634_v2 }
 0x441   : > { %v3711_v7 = vpop.f32.mrf.mxu1 }
 0x442   : > { %v3825_v47 = vadd.f32 %v3824_v58, %v3711_v7  ;;  %v3656_v58 = vld [vmem:[%s8025_s2 + $0x3f8] sm:$0xff] }
 0x443   : > { %v4050_v43 = vpop.f32.mrf.mxu0  ;;  %v7111_v44 = vpop.f32.mrf.mxu2  ;;  %4464 = vmatpush.msra.mxu0 %v3656_v58  ;;  %v2884_v58 = vld [vmem:[#allocation2 + $0x158] sm:$0xff] }
 0x444   : > { %v3938_v62 = vadd.f32 %v3937_v37, %v3825_v47  ;;  %3758 = vmatmul.f32.gmra.mxu1 %v2878_v39  ;;  %v3617_v39 = vld [vmem:[%s8025_s2 + $0x2c0] sm:$0xff]  ;;  %v3615_v37 = vld [vmem:[%s8025_s2 + $0x2b0] sm:$0xff] }
 0x445   : > { %3987 = vmatmul.f32.gmra.mxu3 %v2817_v13  ;;  %4465 = vmatpush.msra.mxu0 %v3655_v29  ;;  %v3631_v47 = vld [vmem:[%s8025_s2 + $0x330] sm:$0xff] }
 0x446   : > { %v7113_v60 = vadd.f32 %v4050_v43, %v3938_v62  ;;  %4097 = vmatmul.f32.gmra.mxu0 %v2880_v48  ;;  %v2820_v62 = vld [vmem:[#allocation2 + $0x142] sm:$0xff]  ;;  %v7215_v13 = vld [vmem:[#allocation2 + $0x150] sm:$0xff] }
 0x447   : > { %4466 = vmatpush.msra.mxu0 %v3654_v25 }
 0x448   : > { %v3940_v21 = vpop.f32.mrf.mxu3  ;;  %3886 = vmatmul.f32.gmra.mxu2 %v2551_v4  ;;  %v3621_v4 = vld [vmem:[%s8025_s2 + $0x2e0] sm:$0xff] }
 0x449   : > { %v3714_v50 = vpop.f32.mrf.mxu1  ;;  %4241 = vmatpush.msra.mxu2 %v3621_v4  ;;  %4467 = vmatpush.msra.mxu0 %v3653_v8  ;;  %v3648_v4 = vld [vmem:[%s8025_s2 + $0x3b8] sm:$0xff] }
 0x44a   : > { %v3828_v27 = vadd.f32 %v3827_v0, %v3714_v50  ;;  %v3629_v50 = vld [vmem:[%s8025_s2 + $0x320] sm:$0xff] }
 0x44b   : > { %v4053_v24 = vpop.f32.mrf.mxu0  ;;  %v7131_v5 = vpop.f32.mrf.mxu2  ;;  %4242 = vmatpush.msra.mxu2 %v3620_v41  ;;  %4468 = vmatpush.msra.mxu0 %v3652_v14  ;;  %v2821_v41 = vld [vmem:[#allocation2 + $0x152] sm:$0xff]  ;;  %v2985_v8 = vld [vmem:[#allocation2 + $0x1a] sm:$0xff] }
 0x44c   : > { %v3941_v3 = vadd.f32 %v3940_v21, %v3828_v27  ;;  %3761 = vmatmul.f32.gmra.mxu1 %v2879_v15  ;;  %v3632_v15 = vld [vmem:[%s8025_s2 + $0x338] sm:$0xff]  ;;  %v3630_v21 = vld [vmem:[%s8025_s2 + $0x328] sm:$0xff] }
 0x44d   : > { %3990 = vmatmul.f32.gmra.mxu3 %v2818_v42  ;;  %4243 = vmatpush.msra.mxu2 %v3619_v34  ;;  %v3646_v34 = vld [vmem:[%s8025_s2 + $0x3a8] sm:$0xff] }
 0x44e   : > { %v7133_v54 = vadd.f32 %v4053_v24, %v3941_v3  ;;  %4100 = vmatmul.f32.gmra.mxu0 %v7129_v57  ;;  %v3649_v24 = vld [vmem:[%s8025_s2 + $0x3c0] sm:$0xff] }
 0x44f   : > { %4244 = vmatpush.msra.mxu2 %v3618_v26  ;;  %v3593_v3 = vld [vmem:[%s8025_s2 + $0x200] sm:$0xff] }
 0x450   : > { %v3943_v32 = vpop.f32.mrf.mxu3  ;;  %3889 = vmatmul.f32.gmra.mxu2 %v2758_v18  ;;  %4140 = vmatpush.msrb.mxu1 %v3593_v3  ;;  %v3627_v18 = vld [vmem:[%s8025_s2 + $0x310] sm:$0xff]  ;;  %v3625_v26 = vld [vmem:[%s8025_s2 + $0x300] sm:$0xff] }
 0x451   : > { %v3717_v19 = vpop.f32.mrf.mxu1  ;;  %4245 = vmatpush.msra.mxu2 %v3617_v39  ;;  %v2824_v3 = vld [vmem:[#allocation2 + $0x172] sm:$0xff] }
 0x452   : > { %v3831_v49 = vadd.f32 %v7096_v20, %v3717_v19  ;;  %v3633_v20 = vld [vmem:[%s8025_s2 + $0x340] sm:$0xff] }
 0x453   : > { %v4056_v51 = vpop.f32.mrf.mxu0  ;;  %v7172_v63 = vpop.f32.mrf.mxu2  ;;  %4358 = vmatpush.msra.mxu3 %v3633_v20  ;;  %4246 = vmatpush.msra.mxu2 %v3616_v17  ;;  %v2822_v20 = vld [vmem:[#allocation2 + $0x15a] sm:$0xff]  ;;  %v2885_v17 = vld [vmem:[#allocation2 + $0x168] sm:$0xff] }
 0x454   : > { %v3944_v0 = vadd.f32 %v3943_v32, %v3831_v49  ;;  %3764 = vmatmul.f32.gmra.mxu1 %v2880_v48  ;;  %v3610_v49 = vld [vmem:[%s8025_s2 + $0x288] sm:$0xff] }
 0x455   : > { %3993 = vmatmul.f32.gmra.mxu3 %v2819_v6  ;;  %4247 = vmatpush.msra.mxu2 %v3615_v37  ;;  %v3645_v6 = vld [vmem:[%s8025_s2 + $0x3a0] sm:$0xff] }
 0x456   : > { %v7174_v46 = vadd.f32 %v4056_v51, %v3944_v0  ;;  %4103 = vmatmul.f32.gmra.mxu0 %v7170_v53  ;;  %4359 = vmatpush.msra.mxu3 %v3632_v15  ;;  %v3626_v51 = vld [vmem:[%s8025_s2 + $0x308] sm:$0xff]  ;;  %v3609_v0 = vld [vmem:[%s8025_s2 + $0x280] sm:$0xff] }
 0x457   : > { %4248 = vmatpush.msra.mxu2 %v3614_v61  ;;  %v2986_v61 = vld [vmem:[#allocation2 + $0x22] sm:$0xff] }
 0x458   : > { %v3946_v31 = vpop.f32.mrf.mxu3  ;;  %3892 = vmatmul.f32.gmra.mxu2 %v2759_v33  ;;  %4360 = vmatpush.msra.mxu3 %v3631_v47  ;;  %v3672_v33 = vld [vmem:[%s8025_s2 + $0x478] sm:$0xff]  ;;  %v3641_v47 = vld [vmem:[%s8025_s2 + $0x380] sm:$0xff] }
 0x459   : > { %v3720_v9 = vpop.f32.mrf.mxu1  ;;  %4249 = vmatpush.msra.mxu2 %v3613_v40  ;;  %4577 = vmatpush.msra.mxu1 %v3672_v33 }
 0x45a   : > { %v3834_v56 = vadd.f32 %v7102_v30, %v3720_v9  ;;  %v3651_v30 = vld [vmem:[%s8025_s2 + $0x3d0] sm:$0xff]  ;;  %4361 = vmatpush.msra.mxu3 %v3630_v21 }
 0x45b   : > { %v4059_v7 = vpop.f32.mrf.mxu0  ;;  %v7217_v48 = vpop.f32.mrf.mxu2  ;;  %4469 = vmatpush.msra.mxu0 %v3651_v30  ;;  %4250 = vmatpush.msra.mxu2 %v3612_v45  ;;  %v2823_v30 = vld [vmem:[#allocation2 + $0x16a] sm:$0xff] }
 0x45c   : > { %v3947_v43 = vadd.f32 %v3946_v31, %v3834_v56  ;;  %3767 = vmatmul.f32.gmra.mxu1 %v7129_v57  ;;  %v2760_v57 = vld [vmem:[#allocation2 + $0x171] sm:$0xff]  ;;  %4362 = vmatpush.msra.mxu3 %v3629_v50  ;;  %v3642_v56 = vld [vmem:[%s8025_s2 + $0x388] sm:$0xff] }
 0x45d   : > { %3996 = vmatmul.f32.gmra.mxu3 %v2820_v62  ;;  %4470 = vmatpush.msra.mxu0 %v3650_v10  ;;  %v3644_v31 = vld [vmem:[%s8025_s2 + $0x398] sm:$0xff] }
 0x45e   : > { %v7219_v36 = vadd.f32 %v4059_v7, %v3947_v43  ;;  %4106 = vmatmul.f32.gmra.mxu0 %v7215_v13  ;;  %4363 = vmatpush.msra.mxu3 %v3628_v35 }
 0x45f   : > { %4471 = vmatpush.msra.mxu0 %v3649_v24 }
 0x460   : > { %v3949_v27 = vpop.f32.mrf.mxu3  ;;  %3895 = vmatmul.f32.gmra.mxu2 %v2760_v57  ;;  %4364 = vmatpush.msra.mxu3 %v3627_v18  ;;  %v7310_v57 = vld [vmem:[#allocation2 + $0x32] sm:$0xff] }
 0x461   : > { %v3723_v42 = vpop.f32.mrf.mxu1  ;;  %4472 = vmatpush.msra.mxu0 %v3648_v4 }
 0x462   : > { %v3837_v28 = vadd.f32 %v7111_v44, %v3723_v42  ;;  %v3611_v44 = vld [vmem:[%s8025_s2 + $0x290] sm:$0xff]  ;;  %4365 = vmatpush.msra.mxu3 %v3626_v51  ;;  %v7308_v42 = vld [vmem:[#allocation2 + $0x180] sm:$0xff] }
 0x463   : > { %v4062_v38 = vpop.f32.mrf.mxu0  ;;  %v7260_v19 = vpop.f32.mrf.mxu2  ;;  %4251 = vmatpush.msra.mxu2 %v3611_v44  ;;  %4473 = vmatpush.msra.mxu0 %v3647_v55  ;;  %v3049_v44 = vld [vmem:[#allocation2 + $0x30] sm:$0xff]  ;;  %v7320_v55 = vld [vmem:[#allocation2 + $0x188] sm:$0xff] }
 0x464   : > { %v3950_v32 = vadd.f32 %v3949_v27, %v3837_v28  ;;  %3770 = vmatmul.f32.gmra.mxu1 %v7170_v53  ;;  %4366 = vmatpush.msra.mxu3 %v3625_v26  ;;  %v3113_v26 = vld [vmem:[#allocation2 + $0x31] sm:$0xff] }
 0x465   : > { %3999 = vmatmul.f32.gmra.mxu3 %v2821_v41  ;;  %4252 = vmatpush.msra.mxu2 %v3610_v49 }
 0x466   : > { %v7265_v29 = vadd.f32 %v4062_v38, %v3950_v32  ;;  %4109 = vmatmul.f32.gmra.mxu0 %v2884_v58 }
 0x467   : > { %4474 = vmatpush.msra.mxu0 %v3646_v34  ;;  %4253 = vmatpush.msra.mxu2 %v3609_v0  ;;  %v2921_v0 = vld [vmem:[#allocation2 + $0x19] sm:$0xff] }
 0x468   : > { %v3952_v12 = vpop.f32.mrf.mxu3  ;;  %4254 = vmatmul.f32.vlgmr.msra.gmra.mxu2 %v2985_v8 }
 0x469   : > { %v3726_v53 = vpop.f32.mrf.mxu1  ;;  %4475 = vmatpush.msra.mxu0 %v3645_v6 }
 0x46a   : > { %v3840_v2 = vadd.f32 %v7131_v5, %v3726_v53  ;;  %v3643_v5 = vld [vmem:[%s8025_s2 + $0x390] sm:$0xff]  ;;  %v3050_v53 = vld [vmem:[#allocation2 + $0x38] sm:$0xff] }
 0x46b   : > { %v4065_v25 = vpop.f32.mrf.mxu0  ;;  %v3851_v14 = vpop.f32.mrf.mxu2  ;;  %4476 = vmatpush.msra.mxu0 %v3644_v31 }
 0x46c   : > { %v3953_v39 = vadd.f32 %v3952_v12, %v3840_v2  ;;  %3773 = vmatmul.f32.gmra.mxu1 %v7215_v13  ;;  %v2886_v13 = vld [vmem:[#allocation2 + $0x170] sm:$0xff] }
 0x46d   : > { %4002 = vmatmul.f32.gmra.mxu3 %v2822_v20  ;;  %4477 = vmatpush.msra.mxu0 %v3643_v5  ;;  %v7328_v2 = vld [vmem:[#allocation2 + $0x4a] sm:$0xff]  ;;  %v2922_v5 = vld [vmem:[#allocation2 + $0x21] sm:$0xff] }
 0x46e   : > { %v7290_v9 = vadd.f32 %v4065_v25, %v3953_v39  ;;  %4112 = vmatmul.f32.gmra.mxu0 %v2885_v17  ;;  %v3670_v20 = vld [vmem:[%s8025_s2 + $0x468] sm:$0xff] }
 0x46f   : > { %4478 = vmatpush.msra.mxu0 %v3642_v56  ;;  %v3114_v56 = vld [vmem:[#allocation2 + $0x39] sm:$0xff] }
 0x470   : > { %v3955_v15 = vpop.f32.mrf.mxu3  ;;  %4257 = vmatmul.f32.gmra.mxu2 %v2986_v61 }
 0x471   : > { %v3729_v37 = vpop.f32.mrf.mxu1  ;;  %4479 = vmatpush.msra.mxu0 %v3641_v47 }
 0x472   : > { %v3843_v7 = vadd.f32 %v7172_v63, %v3729_v37  ;;  %v7336_v37 = vld [vmem:[#allocation2 + $0x52] sm:$0xff] }
 0x473   : > { %v4068_v43 = vpop.f32.mrf.mxu0  ;;  %v3854_v21 = vpop.f32.mrf.mxu2 }
 0x474   : > { %v3956_v62 = vadd.f32 %v3955_v15, %v3843_v7  ;;  %3776 = vmatmul.f32.gmra.mxu1 %v2884_v58  ;;  %v7322_v58 = vld [vmem:[#allocation2 + $0x3a] sm:$0xff]  ;;  %v3051_v15 = vld [vmem:[#allocation2 + $0x48] sm:$0xff] }
 0x475   : > { %4005 = vmatmul.f32.gmra.mxu3 %v2823_v30 }
 0x476   : > { %v7305_v10 = vadd.f32 %v4068_v43, %v3956_v62  ;;  %4115 = vmatmul.f32.gmra.mxu0 %v2886_v13 }
 0x478   : > { %v3958_v40 = vpop.f32.mrf.mxu3  ;;  %4260 = vmatmul.f32.gmra.mxu2 %v7310_v57 }
 0x479   : > { %v3732_v63 = vpop.f32.mrf.mxu1 }
 0x47a   : > { %v3846_v50 = vadd.f32 %v7217_v48, %v3732_v63  ;;  %v3671_v48 = vld [vmem:[%s8025_s2 + $0x470] sm:$0xff]  ;;  %v7341_v63 = vld [vmem:[#allocation2 + $0x62] sm:$0xff] }
 0x47b   : > { %v4071_v27 = vpop.f32.mrf.mxu0  ;;  %v3857_v45 = vpop.f32.mrf.mxu2  ;;  %4578 = vmatpush.msra.mxu1 %v3671_v48 }
 0x47c   : > { %v3959_v24 = vadd.f32 %v3958_v40, %v3846_v50  ;;  %3779 = vmatmul.f32.gmra.mxu1 %v2885_v17  ;;  %v3115_v40 = vld [vmem:[#allocation2 + $0x49] sm:$0xff] }
 0x47d   : > { %4008 = vmatmul.f32.gmra.mxu3 %v2824_v3  ;;  %4579 = vmatpush.msra.mxu1 %v3670_v20 }
 0x47e   : > { %v7312_v28 = vadd.f32 %v4071_v27, %v3959_v24  ;;  %4118 = vmatmul.f32.gmra.mxu0 %v7308_v42  ;;  %v3669_v24 = vld [vmem:[%s8025_s2 + $0x460] sm:$0xff] }
 0x47f   : > { %4580 = vmatpush.msra.mxu1 %v3669_v24 }
 0x480   : > { %v3961_v4 = vpop.f32.mrf.mxu3  ;;  %4263 = vmatmul.f32.gmra.mxu2 %v7322_v58 }
 0x481   : > { %v3735_v38 = vpop.f32.mrf.mxu1 }
 0x482   : > { %v3849_v35 = vadd.f32 %v7260_v19, %v3735_v38 }
 0x483   : > { %v4074_v32 = vpop.f32.mrf.mxu0  ;;  %v3860_v18 = vpop.f32.mrf.mxu2 }
 0x484   : > { %v3962_v41 = vadd.f32 %v3961_v4, %v3849_v35  ;;  %3782 = vmatmul.f32.gmra.mxu1 %v2886_v13  ;;  %v3053_v35 = vld [vmem:[#allocation2 + $0x60] sm:$0xff] }
 0x485   : > { %4367 = vmatmul.f32.vlgmr.msra.gmra.mxu3 %v3049_v44 }
 0x486   : > { %v7324_v49 = vadd.f32 %v4074_v32, %v3962_v41  ;;  %4121 = vmatmul.f32.gmra.mxu0 %v7320_v55  ;;  %v3116_v32 = vld [vmem:[#allocation2 + $0x51] sm:$0xff] }
 0x487   : > { %v7349_v41 = vld [vmem:[#allocation2 + $0x6a] sm:$0xff] }
 0x488   : > { %v3964_v34 = vpop.f32.mrf.mxu3  ;;  %4266 = vmatmul.f32.gmra.mxu2 %v7328_v2 }
 0x489   : > { %v3738_v51 = vpop.f32.mrf.mxu1 }
 0x48a   : > { %v3852_v12 = vadd.f32 %v3851_v14, %v3738_v51 }
 0x48b   : > { %v4077_v19 = vpop.f32.mrf.mxu0  ;;  %v3863_v25 = vpop.f32.mrf.mxu2 }
 0x48c   : > { %v3965_v6 = vadd.f32 %v3964_v34, %v3852_v12  ;;  %4141 = vmatmul.f32.vlgmr.msrb.gmra.mxu1 %v2921_v0 }
 0x48d   : > { %4370 = vmatmul.f32.gmra.mxu3 %v3050_v53  ;;  %v3117_v53 = vld [vmem:[#allocation2 + $0x61] sm:$0xff] }
 0x48e   : > { %v7330_v39 = vadd.f32 %v4077_v19, %v3965_v6  ;;  %4480 = vmatmul.f32.vlgmr.msra.gmra.mxu0 %v3113_v26 }
 0x490   : > { %v3967_v8 = vpop.f32.mrf.mxu3  ;;  %4269 = vmatmul.f32.gmra.mxu2 %v7336_v37 }
 0x491   : > { %v3741_v31 = vpop.f32.mrf.mxu1 }
 0x492   : > { %v3855_v17 = vadd.f32 %v3854_v21, %v3741_v31  ;;  %v3052_v21 = vld [vmem:[#allocation2 + $0x50] sm:$0xff]  ;;  %v3668_v31 = vld [vmem:[%s8025_s2 + $0x458] sm:$0xff] }
 0x493   : > { %v4080_v14 = vpop.f32.mrf.mxu0  ;;  %v3866_v7 = vpop.f32.mrf.mxu2  ;;  %4581 = vmatpush.msra.mxu1 %v3668_v31 }
 0x494   : > { %v3968_v33 = vadd.f32 %v3967_v8, %v3855_v17  ;;  %4144 = vmatmul.f32.gmra.mxu1 %v2922_v5 }
 0x495   : > { %4373 = vmatmul.f32.gmra.mxu3 %v3051_v15  ;;  %v3055_v15 = vld [vmem:[#allocation2 + $0x78] sm:$0xff] }
 0x496   : > { %v7338_v47 = vadd.f32 %v4080_v14, %v3968_v33  ;;  %4483 = vmatmul.f32.gmra.mxu0 %v3114_v56 }
 0x498   : > { %v3970_v43 = vpop.f32.mrf.mxu3  ;;  %4272 = vmatmul.f32.gmra.mxu2 %v7341_v63 }
 0x499   : > { %v3744_v62 = vpop.f32.mrf.mxu1 }
 0x49a   : > { %v3858_v30 = vadd.f32 %v3857_v45, %v3744_v62 }
 0x49b   : > { %v4083_v13 = vpop.f32.mrf.mxu0  ;;  %v3869_v50 = vpop.f32.mrf.mxu2 }
 0x49c   : > { %v3971_v61 = vadd.f32 %v3970_v43, %v3858_v30  ;;  %4147 = vmatmul.f32.gmra.mxu1 %v3113_v26  ;;  %v7354_v26 = vld [vmem:[#allocation2 + $0x7a] sm:$0xff]  ;;  %v7362_v43 = vld [vmem:[#allocation2 + $0x82] sm:$0xff] }
 0x49d   : > { %4376 = vmatmul.f32.gmra.mxu3 %v3052_v21 }
 0x49e   : > { %v7343_v27 = vadd.f32 %v4083_v13, %v3971_v61  ;;  %4486 = vmatmul.f32.gmra.mxu0 %v3115_v40 }
 0x4a0   : > { %v3973_v3 = vpop.f32.mrf.mxu3  ;;  %4275 = vmatmul.f32.gmra.mxu2 %v7349_v41 }
 0x4a1   : > { %v3747_v45 = vpop.f32.mrf.mxu1 }
 0x4a2   : > { %v3861_v48 = vadd.f32 %v3860_v18, %v3747_v45  ;;  %v3054_v18 = vld [vmem:[#allocation2 + $0x68] sm:$0xff]  ;;  %v7367_v45 = vld [vmem:[#allocation2 + $0x92] sm:$0xff] }
 0x4a3   : > { %v4086_v4 = vpop.f32.mrf.mxu0  ;;  %v3872_v44 = vpop.f32.mrf.mxu2 }
 0x4a4   : > { %v3974_v38 = vadd.f32 %v3973_v3, %v3861_v48  ;;  %4150 = vmatmul.f32.gmra.mxu1 %v3114_v56  ;;  %v3118_v56 = vld [vmem:[#allocation2 + $0x69] sm:$0xff]  ;;  %v3119_v3 = vld [vmem:[#allocation2 + $0x79] sm:$0xff] }
 0x4a5   : > { %4379 = vmatmul.f32.gmra.mxu3 %v3053_v35 }
 0x4a6   : > { %v7351_v34 = vadd.f32 %v4086_v4, %v3974_v38  ;;  %4489 = vmatmul.f32.gmra.mxu0 %v3116_v32  ;;  %v3667_v38 = vld [vmem:[%s8025_s2 + $0x450] sm:$0xff] }
 0x4a7   : > { %4582 = vmatpush.msra.mxu1 %v3667_v38  ;;  %v3122_v38 = vld [vmem:[#allocation2 + $0x99] sm:$0xff] }
 0x4a8   : > { %v3976_v51 = vpop.f32.mrf.mxu3  ;;  %4278 = vmatmul.f32.gmra.mxu2 %v7354_v26 }
 0x4a9   : > { %v3750_v12 = vpop.f32.mrf.mxu1 }
 0x4aa   : > { %v3864_v19 = vadd.f32 %v3863_v25, %v3750_v12 }
 0x4ab   : > { %v4089_v0 = vpop.f32.mrf.mxu0  ;;  %v3875_v20 = vpop.f32.mrf.mxu2 }
 0x4ac   : > { %v3977_v6 = vadd.f32 %v3976_v51, %v3864_v19  ;;  %4153 = vmatmul.f32.gmra.mxu1 %v3115_v40  ;;  %v3057_v19 = vld [vmem:[#allocation2 + $0x90] sm:$0xff] }
 0x4ad   : > { %4382 = vmatmul.f32.gmra.mxu3 %v3054_v18 }
 0x4ae   : > { %v7356_v8 = vadd.f32 %v4089_v0, %v3977_v6  ;;  %4492 = vmatmul.f32.gmra.mxu0 %v3117_v53  ;;  %v3120_v0 = vld [vmem:[#allocation2 + $0x81] sm:$0xff] }
 0x4af   : > { %v7375_v6 = vld [vmem:[#allocation2 + $0x9a] sm:$0xff] }
 0x4b0   : > { %v3979_v25 = vpop.f32.mrf.mxu3  ;;  %4281 = vmatmul.f32.gmra.mxu2 %v7362_v43 }
 0x4b1   : > { %v3753_v17 = vpop.f32.mrf.mxu1 }
 0x4b2   : > { %v3867_v14 = vadd.f32 %v3866_v7, %v3753_v17  ;;  %v3056_v7 = vld [vmem:[#allocation2 + $0x80] sm:$0xff] }
 0x4b3   : > { %v4092_v5 = vpop.f32.mrf.mxu0  ;;  %v3878_v62 = vpop.f32.mrf.mxu2 }
 0x4b4   : > { %v3980_v33 = vadd.f32 %v3979_v25, %v3867_v14  ;;  %4156 = vmatmul.f32.gmra.mxu1 %v3116_v32 }
 0x4b5   : > { %4385 = vmatmul.f32.gmra.mxu3 %v3055_v15  ;;  %v7380_v15 = vld [vmem:[#allocation2 + $0xaa] sm:$0xff] }
 0x4b6   : > { %v7364_v30 = vadd.f32 %v4092_v5, %v3980_v33  ;;  %4495 = vmatmul.f32.gmra.mxu0 %v3118_v56  ;;  %v3121_v33 = vld [vmem:[#allocation2 + $0x91] sm:$0xff] }
 0x4b8   : > { %8241 = vst [vmem:[#allocation53_spill] sm:$0xff] %v7364_v30  ;;  %v3982_v13 = vpop.f32.mrf.mxu3  ;;  %4284 = vmatmul.f32.gmra.mxu2 %v7367_v45 }
 0x4b9   : > { %v3756_v61 = vpop.f32.mrf.mxu1 }
 0x4ba   : > { %v3870_v21 = vadd.f32 %v3869_v50, %v3756_v61  ;;  %v3666_v61 = vld [vmem:[%s8025_s2 + $0x448] sm:$0xff] }
 0x4bb   : > { %v4095_v40 = vpop.f32.mrf.mxu0  ;;  %v3881_v48 = vpop.f32.mrf.mxu2  ;;  %4583 = vmatpush.msra.mxu1 %v3666_v61 }
 0x4bc   : > { %v3983_v24 = vadd.f32 %v3982_v13, %v3870_v21  ;;  %4159 = vmatmul.f32.gmra.mxu1 %v3117_v53 }
 0x4bd   : > { %4388 = vmatmul.f32.gmra.mxu3 %v3056_v7 }
 0x4be   : > { %v7369_v4 = vadd.f32 %v4095_v40, %v3983_v24  ;;  %4498 = vmatmul.f32.gmra.mxu0 %v3119_v3 }
 0x4c0   : > { %8242 = vst [vmem:[#allocation57_spill] sm:$0xff] %v7369_v4  ;;  %v3985_v50 = vpop.f32.mrf.mxu3  ;;  %4287 = vmatmul.f32.gmra.mxu2 %v7375_v6 }
 0x4c1   : > { %v3759_v35 = vpop.f32.mrf.mxu1 }
 0x4c2   : > { %v3873_v32 = vadd.f32 %v3872_v44, %v3759_v35  ;;  %v3058_v44 = vld [vmem:[#allocation2 + $0x98] sm:$0xff] }
 0x4c3   : > { %v4098_v51 = vpop.f32.mrf.mxu0  ;;  %v3884_v18 = vpop.f32.mrf.mxu2 }
 0x4c4   : > { %v3986_v12 = vadd.f32 %v3985_v50, %v3873_v32  ;;  %4162 = vmatmul.f32.gmra.mxu1 %v3118_v56  ;;  %v7388_v50 = vld [vmem:[#allocation2 + $0xb2] sm:$0xff] }
 0x4c5   : > { %4391 = vmatmul.f32.gmra.mxu3 %v3057_v19 }
 0x4c6   : > { %v7377_v53 = vadd.f32 %v4098_v51, %v3986_v12  ;;  %4501 = vmatmul.f32.gmra.mxu0 %v3120_v0 }
 0x4c8   : > { %8243 = vst [vmem:[#allocation58_spill] sm:$0xff] %v7377_v53  ;;  %v3988_v31 = vpop.f32.mrf.mxu3  ;;  %4290 = vmatmul.f32.gmra.mxu2 %v7380_v15 }
 0x4c9   : > { %v3762_v25 = vpop.f32.mrf.mxu1 }
 0x4ca   : > { %v3876_v17 = vadd.f32 %v3875_v20, %v3762_v25 }
 0x4cb   : > { %v4101_v14 = vpop.f32.mrf.mxu0  ;;  %v3887_v56 = vpop.f32.mrf.mxu2 }
 0x4cc   : > { %v3989_v5 = vadd.f32 %v3988_v31, %v3876_v17  ;;  %4165 = vmatmul.f32.gmra.mxu1 %v3119_v3  ;;  %v3059_v3 = vld [vmem:[#allocation2 + $0xa8] sm:$0xff] }
 0x4cd   : > { %4394 = vmatmul.f32.gmra.mxu3 %v3058_v44  ;;  %v7393_v17 = vld [vmem:[#allocation2 + $0xc2] sm:$0xff] }
 0x4ce   : > { %v7382_v13 = vadd.f32 %v4101_v14, %v3989_v5  ;;  %4504 = vmatmul.f32.gmra.mxu0 %v3121_v33  ;;  %v3665_v44 = vld [vmem:[%s8025_s2 + $0x440] sm:$0xff] }
 0x4cf   : > { %4584 = vmatpush.msra.mxu1 %v3665_v44  ;;  %v7406_v44 = vld [vmem:[#allocation2 + $0xda] sm:$0xff] }
 0x4d0   : > { %8244 = vst [vmem:[#allocation60_spill] sm:$0xff] %v7382_v13  ;;  %v3991_v20 = vpop.f32.mrf.mxu3  ;;  %4293 = vmatmul.f32.gmra.mxu2 %v7388_v50 }
 0x4d1   : > { %v3765_v21 = vpop.f32.mrf.mxu1 }
 0x4d2   : > { %v3879_v40 = vadd.f32 %v3878_v62, %v3765_v21  ;;  %v3060_v62 = vld [vmem:[#allocation2 + $0xb0] sm:$0xff] }
 0x4d3   : > { %v4104_v24 = vpop.f32.mrf.mxu0  ;;  %v3890_v35 = vpop.f32.mrf.mxu2 }
 0x4d4   : > { %v3992_v7 = vadd.f32 %v3991_v20, %v3879_v40  ;;  %4168 = vmatmul.f32.gmra.mxu1 %v3120_v0  ;;  %v3123_v0 = vld [vmem:[#allocation2 + $0xa9] sm:$0xff]  ;;  %v3061_v40 = vld [vmem:[#allocation2 + $0xc0] sm:$0xff] }
 0x4d5   : > { %4397 = vmatmul.f32.gmra.mxu3 %v3059_v3 }
 0x4d6   : > { %v7390_v32 = vadd.f32 %v4104_v24, %v3992_v7  ;;  %4507 = vmatmul.f32.gmra.mxu0 %v3122_v38  ;;  %v3124_v24 = vld [vmem:[#allocation2 + $0xb1] sm:$0xff] }
 0x4d7   : > { %v7401_v7 = vld [vmem:[#allocation2 + $0xca] sm:$0xff] }
 0x4d8   : > { %8245 = vst [vmem:[#allocation62_spill] sm:$0xff] %v7390_v32  ;;  %v3994_v51 = vpop.f32.mrf.mxu3  ;;  %4296 = vmatmul.f32.gmra.mxu2 %v7393_v17 }
 0x4d9   : > { %v3768_v12 = vpop.f32.mrf.mxu1 }
 0x4da   : > { %v3882_v19 = vadd.f32 %v3881_v48, %v3768_v12 }
 0x4db   : > { %v4107_v31 = vpop.f32.mrf.mxu0  ;;  %v3893_v14 = vpop.f32.mrf.mxu2 }
 0x4dc   : > { %v3995_v25 = vadd.f32 %v3994_v51, %v3882_v19  ;;  %4171 = vmatmul.f32.gmra.mxu1 %v3121_v33 }
 0x4dd   : > { %4400 = vmatmul.f32.gmra.mxu3 %v3060_v62 }
 0x4de   : > { %v7395_v5 = vadd.f32 %v4107_v31, %v3995_v25  ;;  %4510 = vmatmul.f32.gmra.mxu0 %v3123_v0 }
 0x4e0   : > { %8246 = vst [vmem:[#allocation65_spill] sm:$0xff] %v7395_v5  ;;  %v3997_v48 = vpop.f32.mrf.mxu3  ;;  %4299 = vmatmul.f32.gmra.mxu2 %v7401_v7 }
 0x4e1   : > { %v3771_v61 = vpop.f32.mrf.mxu1 }
 0x4e2   : > { %v3885_v20 = vadd.f32 %v3884_v18, %v3771_v61  ;;  %v3062_v18 = vld [vmem:[#allocation2 + $0xc8] sm:$0xff] }
 0x4e3   : > { %v4110_v33 = vpop.f32.mrf.mxu0  ;;  %v3896_v51 = vpop.f32.mrf.mxu2 }
 0x4e4   : > { %v3998_v21 = vadd.f32 %v3997_v48, %v3885_v20  ;;  %4174 = vmatmul.f32.gmra.mxu1 %v3122_v38  ;;  %v3125_v38 = vld [vmem:[#allocation2 + $0xc1] sm:$0xff] }
 0x4e5   : > { %4403 = vmatmul.f32.gmra.mxu3 %v3061_v40 }
 0x4e6   : > { %v7403_v3 = vadd.f32 %v4110_v33, %v3998_v21  ;;  %4513 = vmatmul.f32.gmra.mxu0 %v3124_v24  ;;  %v3664_v33 = vld [vmem:[%s8025_s2 + $0x438] sm:$0xff] }
 0x4e7   : > { %4585 = vmatpush.msra.mxu1 %v3664_v33 }
 0x4e8   : > { %8247 = vst [vmem:[#allocation66_spill] sm:$0xff] %v7403_v3  ;;  %v4000_v12 = vpop.f32.mrf.mxu3  ;;  %4302 = vmatmul.f32.gmra.mxu2 %v7406_v44 }
 0x4e9   : > { %v3774_v19 = vpop.f32.mrf.mxu1 }
 0x4ea   : > { %v3888_v31 = vadd.f32 %v3887_v56, %v3774_v19  ;;  %v3126_v19 = vld [vmem:[#allocation2 + $0xc9] sm:$0xff] }
 0x4eb   : > { %v4113_v25 = vpop.f32.mrf.mxu0  ;;  %v4255_v20 = vpop.f32.mrf.mxu2 }
 0x4ec   : > { %v4001_v62 = vadd.f32 %v4000_v12, %v3888_v31  ;;  %4177 = vmatmul.f32.gmra.mxu1 %v3123_v0  ;;  %v3063_v12 = vld [vmem:[#allocation2 + $0xd8] sm:$0xff]  ;;  %v7414_v31 = vld [vmem:[#allocation2 + $0xe2] sm:$0xff] }
 0x4ed   : > { %4406 = vmatmul.f32.gmra.mxu3 %v3062_v18 }
 0x4ee   : > { %v7408_v48 = vadd.f32 %v4113_v25, %v4001_v62  ;;  %4516 = vmatmul.f32.gmra.mxu0 %v3125_v38 }
 0x4f0   : > { %8248 = vst [vmem:[#allocation45_spill] sm:$0xff] %v7408_v48  ;;  %v4003_v61 = vpop.f32.mrf.mxu3  ;;  %4305 = vmatmul.f32.gmra.mxu2 %v7414_v31 }
 0x4f1   : > { %v3777_v56 = vpop.f32.mrf.mxu1 }
 0x4f2   : > { %v3891_v21 = vadd.f32 %v3890_v35, %v3777_v56  ;;  %v3064_v35 = vld [vmem:[#allocation2 + $0xe0] sm:$0xff] }
 0x4f3   : > { %v4116_v0 = vpop.f32.mrf.mxu0  ;;  %v4258_v48 = vpop.f32.mrf.mxu2 }
 0x4f4   : > { %v4004_v40 = vadd.f32 %v4003_v61, %v3891_v21  ;;  %4180 = vmatmul.f32.gmra.mxu1 %v3124_v24  ;;  %v3127_v24 = vld [vmem:[#allocation2 + $0xd9] sm:$0xff] }
 0x4f5   : > { %4409 = vmatmul.f32.gmra.mxu3 %v3063_v12  ;;  %v7419_v61 = vld [vmem:[#allocation2 + $0xf2] sm:$0xff] }
 0x4f6   : > { %v7416_v25 = vadd.f32 %v4116_v0, %v4004_v40  ;;  %4519 = vmatmul.f32.gmra.mxu0 %v3126_v19  ;;  %v3663_v0 = vld [vmem:[%s8025_s2 + $0x430] sm:$0xff] }
 0x4f7   : > { %4586 = vmatpush.msra.mxu1 %v3663_v0 }
 0x4f8   : > { %8249 = vst [vmem:[#allocation67_spill] sm:$0xff] %v7416_v25  ;;  %v4006_v62 = vpop.f32.mrf.mxu3  ;;  %4308 = vmatmul.f32.gmra.mxu2 %v7419_v61 }
 0x4f9   : > { %v3780_v18 = vpop.f32.mrf.mxu1 }
 0x4fa   : > { %v3894_v3 = vadd.f32 %v3893_v14, %v3780_v18  ;;  %v3128_v18 = vld [vmem:[#allocation2 + $0xe1] sm:$0xff] }
 0x4fb   : > { %v4119_v5 = vpop.f32.mrf.mxu0  ;;  %v4261_v14 = vpop.f32.mrf.mxu2 }
 0x4fc   : > { %v4007_v33 = vadd.f32 %v4006_v62, %v3894_v3  ;;  %4183 = vmatmul.f32.gmra.mxu1 %v3125_v38  ;;  %v3065_v62 = vld [vmem:[#allocation2 + $0xf0] sm:$0xff] }
 0x4fd   : > { %4412 = vmatmul.f32.gmra.mxu3 %v3064_v35 }
 0x4fe   : > { %v7421_v56 = vadd.f32 %v4119_v5, %v4007_v33  ;;  %4522 = vmatmul.f32.gmra.mxu0 %v3127_v24  ;;  %v7427_v5 = vld [vmem:[#allocation2 + $0xfa] sm:$0xff] }
 0x500   : > { %8250 = vst [vmem:[#allocation39_spill] sm:$0xff] %v7421_v56  ;;  %v4009_v21 = vpop.f32.mrf.mxu3  ;;  %4311 = vmatmul.f32.gmra.mxu2 %v7427_v5 }
 0x501   : > { %v3783_v40 = vpop.f32.mrf.mxu1 }
 0x502   : > { %v3897_v3 = vadd.f32 %v3896_v51, %v3783_v40  ;;  %v7433_v40 = vld [vmem:[#allocation2 + $0x10a] sm:$0xff] }
 0x503   : > { %v4122_v38 = vpop.f32.mrf.mxu0  ;;  %v4264_v25 = vpop.f32.mrf.mxu2 }
 0x504   : > { %v4010_v12 = vadd.f32 %v4009_v21, %v3897_v3  ;;  %4186 = vmatmul.f32.gmra.mxu1 %v3126_v19  ;;  %v3066_v21 = vld [vmem:[#allocation2 + $0xf8] sm:$0xff] }
 0x505   : > { %4415 = vmatmul.f32.gmra.mxu3 %v3065_v62  ;;  %v3129_v19 = vld [vmem:[#allocation2 + $0xf1] sm:$0xff]  ;;  %v3662_v62 = vld [vmem:[%s8025_s2 + $0x428] sm:$0xff] }
 0x506   : > { %v7429_v33 = vadd.f32 %v4122_v38, %v4010_v12  ;;  %4525 = vmatmul.f32.gmra.mxu0 %v3128_v18  ;;  %4587 = vmatpush.msra.mxu1 %v3662_v62 }
 0x508   : > { %8251 = vst [vmem:[#allocation37_spill] sm:$0xff] %v7429_v33  ;;  %v4368_v35 = vpop.f32.mrf.mxu3  ;;  %4314 = vmatmul.f32.gmra.mxu2 %v7433_v40 }
 0x509   : > { %v4142_v56 = vpop.f32.mrf.mxu1 }
 0x50a   : > { %v4143_v32 = vadd.f32 %v4142_v56, %v7067_v59 }
 0x50b   : > { %v4481_v0 = vpop.f32.mrf.mxu0  ;;  %v4267_v56 = vpop.f32.mrf.mxu2 }
 0x50c   : > { %v4256_v51 = vadd.f32 %v4255_v20, %v4143_v32  ;;  %4189 = vmatmul.f32.gmra.mxu1 %v3127_v24 }
 0x50d   : > { %4418 = vmatmul.f32.gmra.mxu3 %v3066_v21  ;;  %v3067_v21 = vld [vmem:[#allocation2 + $0x108] sm:$0xff] }
 0x50e   : > { %v4369_v3 = vadd.f32 %v4368_v35, %v4256_v51  ;;  %4528 = vmatmul.f32.gmra.mxu0 %v3129_v19  ;;  %v3130_v35 = vld [vmem:[#allocation2 + $0xf9] sm:$0xff] }
 0x50f   : > { %v7442_v51 = vld [vmem:[#allocation2 + $0x112] sm:$0xff] }
 0x510   : > { %v7436_v38 = vadd.f32 %v4481_v0, %v4369_v3  ;;  %v4371_v12 = vpop.f32.mrf.mxu3  ;;  %4317 = vmatmul.f32.gmra.mxu2 %v7442_v51 }
 0x511   : > { %v4145_v59 = vpop.f32.mrf.mxu1 }
 0x512   : > { %8252 = vst [vmem:[#allocation41_spill] sm:$0xff] %v7436_v38  ;;  %v4146_v32 = vadd.f32 %v4145_v59, %v7074_v16  ;;  %v3079_v38 = vld [vmem:[#allocation2 + $0x198] sm:$0xff] }
 0x513   : > { %v4484_v20 = vpop.f32.mrf.mxu0  ;;  %v4270_v53 = vpop.f32.mrf.mxu2 }
 0x514   : > { %v4259_v24 = vadd.f32 %v4258_v48, %v4146_v32  ;;  %4192 = vmatmul.f32.gmra.mxu1 %v3128_v18  ;;  %v3068_v48 = vld [vmem:[#allocation2 + $0x110] sm:$0xff]  ;;  %v7448_v32 = vld [vmem:[#allocation2 + $0x122] sm:$0xff] }
 0x515   : > { %4421 = vmatmul.f32.gmra.mxu3 %v3067_v21  ;;  %v3131_v18 = vld [vmem:[#allocation2 + $0x109] sm:$0xff] }
 0x516   : > { %v4372_v0 = vadd.f32 %v4371_v12, %v4259_v24  ;;  %4531 = vmatmul.f32.gmra.mxu0 %v3130_v35  ;;  %v3661_v24 = vld [vmem:[%s8025_s2 + $0x420] sm:$0xff] }
 0x517   : > { %4588 = vmatpush.msra.mxu1 %v3661_v24 }
 0x518   : > { %v7445_v3 = vadd.f32 %v4484_v20, %v4372_v0  ;;  %v4374_v33 = vpop.f32.mrf.mxu3  ;;  %4320 = vmatmul.f32.gmra.mxu2 %v7448_v32 }
 0x519   : > { %v4148_v13 = vpop.f32.mrf.mxu1 }
 0x51a   : > { %v4149_v62 = vadd.f32 %v4148_v13, %v7078_v22 }
 0x51b   : > { %v4487_v16 = vpop.f32.mrf.mxu0  ;;  %v4273_v13 = vpop.f32.mrf.mxu2 }
 0x51c   : > { %v4262_v59 = vadd.f32 %v4261_v14, %v4149_v62  ;;  %4195 = vmatmul.f32.gmra.mxu1 %v3129_v19  ;;  %v3069_v62 = vld [vmem:[#allocation2 + $0x120] sm:$0xff] }
 0x51d   : > { %4424 = vmatmul.f32.gmra.mxu3 %v3068_v48 }
 0x51e   : > { %v4375_v21 = vadd.f32 %v4374_v33, %v4262_v59  ;;  %4534 = vmatmul.f32.gmra.mxu0 %v3131_v18  ;;  %v3132_v33 = vld [vmem:[#allocation2 + $0x111] sm:$0xff] }
 0x51f   : > { %v7457_v59 = vld [vmem:[#allocation2 + $0x12a] sm:$0xff] }
 0x520   : > { %v7451_v12 = vadd.f32 %v4487_v16, %v4375_v21  ;;  %v4377_v20 = vpop.f32.mrf.mxu3  ;;  %4323 = vmatmul.f32.gmra.mxu2 %v7457_v59 }
 0x521   : > { %v4151_v22 = vpop.f32.mrf.mxu1 }
 0x522   : > { %8253 = vst [vmem:[#allocation51_spill] sm:$0xff] %v7451_v12  ;;  %v4152_v14 = vadd.f32 %v4151_v22, %v7085_v23 }
 0x523   : > { %v4490_v19 = vpop.f32.mrf.mxu0  ;;  %v4276_v30 = vpop.f32.mrf.mxu2 }
 0x524   : > { %v4265_v0 = vadd.f32 %v4264_v25, %v4152_v14  ;;  %4198 = vmatmul.f32.gmra.mxu1 %v3130_v35  ;;  %v3070_v25 = vld [vmem:[#allocation2 + $0x128] sm:$0xff]  ;;  %v7463_v14 = vld [vmem:[#allocation2 + $0x13a] sm:$0xff] }
 0x525   : > { %4427 = vmatmul.f32.gmra.mxu3 %v3069_v62  ;;  %v3133_v35 = vld [vmem:[#allocation2 + $0x121] sm:$0xff] }
 0x526   : > { %v4378_v16 = vadd.f32 %v4377_v20, %v4265_v0  ;;  %4537 = vmatmul.f32.gmra.mxu0 %v3132_v33  ;;  %v3660_v0 = vld [vmem:[%s8025_s2 + $0x418] sm:$0xff] }
 0x527   : > { %4589 = vmatpush.msra.mxu1 %v3660_v0 }
 0x528   : > { %v7460_v48 = vadd.f32 %v4490_v19, %v4378_v16  ;;  %v4380_v21 = vpop.f32.mrf.mxu3  ;;  %4326 = vmatmul.f32.gmra.mxu2 %v7463_v14 }
 0x529   : > { %v4154_v4 = vpop.f32.mrf.mxu1 }
 0x52a   : > { %8254 = vst [vmem:[#allocation40_spill] sm:$0xff] %v7460_v48  ;;  %v4155_v24 = vadd.f32 %v4154_v4, %v7089_v11 }
 0x52b   : > { %v4493_v23 = vpop.f32.mrf.mxu0 }
 0x52c   : > { %v4268_v22 = vadd.f32 %v4267_v56, %v4155_v24  ;;  %4201 = vmatmul.f32.gmra.mxu1 %v3131_v18  ;;  %v4279_v18 = vpop.f32.mrf.mxu2  ;;  %v3071_v24 = vld [vmem:[#allocation2 + $0x138] sm:$0xff] }
 0x52d   : > { %4430 = vmatmul.f32.gmra.mxu3 %v3070_v25 }
 0x52e   : > { %v4381_v62 = vadd.f32 %v4380_v21, %v4268_v22  ;;  %4540 = vmatmul.f32.gmra.mxu0 %v3133_v35  ;;  %v3134_v21 = vld [vmem:[#allocation2 + $0x129] sm:$0xff] }
 0x52f   : > { %v7472_v22 = vld [vmem:[#allocation2 + $0x142] sm:$0xff] }
 0x530   : > { %v7466_v20 = vadd.f32 %v4493_v23, %v4381_v62  ;;  %v4383_v19 = vpop.f32.mrf.mxu3  ;;  %4329 = vmatmul.f32.gmra.mxu2 %v7472_v22 }
 0x531   : > { %v4157_v11 = vpop.f32.mrf.mxu1 }
 0x532   : > { %8255 = vst [vmem:[#allocation47_spill] sm:$0xff] %v7466_v20  ;;  %v4158_v4 = vadd.f32 %v4157_v11, %v7098_v52 }
 0x533   : > { %v4496_v56 = vpop.f32.mrf.mxu0 }
 0x534   : > { %v4271_v16 = vadd.f32 %v4270_v53, %v4158_v4  ;;  %4204 = vmatmul.f32.gmra.mxu1 %v3132_v33  ;;  %v3072_v53 = vld [vmem:[#allocation2 + $0x140] sm:$0xff]  ;;  %v4282_v4 = vpop.f32.mrf.mxu2 }
 0x535   : > { %4433 = vmatmul.f32.gmra.mxu3 %v3071_v24  ;;  %v3135_v33 = vld [vmem:[#allocation2 + $0x139] sm:$0xff] }
 0x536   : > { %v4384_v23 = vadd.f32 %v4383_v19, %v4271_v16  ;;  %4543 = vmatmul.f32.gmra.mxu0 %v3134_v21  ;;  %v7478_v24 = vld [vmem:[#allocation2 + $0x152] sm:$0xff] }
 0x538   : > { %v7475_v25 = vadd.f32 %v4496_v56, %v4384_v23  ;;  %v4386_v62 = vpop.f32.mrf.mxu3  ;;  %4332 = vmatmul.f32.gmra.mxu2 %v7478_v24  ;;  %v3073_v23 = vld [vmem:[#allocation2 + $0x150] sm:$0xff] }
 0x539   : > { %v4160_v20 = vpop.f32.mrf.mxu1 }
 0x53a   : > { %8256 = vst [vmem:[#allocation56_spill] sm:$0xff] %v7475_v25  ;;  %v4161_v0 = vadd.f32 %v4160_v20, %v7104_v1  ;;  %v3659_v1 = vld [vmem:[%s8025_s2 + $0x410] sm:$0xff] }
 0x53b   : > { %v4499_v52 = vpop.f32.mrf.mxu0  ;;  %4590 = vmatpush.msra.mxu1 %v3659_v1 }
 0x53c   : > { %v4274_v11 = vadd.f32 %v4273_v13, %v4161_v0  ;;  %4207 = vmatmul.f32.gmra.mxu1 %v3133_v35  ;;  %v7487_v0 = vld [vmem:[#allocation2 + $0x15a] sm:$0xff] }
 0x53d   : > { %4436 = vmatmul.f32.gmra.mxu3 %v3072_v53 }
 0x53e   : > { %v4387_v48 = vadd.f32 %v4386_v62, %v4274_v11  ;;  %4546 = vmatmul.f32.gmra.mxu0 %v3135_v33  ;;  %v3136_v62 = vld [vmem:[#allocation2 + $0x141] sm:$0xff] }
 0x540   : > { %v7481_v19 = vadd.f32 %v4499_v52, %v4387_v48  ;;  %v4389_v56 = vpop.f32.mrf.mxu3  ;;  %4335 = vmatmul.f32.gmra.mxu2 %v7487_v0  ;;  %v4285_v48 = vpop.f32.mrf.mxu2 }
 0x541   : > { %v4163_v20 = vpop.f32.mrf.mxu1 }
 0x542   : > { %8257 = vst [vmem:[#allocation68_spill] sm:$0xff] %v7481_v19  ;;  %v4164_v13 = vadd.f32 %v4163_v20, %v7113_v60 }
 0x543   : > { %v4502_v35 = vpop.f32.mrf.mxu0 }
 0x544   : > { %v4277_v16 = vadd.f32 %v4276_v30, %v4164_v13  ;;  %4210 = vmatmul.f32.gmra.mxu1 %v3134_v21  ;;  %v3074_v30 = vld [vmem:[#allocation2 + $0x158] sm:$0xff]  ;;  %v7493_v13 = vld [vmem:[#allocation2 + $0x16a] sm:$0xff] }
 0x545   : > { %4439 = vmatmul.f32.gmra.mxu3 %v3073_v23  ;;  %v3137_v21 = vld [vmem:[#allocation2 + $0x151] sm:$0xff] }
 0x546   : > { %v4390_v11 = vadd.f32 %v4389_v56, %v4277_v16  ;;  %4549 = vmatmul.f32.gmra.mxu0 %v3136_v62  ;;  %v3658_v16 = vld [vmem:[%s8025_s2 + $0x408] sm:$0xff] }
 0x547   : > { %4591 = vmatpush.msra.mxu1 %v3658_v16 }
 0x548   : > { %v7490_v52 = vadd.f32 %v4502_v35, %v4390_v11  ;;  %v4392_v53 = vpop.f32.mrf.mxu3  ;;  %4338 = vmatmul.f32.gmra.mxu2 %v7493_v13 }
 0x549   : > { %v4166_v19 = vpop.f32.mrf.mxu1 }
 0x54a   : > { %8258 = vst [vmem:[#allocation43_spill] sm:$0xff] %v7490_v52  ;;  %v4167_v1 = vadd.f32 %v4166_v19, %v7133_v54  ;;  %v4288_v19 = vpop.f32.mrf.mxu2 }
 0x54b   : > { %v4505_v60 = vpop.f32.mrf.mxu0 }
 0x54c   : > { %v4280_v20 = vadd.f32 %v4279_v18, %v4167_v1  ;;  %4213 = vmatmul.f32.gmra.mxu1 %v3135_v33  ;;  %v3075_v1 = vld [vmem:[#allocation2 + $0x168] sm:$0xff] }
 0x54d   : > { %4442 = vmatmul.f32.gmra.mxu3 %v3074_v30 }
 0x54e   : > { %v4393_v23 = vadd.f32 %v4392_v53, %v4280_v20  ;;  %4552 = vmatmul.f32.gmra.mxu0 %v3137_v21  ;;  %v3138_v53 = vld [vmem:[#allocation2 + $0x159] sm:$0xff] }
 0x54f   : > { %v7502_v20 = vld [vmem:[#allocation2 + $0x172] sm:$0xff] }
 0x550   : > { %v7496_v56 = vadd.f32 %v4505_v60, %v4393_v23  ;;  %v4395_v35 = vpop.f32.mrf.mxu3  ;;  %4341 = vmatmul.f32.gmra.mxu2 %v7502_v20 }
 0x551   : > { %v4169_v54 = vpop.f32.mrf.mxu1 }
 0x552   : > { %v4170_v18 = vadd.f32 %v4169_v54, %v7174_v46  ;;  %v4291_v46 = vpop.f32.mrf.mxu2 }
 0x553   : > { %v4508_v33 = vpop.f32.mrf.mxu0 }
 0x554   : > { %v4283_v11 = vadd.f32 %v4282_v4, %v4170_v18  ;;  %4216 = vmatmul.f32.gmra.mxu1 %v3136_v62  ;;  %v3076_v4 = vld [vmem:[#allocation2 + $0x170] sm:$0xff]  ;;  %v7508_v18 = vld [vmem:[#allocation2 + $0x182] sm:$0xff] }
 0x555   : > { %4445 = vmatmul.f32.gmra.mxu3 %v3075_v1  ;;  %v3139_v62 = vld [vmem:[#allocation2 + $0x169] sm:$0xff] }
 0x556   : > { %v4396_v60 = vadd.f32 %v4395_v35, %v4283_v11  ;;  %4555 = vmatmul.f32.gmra.mxu0 %v3138_v53 }
 0x558   : > { %v7505_v30 = vadd.f32 %v4508_v33, %v4396_v60  ;;  %v4398_v23 = vpop.f32.mrf.mxu3  ;;  %4344 = vmatmul.f32.gmra.mxu2 %v7508_v18  ;;  %v3140_v60 = vld [vmem:[#allocation2 + $0x171] sm:$0xff] }
 0x559   : > { %v4172_v52 = vpop.f32.mrf.mxu1 }
 0x55a   : > { %v4173_v16 = vadd.f32 %v4172_v52, %v7219_v36  ;;  %v3657_v36 = vld [vmem:[%s8025_s2 + $0x400] sm:$0xff] }
 0x55b   : > { %v4511_v25 = vpop.f32.mrf.mxu0  ;;  %4592 = vmatpush.msra.mxu1 %v3657_v36 }
 0x55c   : > { %v4286_v54 = vadd.f32 %v4285_v48, %v4173_v16  ;;  %4219 = vmatmul.f32.gmra.mxu1 %v3137_v21  ;;  %v7518_v16 = vld [vmem:[#allocation2 + $0x18a] sm:$0xff] }
 0x55d   : > { %4448 = vmatmul.f32.gmra.mxu3 %v3076_v4 }
 0x55e   : > { %v4399_v1 = vadd.f32 %v4398_v23, %v4286_v54  ;;  %4558 = vmatmul.f32.gmra.mxu0 %v3139_v62  ;;  %v4294_v23 = vpop.f32.mrf.mxu2 }
 0x560   : > { %v7511_v35 = vadd.f32 %v4511_v25, %v4399_v1  ;;  %v4401_v33 = vpop.f32.mrf.mxu3  ;;  %4347 = vmatmul.f32.gmra.mxu2 %v7518_v16 }
 0x561   : > { %v4175_v52 = vpop.f32.mrf.mxu1 }
 0x562   : > { %v4176_v48 = vadd.f32 %v4175_v52, %v7265_v29 }
 0x563   : > { %v4514_v21 = vpop.f32.mrf.mxu0 }
 0x564   : > { %v4289_v11 = vadd.f32 %v4288_v19, %v4176_v48  ;;  %4222 = vmatmul.f32.gmra.mxu1 %v3138_v53 }
 0x565   : > { %4451 = vmatmul.f32.gmra.mxu3 %v7308_v42  ;;  %v3141_v42 = vld [vmem:[#allocation2 + $0x181] sm:$0xff] }
 0x566   : > { %v4402_v25 = vadd.f32 %v4401_v33, %v4289_v11  ;;  %4561 = vmatmul.f32.gmra.mxu0 %v3140_v60  ;;  %v4297_v53 = vpop.f32.mrf.mxu2 }
 0x568   : > { %v7521_v54 = vadd.f32 %v4514_v21, %v4402_v25  ;;  %v4404_v4 = vpop.f32.mrf.mxu3 }
 0x569   : > { %v4178_v1 = vpop.f32.mrf.mxu1 }
 0x56a   : > { %v4179_v36 = vadd.f32 %v4178_v1, %v7290_v9  ;;  %v3142_v9 = vld [vmem:[#allocation2 + $0x189] sm:$0xff] }
 0x56b   : > { %v4517_v29 = vpop.f32.mrf.mxu0 }
 0x56c   : > { %v4292_v52 = vadd.f32 %v4291_v46, %v4179_v36  ;;  %4225 = vmatmul.f32.gmra.mxu1 %v3139_v62 }
 0x56d   : > { %4454 = vmatmul.f32.gmra.mxu3 %v7320_v55 }
 0x56e   : > { %v4405_v19 = vadd.f32 %v4404_v4, %v4292_v52  ;;  %4564 = vmatmul.f32.gmra.mxu0 %v3141_v42  ;;  %v4300_v1 = vpop.f32.mrf.mxu2 }
 0x570   : > { %v7525_v48 = vadd.f32 %v4517_v29, %v4405_v19  ;;  %v4407_v33 = vpop.f32.mrf.mxu3  ;;  %v3080_v19 = vld [vmem:[#allocation2 + $0x1a0] sm:$0xff] }
 0x571   : > { %v4181_v11 = vpop.f32.mrf.mxu1 }
 0x572   : > { %v4182_v21 = vadd.f32 %v4181_v11, %v7305_v10  ;;  %v3143_v10 = vld [vmem:[#allocation2 + $0x199] sm:$0xff] }
 0x573   : > { %v4520_v25 = vpop.f32.mrf.mxu0 }
 0x574   : > { %v4295_v12 = vadd.f32 %v4294_v23, %v4182_v21  ;;  %4228 = vmatmul.f32.gmra.mxu1 %v3140_v60 }
 0x575   : > { %4457 = vmatmul.f32.gmra.mxu3 %v3079_v38 }
 0x576   : > { %v4408_v46 = vadd.f32 %v4407_v33, %v4295_v12  ;;  %4567 = vmatmul.f32.gmra.mxu0 %v3142_v9  ;;  %v4303_v21 = vpop.f32.mrf.mxu2 }
 0x578   : > { %v7528_v62 = vadd.f32 %v4520_v25, %v4408_v46  ;;  %v4410_v55 = vpop.f32.mrf.mxu3  ;;  %v3144_v46 = vld [vmem:[#allocation2 + $0x1a1] sm:$0xff] }
 0x579   : > { %v4184_v4 = vpop.f32.mrf.mxu1 }
 0x57a   : > { %v4185_v36 = vadd.f32 %v4184_v4, %v7312_v28 }
 0x57b   : > { %v4523_v29 = vpop.f32.mrf.mxu0 }
 0x57c   : > { %v4298_v52 = vadd.f32 %v4297_v53, %v4185_v36  ;;  %4231 = vmatmul.f32.gmra.mxu1 %v3141_v42 }
 0x57d   : > { %4460 = vmatmul.f32.gmra.mxu3 %v3080_v19 }
 0x57e   : > { %v4411_v23 = vadd.f32 %v4410_v55, %v4298_v52  ;;  %4570 = vmatmul.f32.gmra.mxu0 %v3143_v10  ;;  %v4306_v52 = vpop.f32.mrf.mxu2 }
 0x580   : > { %v7531_v60 = vadd.f32 %v4523_v29, %v4411_v23  ;;  %v4413_v38 = vpop.f32.mrf.mxu3 }
 0x581   : > { %v4187_v12 = vpop.f32.mrf.mxu1 }
 0x582   : > { %v4188_v33 = vadd.f32 %v4187_v12, %v7324_v49 }
 0x583   : > { %v4526_v11 = vpop.f32.mrf.mxu0 }
 0x584   : > { %v4301_v25 = vadd.f32 %v4300_v1, %v4188_v33  ;;  %4234 = vmatmul.f32.gmra.mxu1 %v3142_v9 }
 0x586   : > { %v4414_v28 = vadd.f32 %v4413_v38, %v4301_v25  ;;  %4573 = vmatmul.f32.gmra.mxu0 %v3144_v46  ;;  %v4309_v33 = vpop.f32.mrf.mxu2 }
 0x588   : > { %v7534_v53 = vadd.f32 %v4526_v11, %v4414_v28  ;;  %v4416_v42 = vpop.f32.mrf.mxu3 }
 0x589   : > { %v4190_v4 = vpop.f32.mrf.mxu1 }
 0x58a   : > { %v4191_v55 = vadd.f32 %v4190_v4, %v7330_v39 }
 0x58b   : > { %v4529_v36 = vpop.f32.mrf.mxu0 }
 0x58c   : > { %v4304_v29 = vadd.f32 %v4303_v21, %v4191_v55  ;;  %4593 = vmatmul.f32.vlgmr.msra.gmra.mxu1 %v7310_v57 }
 0x58e   : > { %v4417_v19 = vadd.f32 %v4416_v42, %v4304_v29 }
 0x590   : > { %v7538_v49 = vadd.f32 %v4529_v36, %v4417_v19  ;;  %v4419_v10 = vpop.f32.mrf.mxu3 }
 0x591   : > { %v4193_v1 = vpop.f32.mrf.mxu1 }
 0x592   : > { %v4194_v9 = vadd.f32 %v4193_v1, %v7338_v47  ;;  %v4312_v47 = vpop.f32.mrf.mxu2 }
 0x593   : > { %v4532_v23 = vpop.f32.mrf.mxu0 }
 0x594   : > { %v4307_v38 = vadd.f32 %v4306_v52, %v4194_v9  ;;  %4596 = vmatmul.f32.gmra.mxu1 %v7322_v58 }
 0x596   : > { %v4420_v12 = vadd.f32 %v4419_v10, %v4307_v38 }
 0x598   : > { %v7542_v11 = vadd.f32 %v4532_v23, %v4420_v12  ;;  %v4422_v39 = vpop.f32.mrf.mxu3 }
 0x599   : > { %v4196_v21 = vpop.f32.mrf.mxu1 }
 0x59a   : > { %v4197_v57 = vadd.f32 %v4196_v21, %v7343_v27  ;;  %v4315_v1 = vpop.f32.mrf.mxu2 }
 0x59b   : > { %v4535_v25 = vpop.f32.mrf.mxu0 }
 0x59c   : > { %v4310_v46 = vadd.f32 %v4309_v33, %v4197_v57  ;;  %4599 = vmatmul.f32.gmra.mxu1 %v7328_v2 }
 0x59e   : > { %v4423_v28 = vadd.f32 %v4422_v39, %v4310_v46 }
 0x5a0   : > { %v7546_v42 = vadd.f32 %v4535_v25, %v4423_v28  ;;  %v4425_v58 = vpop.f32.mrf.mxu3 }
 0x5a1   : > { %v4199_v4 = vpop.f32.mrf.mxu1 }
 0x5a2   : > { %v4200_v55 = vadd.f32 %v4199_v4, %v7351_v34 }
 0x5a3   : > { %v4538_v29 = vpop.f32.mrf.mxu0 }
 0x5a4   : > { %v4313_v36 = vadd.f32 %v4312_v47, %v4200_v55  ;;  %4602 = vmatmul.f32.gmra.mxu1 %v7336_v37 }
 0x5a6   : > { %v4426_v52 = vadd.f32 %v4425_v58, %v4313_v36 }
 0x5a8   : > { %v7550_v19 = vadd.f32 %v4538_v29, %v4426_v52  ;;  %v4428_v9 = vpop.f32.mrf.mxu3 }
 0x5a9   : > { %v4202_v27 = vpop.f32.mrf.mxu1 }
 0x5aa   : > { %v4203_v10 = vadd.f32 %v4202_v27, %v7356_v8 }
 0x5ab   : > { %v4541_v38 = vpop.f32.mrf.mxu0 }
 0x5ac   : > { %v4316_v2 = vadd.f32 %v4315_v1, %v4203_v10  ;;  %4605 = vmatmul.f32.gmra.mxu1 %v7341_v63  ;;  %v8263_v1 = vld [vmem:[#allocation41_spill] sm:$0xff] }
 0x5ae   : > { %v4429_v23 = vadd.f32 %v4428_v9, %v4316_v2  ;;  %v8264_v9 = vld [vmem:[#allocation51_spill] sm:$0xff] }
 0x5b0   : > { %v7554_v12 = vadd.f32 %v4541_v38, %v4429_v23  ;;  %v8265_v38 = vld [vmem:[#allocation40_spill] sm:$0xff] }
 0x5b1   : > { %v7556_v34 = vpop.f32.mrf.mxu1 }
 0x5b4   : > { %4608 = vmatmul.f32.gmra.mxu1 %v7349_v41 }
 0x5b9   : > { %v7559_v37 = vpop.f32.mrf.mxu1 }
 0x5bc   : > { %4611 = vmatmul.f32.gmra.mxu1 %v7354_v26 }
 0x5c1   : > { %v7562_v33 = vpop.f32.mrf.mxu1 }
 0x5c4   : > { %4614 = vmatmul.f32.gmra.mxu1 %v7362_v43 }
 0x5c9   : > { %v7565_v8 = vpop.f32.mrf.mxu1 }
 0x5cc   : > { %4617 = vmatmul.f32.gmra.mxu1 %v7367_v45 }
 0x5d1   : > { %v7568_v63 = vpop.f32.mrf.mxu1 }
 0x5d4   : > { %4620 = vmatmul.f32.gmra.mxu1 %v7375_v6 }
 0x5d9   : > { %v7571_v39 = vpop.f32.mrf.mxu1 }
 0x5dc   : > { %4623 = vmatmul.f32.gmra.mxu1 %v7380_v15 }
 0x5e1   : > { %v7574_v41 = vpop.f32.mrf.mxu1 }
 0x5e4   : > { %4626 = vmatmul.f32.gmra.mxu1 %v7388_v50 }
 0x5e9   : > { %v7577_v26 = vpop.f32.mrf.mxu1 }
 0x5ec   : > { %4629 = vmatmul.f32.gmra.mxu1 %v7393_v17 }
 0x5f1   : > { %v7580_v43 = vpop.f32.mrf.mxu1 }
 0x5f4   : > { %4632 = vmatmul.f32.gmra.mxu1 %v7401_v7 }
 0x5f9   : > { %v7583_v45 = vpop.f32.mrf.mxu1 }
 0x5fc   : > { %4635 = vmatmul.f32.gmra.mxu1 %v7406_v44 }
 0x601   : > { %v7586_v6 = vpop.f32.mrf.mxu1 }
 0x604   : > { %4638 = vmatmul.f32.gmra.mxu1 %v7414_v31 }
 0x609   : > { %v4594_v15 = vpop.f32.mrf.mxu1 }
 0x60a   : > { %v7668_v2 = vadd.f32 %v4594_v15, %v8263_v1 }
 0x60c   : > { %4641 = vmatmul.f32.gmra.mxu1 %v7419_v61 }
 0x611   : > { %v4597_v50 = vpop.f32.mrf.mxu1 }
 0x612   : > { %v7660_v27 = vadd.f32 %v4597_v50, %v7445_v3  ;;  %v4728_v3 = vmul.f32 %v7668_v2, %v7668_v2  ;;  %v8266_v50 = vld [vmem:[#allocation47_spill] sm:$0xff] }
 0x614   : > { %4644 = vmatmul.f32.gmra.mxu1 %v7427_v5 }
 0x619   : > { %v4600_v21 = vpop.f32.mrf.mxu1 }
 0x61a   : > { %v7671_v23 = vadd.f32 %v4600_v21, %v8264_v9 }
 0x61c   : > { %4647 = vmatmul.f32.gmra.mxu1 %v7433_v40  ;;  %v4730_v15 = vmul.f32 %v7671_v23, %v7671_v23 }
 0x621   : > { %v4603_v17 = vpop.f32.mrf.mxu1 }
 0x624   : > { %4650 = vmatmul.f32.gmra.mxu1 %v7442_v51 }
 0x629   : > { %v4606_v7 = vpop.f32.mrf.mxu1 }
 0x62a   : > { %v7687_v21 = vadd.f32 %v4606_v7, %v8266_v50 }
 0x62c   : > { %4653 = vmatmul.f32.gmra.mxu1 %v7448_v32  ;;  %v4732_v7 = vmul.f32 %v7687_v21, %v7687_v21 }
 0x631   : > { %v7594_v44 = vpop.f32.mrf.mxu1 }
 0x634   : > { %4656 = vmatmul.f32.gmra.mxu1 %v7457_v59 }
 0x639   : > { %v7597_v31 = vpop.f32.mrf.mxu1 }
 0x63c   : > { %4659 = vmatmul.f32.gmra.mxu1 %v7463_v14 }
 0x641   : > { %v7600_v61 = vpop.f32.mrf.mxu1 }
 0x644   : > { %4662 = vmatmul.f32.gmra.mxu1 %v7472_v22 }
 0x649   : > { %v4618_v5 = vpop.f32.mrf.mxu1 }
 0x64a   : > { %v7604_v40 = vadd.f32 %v4618_v5, %v7496_v56  ;;  %v7676_v5 = vadd.f32 %v4603_v17, %v8265_v38 }
 0x64c   : > { %8259 = vst [vmem:[#allocation42_spill] sm:$0xff] %v7604_v40  ;;  %4665 = vmatmul.f32.gmra.mxu1 %v7478_v24 }
 0x651   : > { %v4621_v51 = vpop.f32.mrf.mxu1 }
 0x652   : > { %v7608_v32 = vadd.f32 %v4621_v51, %v7505_v30 }
 0x654   : > { %8260 = vst [vmem:[#allocation49_spill] sm:$0xff] %v7608_v32  ;;  %4668 = vmatmul.f32.gmra.mxu1 %v7487_v0 }
 0x659   : > { %v4624_v59 = vpop.f32.mrf.mxu1 }
 0x65a   : > { %v7612_v57 = vadd.f32 %v4624_v59, %v7511_v35 }
 0x65c   : > { %8261 = vst [vmem:[#allocation69_spill] sm:$0xff] %v7612_v57  ;;  %4671 = vmatmul.f32.gmra.mxu1 %v7493_v13 }
 0x661   : > { %v4627_v14 = vpop.f32.mrf.mxu1 }
 0x662   : > { %v7616_v22 = vadd.f32 %v4627_v14, %v7521_v54  ;;  %v3207_v54 = vld [vmem:[#allocation2 + $0x19a] sm:$0xff] }
 0x664   : > { %4674 = vmatmul.f32.gmra.mxu1 %v7502_v20 }
 0x669   : > { %v4630_v56 = vpop.f32.mrf.mxu1 }
 0x66a   : > { %v7620_v24 = vadd.f32 %v4630_v56, %v7525_v48  ;;  %v3208_v48 = vld [vmem:[#allocation2 + $0x1a2] sm:$0xff] }
 0x66c   : > { %8262 = vst [vmem:[#allocation52_spill] sm:$0xff] %v7620_v24  ;;  %4677 = vmatmul.f32.gmra.mxu1 %v7508_v18 }
 0x671   : > { %v4633_v30 = vpop.f32.mrf.mxu1 }
 0x672   : > { %v7624_v0 = vadd.f32 %v4633_v30, %v7528_v62  ;;  %v4731_v30 = vmul.f32 %v7676_v5, %v7676_v5 }
 0x674   : > { %4680 = vmatmul.f32.gmra.mxu1 %v7518_v16  ;;  %v7639_v16 = vpop.f32.mrf.mxu2 }
 0x679   : > { %v4636_v35 = vpop.f32.mrf.mxu1 }
 0x67a   : > { %v7628_v13 = vadd.f32 %v4636_v35, %v7531_v60  ;;  %v7641_v60 = vpop.f32.mrf.mxu3  ;;  %v8267_v35 = vld [vmem:[#allocation56_spill] sm:$0xff] }
 0x67c   : > { %4683 = vmatmul.f32.gmra.mxu1 %v3207_v54  ;;  %v7648_v55 = vpop.f32.mrf.mxu2  ;;  %v7698_v54 = vadd.f32 %v7594_v44, %v8267_v35  ;;  %v8269_v44 = vld [vmem:[#allocation43_spill] sm:$0xff]  ;;  %v4736_v35 = vmul.f32 %v7604_v40, %v7604_v40 }
 0x67d   : > { %v7714_v9 = vadd.f32 %v7600_v61, %v8269_v44 }
 0x67e   : > { %v4733_v1 = vmul.f32 %v7698_v54, %v7698_v54 }
 0x681   : > { %v4639_v25 = vpop.f32.mrf.mxu1 }
 0x682   : > { %v7631_v20 = vadd.f32 %v4639_v25, %v7534_v53  ;;  %v7646_v53 = vpop.f32.mrf.mxu0  ;;  %v7650_v58 = vpop.f32.mrf.mxu3 }
 0x684   : > { %4686 = vmatmul.f32.gmra.mxu1 %v3208_v48  ;;  %v7657_v29 = vpop.f32.mrf.mxu2 }
 0x689   : > { %v4642_v46 = vpop.f32.mrf.mxu1 }
 0x68a   : > { %v7634_v18 = vadd.f32 %v4642_v46, %v7538_v49  ;;  %v7665_v10 = vpop.f32.mrf.mxu3  ;;  %v8268_v46 = vld [vmem:[#allocation68_spill] sm:$0xff] }
 0x68c   : > { %v7689_v59 = vpop.f32.mrf.mxu2 }
 0x691   : > { %v4645_v62 = vpop.f32.mrf.mxu1 }
 0x692   : > { %v7637_v28 = vadd.f32 %v4645_v62, %v7542_v11  ;;  %v7655_v11 = vpop.f32.mrf.mxu0  ;;  %v7705_v62 = vadd.f32 %v7597_v31, %v8268_v46 }
 0x699   : > { %v4648_v47 = vpop.f32.mrf.mxu1 }
 0x69a   : > { %v7644_v4 = vadd.f32 %v4648_v47, %v7546_v42  ;;  %v7678_v51 = vpop.f32.mrf.mxu0  ;;  %v7707_v47 = vpop.f32.mrf.mxu3 }
 0x6a1   : > { %v4651_v49 = vpop.f32.mrf.mxu1 }
 0x6a2   : > { %v7653_v36 = vadd.f32 %v4651_v49, %v7550_v19  ;;  %v4729_v19 = vmul.f32 %v7660_v27, %v7660_v27  ;;  %v7719_v31 = vpop.f32.mrf.mxu0  ;;  %v4443_v46 = vpop.f32.mrf.mxu3 }
 0x6a4   : > { %v4760_v17 = vadd.f32 %v4729_v19, %v4728_v3  ;;  %v4734_v3 = vmul.f32 %v7705_v62, %v7705_v62 }
 0x6a6   : > { %v4761_v25 = vadd.f32 %v4760_v17, %v4730_v15  ;;  %v4735_v17 = vmul.f32 %v7714_v9, %v7714_v9 }
 0x6a8   : > { %v4762_v49 = vadd.f32 %v4761_v25, %v4731_v30 }
 0x6a9   : > { %v4654_v52 = vpop.f32.mrf.mxu1 }
 0x6aa   : > { %v7663_v42 = vadd.f32 %v4654_v52, %v7554_v12  ;;  %v4690_v12 = vadd.f32 %v7660_v27, %v7668_v2  ;;  %v4763_v19 = vadd.f32 %v4762_v49, %v4732_v7  ;;  %v4737_v7 = vmul.f32 %v7608_v32, %v7608_v32 }
 0x6ac   : > { %v4691_v56 = vadd.f32 %v4690_v12, %v7671_v23  ;;  %v4764_v15 = vadd.f32 %v4763_v19, %v4733_v1  ;;  %v4738_v1 = vmul.f32 %v7612_v57, %v7612_v57 }
 0x6ae   : > { %v4692_v48 = vadd.f32 %v4691_v56, %v7676_v5  ;;  %v4330_v56 = vpop.f32.mrf.mxu2  ;;  %v4765_v30 = vadd.f32 %v4764_v15, %v4734_v3  ;;  %v4739_v3 = vmul.f32 %v7616_v22, %v7616_v22  ;;  %v7740_v15 = vpop.f32.mrf.mxu0 }
 0x6b0   : > { %v4693_v52 = vadd.f32 %v4692_v48, %v7687_v21  ;;  %v4766_v25 = vadd.f32 %v4765_v30, %v4735_v17 }
 0x6b1   : > { %v7691_v14 = vpop.f32.mrf.mxu1 }
 0x6b2   : > { %v4694_v38 = vadd.f32 %v4693_v52, %v7698_v54  ;;  %v4767_v49 = vadd.f32 %v4766_v25, %v4736_v35  ;;  %v4740_v35 = vmul.f32 %v7620_v24, %v7620_v24  ;;  %v8271_v25 = vld [vmem:[#allocation57_spill] sm:$0xff] }
 0x6b4   : > { %v4695_v50 = vadd.f32 %v4694_v38, %v7705_v62  ;;  %v4768_v19 = vadd.f32 %v4767_v49, %v4737_v7 }
 0x6b6   : > { %v4696_v61 = vadd.f32 %v4695_v50, %v7714_v9  ;;  %v8270_v50 = vld [vmem:[#allocation53_spill] sm:$0xff]  ;;  %v4769_v30 = vadd.f32 %v4768_v19, %v4738_v1  ;;  %v4333_v7 = vpop.f32.mrf.mxu2 }
 0x6b7   : > { %v4206_v17 = vadd.f32 %v7556_v34, %v8270_v50  ;;  %v8273_v50 = vld [vmem:[#allocation60_spill] sm:$0xff] }
 0x6b8   : > { %v4697_v48 = vadd.f32 %v4696_v61, %v7604_v40  ;;  %v4770_v49 = vadd.f32 %v4769_v30, %v4739_v3  ;;  %v4215_v3 = vadd.f32 %v7565_v8, %v8273_v50  ;;  %v4446_v30 = vpop.f32.mrf.mxu3  ;;  %v4744_v8 = vmul.f32 %v7634_v18, %v7634_v18 }
 0x6b9   : > { %v7721_v12 = vpop.f32.mrf.mxu1  ;;  %v4319_v34 = vadd.f32 %v7639_v16, %v4206_v17  ;;  %v8274_v16 = vld [vmem:[#allocation62_spill] sm:$0xff] }
 0x6ba   : > { %v4698_v52 = vadd.f32 %v4697_v48, %v7608_v32  ;;  %v4209_v48 = vadd.f32 %v7559_v37, %v8271_v25  ;;  %v8272_v32 = vld [vmem:[#allocation58_spill] sm:$0xff]  ;;  %v4771_v1 = vadd.f32 %v4770_v49, %v4740_v35  ;;  %v4218_v17 = vadd.f32 %v7568_v63, %v8274_v16 }
 0x6bb   : > { %v4212_v40 = vadd.f32 %v7562_v33, %v8272_v32  ;;  %v4743_v33 = vmul.f32 %v7631_v20, %v7631_v20  ;;  %v4432_v35 = vadd.f32 %v7641_v60, %v4319_v34  ;;  %v4745_v63 = vmul.f32 %v7637_v28, %v7637_v28 }
 0x6bc   : > { %v4699_v38 = vadd.f32 %v4698_v52, %v7612_v57  ;;  %v4741_v57 = vmul.f32 %v7624_v0, %v7624_v0  ;;  %v4322_v37 = vadd.f32 %v7648_v55, %v4209_v48  ;;  %v4328_v48 = vadd.f32 %v7689_v59, %v4215_v3 }
 0x6bd   : > { %v4325_v32 = vadd.f32 %v7657_v29, %v4212_v40  ;;  %v4746_v59 = vmul.f32 %v7644_v4, %v7644_v4 }
 0x6be   : > { %v4700_v61 = vadd.f32 %v4699_v38, %v7616_v22  ;;  %v4742_v38 = vmul.f32 %v7628_v13, %v7628_v13  ;;  %v4772_v25 = vadd.f32 %v4771_v1, %v4741_v57  ;;  %v4435_v57 = vadd.f32 %v7650_v58, %v4322_v37  ;;  %v4336_v34 = vpop.f32.mrf.mxu2 }
 0x6bf   : > { %v4438_v60 = vadd.f32 %v7665_v10, %v4325_v32  ;;  %v4441_v37 = vadd.f32 %v7707_v47, %v4328_v48  ;;  %v4747_v10 = vmul.f32 %v7653_v36, %v7653_v36 }
 0x6c0   : > { %v4701_v52 = vadd.f32 %v4700_v61, %v7620_v24  ;;  %v4773_v49 = vadd.f32 %v4772_v25, %v4742_v38  ;;  %v4545_v38 = vadd.f32 %v7646_v53, %v4432_v35  ;;  %v8276_v35 = vld [vmem:[#allocation66_spill] sm:$0xff] }
 0x6c1   : > { %v7735_v44 = vpop.f32.mrf.mxu1 }
 0x6c2   : > { %v4702_v19 = vadd.f32 %v4701_v52, %v7624_v0  ;;  %v8275_v52 = vld [vmem:[#allocation65_spill] sm:$0xff]  ;;  %v4774_v40 = vadd.f32 %v4773_v49, %v4743_v33  ;;  %v7789_v53 = vadd.f32 %v7691_v14, %v4545_v38 }
 0x6c3   : > { %v4221_v1 = vadd.f32 %v7571_v39, %v8275_v52  ;;  %v4548_v39 = vadd.f32 %v7655_v11, %v4435_v57  ;;  %v4224_v11 = vadd.f32 %v7574_v41, %v8276_v35 }
 0x6c4   : > { %v4703_v24 = vadd.f32 %v4702_v19, %v7628_v13  ;;  %v4559_v19 = vpop.f32.mrf.mxu0  ;;  %v4775_v50 = vadd.f32 %v4774_v40, %v4744_v8  ;;  %v4554_v8 = vadd.f32 %v7719_v31, %v4441_v37 }
 0x6c5   : > { %v4334_v3 = vadd.f32 %v4333_v7, %v4221_v1  ;;  %v4748_v7 = vmul.f32 %v7663_v42, %v7663_v42  ;;  %v4337_v52 = vadd.f32 %v4336_v34, %v4224_v11 }
 0x6c6   : > { %v4704_v55 = vadd.f32 %v4703_v24, %v7631_v20  ;;  %v4331_v24 = vadd.f32 %v4330_v56, %v4218_v17  ;;  %v4776_v33 = vadd.f32 %v4775_v50, %v4745_v63  ;;  %v4551_v56 = vadd.f32 %v7678_v51, %v4438_v60  ;;  %v4449_v17 = vpop.f32.mrf.mxu3  ;;  %v4339_v63 = vpop.f32.mrf.mxu2  ;;  %v8277_v50 = vld [vmem:[#allocation45_spill] sm:$0xff] }
 0x6c7   : > { %v4447_v14 = vadd.f32 %v4446_v30, %v4334_v3  ;;  %v4450_v34 = vadd.f32 %v4449_v17, %v4337_v52 }
 0x6c8   : > { %v4705_v29 = vadd.f32 %v4704_v55, %v7634_v18  ;;  %v4444_v32 = vadd.f32 %v4443_v46, %v4331_v24  ;;  %v4777_v49 = vadd.f32 %v4776_v33, %v4746_v59  ;;  %v7798_v55 = vadd.f32 %v7721_v12, %v4548_v39 }
 0x6c9   : > { %v4666_v61 = vpop.f32.mrf.mxu1  ;;  %v4749_v46 = vmul.f32 %v7789_v53, %v7789_v53  ;;  %v7805_v41 = vadd.f32 %v7735_v44, %v4551_v56 }
 0x6ca   : > { %v4706_v58 = vadd.f32 %v4705_v29, %v7637_v28  ;;  %v4778_v57 = vadd.f32 %v4777_v49, %v4747_v10  ;;  %v4557_v48 = vadd.f32 %v7740_v15, %v4444_v32  ;;  %v4750_v31 = vmul.f32 %v7798_v55, %v7798_v55 }
 0x6cb   : > { %v7811_v30 = vadd.f32 %v4666_v61, %v4554_v8  ;;  %v4560_v29 = vadd.f32 %v4559_v19, %v4447_v14  ;;  %v4751_v44 = vmul.f32 %v7805_v41, %v7805_v41  ;;  %v8278_v14 = vld [vmem:[#allocation67_spill] sm:$0xff] }
 0x6cc   : > { %v4707_v16 = vadd.f32 %v4706_v58, %v7644_v4  ;;  %v4562_v1 = vpop.f32.mrf.mxu0  ;;  %v4779_v40 = vadd.f32 %v4778_v57, %v4748_v7  ;;  %v4227_v58 = vadd.f32 %v7577_v26, %v8277_v50  ;;  %v4230_v57 = vadd.f32 %v7580_v43, %v8278_v14 }
 0x6cd   : > { %v4752_v61 = vmul.f32 %v7811_v30, %v7811_v30  ;;  %v4563_v10 = vadd.f32 %v4562_v1, %v4450_v34 }
 0x6ce   : > { %v4708_v47 = vadd.f32 %v4707_v16, %v7653_v36  ;;  %v4780_v24 = vadd.f32 %v4779_v40, %v4749_v46  ;;  %v4452_v37 = vpop.f32.mrf.mxu3  ;;  %v4340_v16 = vadd.f32 %v4339_v63, %v4227_v58  ;;  %v4342_v8 = vpop.f32.mrf.mxu2 }
 0x6d0   : > { %v4709_v51 = vadd.f32 %v4708_v47, %v7663_v42  ;;  %v4781_v59 = vadd.f32 %v4780_v24, %v4750_v31  ;;  %v4453_v7 = vadd.f32 %v4452_v37, %v4340_v16  ;;  %v8279_v24 = vld [vmem:[#allocation39_spill] sm:$0xff] }
 0x6d1   : > { %v4669_v25 = vpop.f32.mrf.mxu1 }
 0x6d2   : > { %v4710_v12 = vadd.f32 %v4709_v51, %v7789_v53  ;;  %v7816_v15 = vadd.f32 %v4669_v25, %v4557_v48  ;;  %v4782_v3 = vadd.f32 %v4781_v59, %v4751_v44 }
 0x6d4   : > { %v4711_v38 = vadd.f32 %v4710_v12, %v7798_v55  ;;  %v4753_v25 = vmul.f32 %v7816_v15, %v7816_v15  ;;  %v4783_v56 = vadd.f32 %v4782_v3, %v4752_v61  ;;  %v4565_v17 = vpop.f32.mrf.mxu0  ;;  %v4343_v12 = vadd.f32 %v4342_v8, %v4230_v57 }
 0x6d5   : > { %v4566_v40 = vadd.f32 %v4565_v17, %v4453_v7 }
 0x6d6   : > { %v4712_v39 = vadd.f32 %v4711_v38, %v7805_v41  ;;  %v4784_v11 = vadd.f32 %v4783_v56, %v4753_v25  ;;  %v4455_v1 = vpop.f32.mrf.mxu3  ;;  %v4233_v38 = vadd.f32 %v7583_v45, %v8279_v24  ;;  %v4345_v34 = vpop.f32.mrf.mxu2 }
 0x6d8   : > { %v4713_v33 = vadd.f32 %v4712_v39, %v7811_v30  ;;  %v4346_v59 = vadd.f32 %v4345_v34, %v4233_v38 }
 0x6d9   : > { %v4672_v60 = vpop.f32.mrf.mxu1 }
 0x6da   : > { %v7823_v19 = vadd.f32 %v4672_v60, %v4560_v29  ;;  %v4714_v26 = vadd.f32 %v4713_v33, %v7816_v15  ;;  %v4456_v60 = vadd.f32 %v4455_v1, %v4343_v12  ;;  %v8280_v33 = vld [vmem:[#allocation37_spill] sm:$0xff] }
 0x6db   : > { %v4236_v25 = vadd.f32 %v7586_v6, %v8280_v33 }
 0x6dc   : > { %v4754_v32 = vmul.f32 %v7823_v19, %v7823_v19  ;;  %v4715_v49 = vadd.f32 %v4714_v26, %v7823_v19  ;;  %v4568_v63 = vpop.f32.mrf.mxu0 }
 0x6dd   : > { %v4569_v58 = vadd.f32 %v4568_v63, %v4456_v60 }
 0x6de   : > { %v4785_v51 = vadd.f32 %v4784_v11, %v4754_v32  ;;  %v4458_v39 = vpop.f32.mrf.mxu3  ;;  %v4348_v26 = vpop.f32.mrf.mxu2 }
 0x6df   : > { %v4459_v3 = vadd.f32 %v4458_v39, %v4346_v59  ;;  %v4349_v17 = vadd.f32 %v4348_v26, %v4236_v25 }
 0x6e1   : > { %v4675_v35 = vpop.f32.mrf.mxu1 }
 0x6e2   : > { %v7832_v47 = vadd.f32 %v4675_v35, %v4563_v10 }
 0x6e4   : > { %v4716_v46 = vadd.f32 %v4715_v49, %v7832_v47  ;;  %v4755_v48 = vmul.f32 %v7832_v47, %v7832_v47  ;;  %v4571_v10 = vpop.f32.mrf.mxu0 }
 0x6e5   : > { %v4572_v32 = vadd.f32 %v4571_v10, %v4459_v3 }
 0x6e6   : > { %v4786_v52 = vadd.f32 %v4785_v51, %v4755_v48  ;;  %v4461_v49 = vpop.f32.mrf.mxu3 }
 0x6e7   : > { %v4462_v7 = vadd.f32 %v4461_v49, %v4349_v17 }
 0x6e9   : > { %v4678_v31 = vpop.f32.mrf.mxu1 }
 0x6ea   : > { %v7839_v29 = vadd.f32 %v4678_v31, %v4566_v40 }
 0x6ec   : > { %v4717_v43 = vadd.f32 %v4716_v46, %v7839_v29  ;;  %v4756_v44 = vmul.f32 %v7839_v29, %v7839_v29  ;;  %v4574_v57 = vpop.f32.mrf.mxu0 }
 0x6ed   : > { %v4575_v51 = vadd.f32 %v4574_v57, %v4462_v7 }
 0x6ee   : > { %v4787_v50 = vadd.f32 %v4786_v52, %v4756_v44 }
 0x6f1   : > { %v4681_v61 = vpop.f32.mrf.mxu1 }
 0x6f2   : > { %v7846_v37 = vadd.f32 %v4681_v61, %v4569_v58 }
 0x6f4   : > { %v4718_v16 = vadd.f32 %v4717_v43, %v7846_v37  ;;  %v4757_v45 = vmul.f32 %v7846_v37, %v7846_v37 }
 0x6f6   : > { %v4788_v56 = vadd.f32 %v4787_v50, %v4757_v45 }
 0x6f9   : > { %v4684_v35 = vpop.f32.mrf.mxu1 }
 0x6fa   : > { %v7853_v11 = vadd.f32 %v4684_v35, %v4572_v32 }
 0x6fc   : > { %v4719_v8 = vadd.f32 %v4718_v16, %v7853_v11  ;;  %v4758_v6 = vmul.f32 %v7853_v11, %v7853_v11 }
 0x6fe   : > { %v4789_v14 = vadd.f32 %v4788_v56, %v4758_v6 }
 0x701   : > { %v4687_v46 = vpop.f32.mrf.mxu1 }
 0x702   : > { %v7858_v48 = vadd.f32 %v4687_v46, %v4575_v51 }
 0x704   : > { %v4720_v52 = vadd.f32 %v4719_v8, %v7858_v48  ;;  %v4759_v1 = vmul.f32 %v7858_v48, %v7858_v48 }
 0x706   : > { %v4721_v40 = vrot.slane %v4720_v52, 4  ;;  %v4790_v12 = vadd.f32 %v4789_v14, %v4759_v1 }
 0x708   : > { %v4722_v31 = vadd.f32 %v4721_v40, %v4720_v52  ;;  %v4791_v63 = vrot.slane %v4790_v12, 4 }
 0x70a   : > { %v4723_v60 = vrot.slane %v4722_v31, 2  ;;  %v4792_v24 = vadd.f32 %v4791_v63, %v4790_v12 }
 0x70c   : > { %v4724_v38 = vadd.f32 %v4723_v60, %v4722_v31  ;;  %v4793_v43 = vrot.slane %v4792_v24, 2 }
 0x70e   : > { %v4725_v44 = vrot.slane %v4724_v38, 1  ;;  %v4794_v34 = vadd.f32 %v4793_v43, %v4792_v24 }
 0x710   : > { %v4726_v50 = vadd.f32 %v4725_v44, %v4724_v38  ;;  %v4795_v58 = vrot.slane %v4794_v34, 1 }
 0x712   : > { %v7863_v59 = vmul.f32 0.00390625, %v4726_v50  ;;  %v4796_v39 = vadd.f32 %v4795_v58, %v4794_v34 }
 0x714   : > { %v4797_v61 = vmul.f32 0.00390625, %v4796_v39  ;;  %v4798_v3 = vmul.f32 %v7863_v59, %v7863_v59  ;;  %v4827_v16 = vsub.f32 %v7823_v19, %v7863_v59  ;;  %v4828_v45 = vsub.f32 %v7832_v47, %v7863_v59 }
 0x715   : > { %v4829_v10 = vsub.f32 %v7839_v29, %v7863_v59  ;;  %v4830_v56 = vsub.f32 %v7846_v37, %v7863_v59  ;;  %v4831_v26 = vsub.f32 %v7853_v11, %v7863_v59  ;;  %v4832_v32 = vsub.f32 %v7858_v48, %v7863_v59  ;;  %v8290_v11 = vld [vmem:[#allocation18_spill] sm:$0xff]  ;;  %v8291_v48 = vld [vmem:[#allocation19_spill] sm:$0xff] }
 0x716   : > { %v4799_v33 = vsub.f32 %v4797_v61, %v4798_v3  ;;  %v4801_v8 = vsub.f32 %v7668_v2, %v7863_v59  ;;  %v4802_v6 = vsub.f32 %v7660_v27, %v7863_v59  ;;  %v4803_v14 = vsub.f32 %v7671_v23, %v7863_v59  ;;  %v8281_v27 = vld [vmem:[#allocation42_spill] sm:$0xff]  ;;  %v8282_v23 = vld [vmem:[#allocation49_spill] sm:$0xff] }
 0x717   : > { %v4804_v57 = vsub.f32 %v7676_v5, %v7863_v59  ;;  %v4805_v51 = vsub.f32 %v7687_v21, %v7863_v59  ;;  %v4806_v46 = vsub.f32 %v7698_v54, %v7863_v59  ;;  %v4807_v52 = vsub.f32 %v7705_v62, %v7863_v59  ;;  %v8283_v5 = vld [vmem:[#allocation69_spill] sm:$0xff]  ;;  %v8284_v54 = vld [vmem:[#allocation52_spill] sm:$0xff] }
 0x718   : > { %v4800_v25 = vmax.f32 %v4799_v33, 0.0  ;;  %v4808_v2 = vsub.f32 %v7714_v9, %v7863_v59  ;;  %v4809_v40 = vsub.f32 %v8281_v27, %v7863_v59  ;;  %v4810_v12 = vsub.f32 %v8282_v23, %v7863_v59 }
 0x719   : > { %v4811_v31 = vsub.f32 %v8283_v5, %v7863_v59  ;;  %v4812_v21 = vsub.f32 %v7616_v22, %v7863_v59  ;;  %v4813_v63 = vsub.f32 %v8284_v54, %v7863_v59  ;;  %v4814_v9 = vsub.f32 %v7624_v0, %v7863_v59 }
 0x71a   : > { %v4833_v17 = vadd.f32 1e-05, %v4800_v25  ;;  %v4815_v60 = vsub.f32 %v7628_v13, %v7863_v59  ;;  %v4816_v24 = vsub.f32 %v7631_v20, %v7863_v59  ;;  %v4817_v38 = vsub.f32 %v7634_v18, %v7863_v59 }
 0x71b   : > { %v4818_v22 = vsub.f32 %v7637_v28, %v7863_v59  ;;  %v4819_v43 = vsub.f32 %v7644_v4, %v7863_v59  ;;  %v4820_v0 = vsub.f32 %v7653_v36, %v7863_v59  ;;  %v4821_v13 = vsub.f32 %v7663_v42, %v7863_v59 }
 0x71c   : > { %5050 = vrsqrt.f32 %v4833_v17  ;;  %vm4840_vm4 = vweird.f32 %v4833_v17  ;;  %v4822_v20 = vsub.f32 %v7789_v53, %v7863_v59  ;;  %v4823_v18 = vsub.f32 %v7798_v55, %v7863_v59 }
 0x71d   : > { %v4824_v28 = vsub.f32 %v7805_v41, %v7863_v59  ;;  %v4825_v4 = vsub.f32 %v7811_v30, %v7863_v59  ;;  %v4826_v34 = vsub.f32 %v7816_v15, %v7863_v59 }
 0x722   : > { %v5051_v35 = vpop.eup %5050 }
 0x723   : > { %v4835_v49 = vmul.f32 %v5051_v35, %v4833_v17  ;;  %vm4841_vm3 = vweird.f32 %v5051_v35 }
 0x724   : > { %vm4842_vm5 = vmor %vm4840_vm4, %vm4841_vm3 }
 0x725   : > { %v4836_v7 = vmul.f32 %v5051_v35, %v4835_v49 }
 0x727   : > { %v4837_v1 = vmul.f32 0.5, %v4836_v7 }
 0x729   : > { %v4838_v62 = vsub.f32 1.5, %v4837_v1 }
 0x72b   : > { %v4839_v44 = vmul.f32 %v5051_v35, %v4838_v62  ;;  %v8293_v62 = vld [vmem:[#allocation23_spill] sm:$0xff] }
 0x72d   : > { %v4843_v36 = vsel %vm4842_vm5, %v5051_v35, %v4839_v44 }
 0x72e   : > { %v4844_v50 = vmul.f32 %v4843_v36, %v4801_v8  ;;  %v4845_v58 = vmul.f32 %v4843_v36, %v4802_v6  ;;  %v4846_v42 = vmul.f32 %v4843_v36, %v4803_v14  ;;  %v4847_v39 = vmul.f32 %v4843_v36, %v4804_v57 }
 0x72f   : > { %v4848_v61 = vmul.f32 %v4843_v36, %v4805_v51  ;;  %v4849_v53 = vmul.f32 %v4843_v36, %v4806_v46  ;;  %v4850_v3 = vmul.f32 %v4843_v36, %v4807_v52  ;;  %v4851_v33 = vmul.f32 %v4843_v36, %v4808_v2 }
 0x730   : > { %v4852_v55 = vmul.f32 %v4843_v36, %v4809_v40  ;;  %v4853_v25 = vmul.f32 %v4843_v36, %v4810_v12  ;;  %v4854_v17 = vmul.f32 %v4843_v36, %v4811_v31  ;;  %v4855_v49 = vmul.f32 %v4843_v36, %v4812_v21  ;;  %v8286_v12 = vld [vmem:[#allocation12_spill] sm:$0xff]  ;;  %v8287_v31 = vld [vmem:[#allocation6_spill] sm:$0xff] }
 0x731   : > { %v4856_v41 = vmul.f32 %v4843_v36, %v4813_v63  ;;  %v4857_v7 = vmul.f32 %v4843_v36, %v4814_v9  ;;  %v4858_v30 = vmul.f32 %v4843_v36, %v4815_v60  ;;  %v4859_v1 = vmul.f32 %v4843_v36, %v4816_v24  ;;  %v8288_v21 = vld [vmem:[#allocation8_spill] sm:$0xff]  ;;  %v8294_v60 = vld [vmem:[#allocation26_spill] sm:$0xff] }
 0x732   : > { %v4860_v27 = vmul.f32 %v4843_v36, %v4817_v38  ;;  %v4861_v15 = vmul.f32 %v4843_v36, %v4818_v22  ;;  %v4862_v35 = vmul.f32 %v4843_v36, %v4819_v43  ;;  %v4863_v8 = vmul.f32 %v4843_v36, %v4820_v0  ;;  %v8295_v38 = vld [vmem:[#allocation27_spill] sm:$0xff]  ;;  %v8296_v43 = vld [vmem:[#allocation30_spill] sm:$0xff] }
 0x733   : > { %v4864_v6 = vmul.f32 %v4843_v36, %v4821_v13  ;;  %v4865_v14 = vmul.f32 %v4843_v36, %v4822_v20  ;;  %v4866_v57 = vmul.f32 %v4843_v36, %v4823_v18  ;;  %v4867_v51 = vmul.f32 %v4843_v36, %v4824_v28  ;;  %v8297_v0 = vld [vmem:[#allocation31_spill] sm:$0xff]  ;;  %v8298_v20 = vld [vmem:[#allocation33_spill] sm:$0xff]  ;;  %v8299_v28 = vld [vmem:[#allocation4_spill] sm:$0xff] }
 0x734   : > { %v4868_v46 = vmul.f32 %v4843_v36, %v4825_v4  ;;  %v4869_v52 = vmul.f32 %v4843_v36, %v4826_v34  ;;  %v4870_v2 = vmul.f32 %v4843_v36, %v4827_v16  ;;  %v4871_v40 = vmul.f32 %v4843_v36, %v4828_v45  ;;  %v8285_v45 = vld [vmem:[#allocation10_spill] sm:$0xff]  ;;  %v8300_v34 = vld [vmem:[#allocation5_spill] sm:$0xff] }
 0x735   : > { %v4872_v23 = vmul.f32 %v4843_v36, %v4829_v10  ;;  %v4873_v19 = vmul.f32 %v4843_v36, %v4830_v56  ;;  %v4874_v47 = vmul.f32 %v4843_v36, %v4831_v26  ;;  %v4875_v16 = vmul.f32 %v4843_v36, %v4832_v32  ;;  %v8289_v56 = vld [vmem:[#allocation15_spill] sm:$0xff]  ;;  %v8292_v32 = vld [vmem:[#allocation22_spill] sm:$0xff] }
 0x736   : > { %v4876_v29 = vadd.f32 %v4844_v50, %v8285_v45  ;;  %v4877_v5 = vadd.f32 %v4845_v58, %v8286_v12  ;;  %v4878_v10 = vadd.f32 %v4846_v42, %v8287_v31  ;;  %v4879_v37 = vadd.f32 %v4847_v39, %v8288_v21  ;;  %v8301_v50 = vld [vmem:[#allocation7_spill] sm:$0xff]  ;;  %v8302_v42 = vld [vmem:[#allocation9_spill] sm:$0xff]  ;;  %v8314_v12 = vld [vmem:[#allocation32_spill] sm:$0xff] }
 0x737   : > { %v4880_v54 = vadd.f32 %v4848_v61, %v8289_v56  ;;  %v4881_v26 = vadd.f32 %v4849_v53, %v8290_v11  ;;  %v4882_v59 = vadd.f32 %v4850_v3, %v8291_v48  ;;  %v4883_v63 = vadd.f32 %v4851_v33, %v8292_v32  ;;  %v8303_v61 = vld [vmem:[#allocation11_spill] sm:$0xff]  ;;  %v8304_v3 = vld [vmem:[#allocation13_spill] sm:$0xff] }
 0x738   : > { %4908 = vst [vmem:[%s7942_s29] sm:$0xff] %v4876_v29  ;;  %v4884_v9 = vadd.f32 %v4852_v55, %v8293_v62  ;;  %v4885_v24 = vadd.f32 %v4853_v25, %v8294_v60  ;;  %v4886_v22 = vadd.f32 %v4854_v17, %v8295_v38  ;;  %v4887_v44 = vadd.f32 %v4855_v49, %v8296_v43  ;;  %v8305_v55 = vld [vmem:[#allocation14_spill] sm:$0xff]  ;;  %v8306_v17 = vld [vmem:[#allocation16_spill] sm:$0xff]  ;;  %v8313_v29 = vld [vmem:[#allocation29_spill] sm:$0xff] }
 0x739   : > { %4909 = vst [vmem:[%s7942_s29 + $0x8] sm:$0xff] %v4877_v5  ;;  %v4888_v13 = vadd.f32 %v4856_v41, %v8297_v0  ;;  %v4889_v18 = vadd.f32 %v4857_v7, %v8298_v20  ;;  %v4890_v4 = vadd.f32 %v4858_v30, %v8299_v28  ;;  %v4891_v36 = vadd.f32 %v4859_v1, %v8300_v34  ;;  %v8307_v41 = vld [vmem:[#allocation17_spill] sm:$0xff]  ;;  %v8308_v30 = vld [vmem:[#allocation20_spill] sm:$0xff] }
 0x73a   : > { %4910 = vst [vmem:[%s7942_s29 + $0x10] sm:$0xff] %v4878_v10  ;;  %v4892_v58 = vadd.f32 %v4860_v27, %v8301_v50  ;;  %v4893_v39 = vadd.f32 %v4861_v15, %v8302_v42  ;;  %v4894_v53 = vadd.f32 %v4862_v35, %v8303_v61  ;;  %v4895_v33 = vadd.f32 %v4863_v8, %v8304_v3  ;;  %v8309_v27 = vld [vmem:[#allocation21_spill] sm:$0xff]  ;;  %v8310_v35 = vld [vmem:[#allocation24_spill] sm:$0xff]  ;;  %v8316_v10 = vld [vmem:[#allocation55_spill] sm:$0xff] }
 0x73b   : > { %4911 = vst [vmem:[%s7942_s29 + $0x18] sm:$0xff] %v4879_v37  ;;  %v4896_v25 = vadd.f32 %v4864_v6, %v8305_v55  ;;  %v4897_v49 = vadd.f32 %v4865_v14, %v8306_v17  ;;  %v4898_v7 = vadd.f32 %v4866_v57, %v8307_v41  ;;  %v4899_v1 = vadd.f32 %v4867_v51, %v8308_v30  ;;  %v8311_v6 = vld [vmem:[#allocation25_spill] sm:$0xff]  ;;  %v8312_v57 = vld [vmem:[#allocation28_spill] sm:$0xff] }
 0x73c   : > { %4912 = vst [vmem:[%s7942_s29 + $0x20] sm:$0xff] %v4880_v54  ;;  %v4900_v15 = vadd.f32 %v4868_v46, %v8309_v27  ;;  %v4901_v8 = vadd.f32 %v4869_v52, %v8310_v35  ;;  %v4902_v14 = vadd.f32 %v4870_v2, %v8311_v6  ;;  %v4903_v45 = vadd.f32 %v4871_v40, %v8312_v57  ;;  %v8315_v46 = vld [vmem:[#allocation48_spill] sm:$0xff] }
 0x73d   : > { %4913 = vst [vmem:[%s7942_s29 + $0x28] sm:$0xff] %v4881_v26  ;;  %v4904_v51 = vadd.f32 %v4872_v23, %v8313_v29  ;;  %v4905_v5 = vadd.f32 %v4873_v19, %v8314_v12  ;;  %v4906_v31 = vadd.f32 %v4874_v47, %v8315_v46  ;;  %v4907_v52 = vadd.f32 %v4875_v16, %v8316_v10 }
 0x73e   : > { %4914 = vst [vmem:[%s7942_s29 + $0x30] sm:$0xff] %v4882_v59 }
 0x73f   : > { %4915 = vst [vmem:[%s7942_s29 + $0x38] sm:$0xff] %v4883_v63 }
 0x740   : > { %4916 = vst [vmem:[%s7942_s29 + $0x40] sm:$0xff] %v4884_v9 }
 0x741   : > { %4917 = vst [vmem:[%s7942_s29 + $0x48] sm:$0xff] %v4885_v24 }
 0x742   : > { %4918 = vst [vmem:[%s7942_s29 + $0x50] sm:$0xff] %v4886_v22 }
 0x743   : > { %4919 = vst [vmem:[%s7942_s29 + $0x58] sm:$0xff] %v4887_v44 }
 0x744   : > { %4920 = vst [vmem:[%s7942_s29 + $0x60] sm:$0xff] %v4888_v13 }
 0x745   : > { %4921 = vst [vmem:[%s7942_s29 + $0x68] sm:$0xff] %v4889_v18 }
 0x746   : > { %4922 = vst [vmem:[%s7942_s29 + $0x70] sm:$0xff] %v4890_v4 }
 0x747   : > { %4923 = vst [vmem:[%s7942_s29 + $0x78] sm:$0xff] %v4891_v36 }
 0x748   : > { %4924 = vst [vmem:[%s7942_s29 + $0x80] sm:$0xff] %v4892_v58 }
 0x749   : > { %4925 = vst [vmem:[%s7942_s29 + $0x88] sm:$0xff] %v4893_v39 }
 0x74a   : > { %4926 = vst [vmem:[%s7942_s29 + $0x90] sm:$0xff] %v4894_v53 }
 0x74b   : > { %4927 = vst [vmem:[%s7942_s29 + $0x98] sm:$0xff] %v4895_v33 }
 0x74c   : > { %4928 = vst [vmem:[%s7942_s29 + $0xa0] sm:$0xff] %v4896_v25 }
 0x74d   : > { %4929 = vst [vmem:[%s7942_s29 + $0xa8] sm:$0xff] %v4897_v49 }
 0x74e   : > { %4930 = vst [vmem:[%s7942_s29 + $0xb0] sm:$0xff] %v4898_v7 }
 0x74f   : > { %4931 = vst [vmem:[%s7942_s29 + $0xb8] sm:$0xff] %v4899_v1 }
 0x750   : > { %4932 = vst [vmem:[%s7942_s29 + $0xc0] sm:$0xff] %v4900_v15 }
 0x751   : > { %4933 = vst [vmem:[%s7942_s29 + $0xc8] sm:$0xff] %v4901_v8 }
 0x752   : > { %4934 = vst [vmem:[%s7942_s29 + $0xd0] sm:$0xff] %v4902_v14 }
 0x753   : > { %4935 = vst [vmem:[%s7942_s29 + $0xd8] sm:$0xff] %v4903_v45 }
 0x754   : > { %4936 = vst [vmem:[%s7942_s29 + $0xe0] sm:$0xff] %v4904_v51 }
 0x755   : > { %4937 = vst [vmem:[%s7942_s29 + $0xe8] sm:$0xff] %v4905_v5 }
 0x756   : > { %4938 = vst [vmem:[%s7942_s29 + $0xf0] sm:$0xff] %v4906_v31 }
 0x757   : > { %4939 = vst [vmem:[%s7942_s29 + $0xf8] sm:$0xff] %v4907_v52 }
 0x758 PF: > { %s13_s12 = sadd.s32 1, %s5058_s12  }
 0x759   : > { %p10_p4 = scmp.ge.s32.totalorder %s13_s12, 4  }
 0x75b   :  { %12 = sbr.rel (!%p10_p4) target bundleno = 1 (0x1), region = 65 }

</bundles_post_ra>
